<compile_context>
chip_gen: v7x
topology: tpu7x:2x2x1
jax: 0.10.0
libtpu: 0.0.40
codegen_flags: <defaults>
</compile_context>

<pallas_src>
import functools

import jax
import jax.numpy as jnp
from jax.experimental import pallas as pl
from jax.experimental.pallas import tpu as pltpu


# ----------------------------- Pallas kernel --------------------------------
def _frc_kernel(x_ref,
                w1_ref, b1_ref, w2_ref, b2_ref,
                w3_ref, b3_ref, w4_ref, b4_ref,
                o_ref):
    """One (batch, N-tile) cell: full fused FaceRotateConvolution forward.

    x_ref  : (1, 9, TN)  raw 9-channel corners tile
    w1/b1  : (96, 9)/(96, 1)   expanded rotate_mlp layer-1 (3 branches stacked)
    w2/b2  : (96, 96)/(96, 1)  block-diag rotate_mlp layer-2
    w3/b3  : (64, 32)/(64, 1)  fusion_mlp layer-1
    w4/b4  : (64, 64)/(64, 1)  fusion_mlp layer-2
    o_ref  : (1, 64, TN)
    Weights are bf16; biases and accumulation are fp32.
    """
    x = x_ref[0].astype(jnp.bfloat16)                                 # (9, TN)

    # rotate_mlp, all three rotated branches in two MXU dots.
    h = jnp.dot(w1_ref[...], x, preferred_element_type=jnp.float32) + b1_ref[...]
    h = jnp.maximum(h, 0.0)                                           # (96, TN)
    h = jnp.dot(w2_ref[...], h.astype(jnp.bfloat16),
                preferred_element_type=jnp.float32) + b2_ref[...]
    h = jnp.maximum(h, 0.0)                                           # (96, TN)

    # average of the three branches (8-aligned sublane slices).
    fea = (h[0:32] + h[32:64] + h[64:96]) * (1.0 / 3.0)               # (32, TN)

    # fusion_mlp: (32, TN) -> (64, TN)
    g = jnp.dot(w3_ref[...], fea.astype(jnp.bfloat16),
                preferred_element_type=jnp.float32) + b3_ref[...]
    g = jnp.maximum(g, 0.0)
    g = jnp.dot(w4_ref[...], g.astype(jnp.bfloat16),
                preferred_element_type=jnp.float32) + b4_ref[...]
    o_ref[0] = jnp.maximum(g, 0.0).astype(o_ref.dtype)


# ----------------------- rotate_mlp weight expansion --------------------------
def _expand_rotate_weights(w1, b1, w2, b2):
    """Expand rotate_mlp weights so all 3 rotated branches run as one matmul.

    branch1 reads channels [0:6], branch2 [3:9], branch3 [6:9]+[0:3].
    Layer 1 becomes a (96, 9) matrix acting directly on the 9-channel input;
    layer 2 becomes a (96, 96) block-diagonal matrix.
    """
    c_out = w1.shape[0]                       # 32
    z3 = jnp.zeros((c_out, 3), w1.dtype)
    w1a = jnp.concatenate([w1, z3], axis=1)                        # c0..c5
    w1b = jnp.concatenate([z3, w1], axis=1)                        # c3..c8
    w1c = jnp.concatenate([w1[:, 3:6], z3, w1[:, 0:3]], axis=1)    # c6..c8,c0..c2
    w1s = jnp.concatenate([w1a, w1b, w1c], axis=0)                 # (96, 9)
    b1s = jnp.concatenate([b1, b1, b1], axis=0)                    # (96, 1)

    z = jnp.zeros((c_out, c_out), w2.dtype)
    w2s = jnp.concatenate([
        jnp.concatenate([w2, z, z], axis=1),
        jnp.concatenate([z, w2, z], axis=1),
        jnp.concatenate([z, z, w2], axis=1)], axis=0)              # (96, 96)
    b2s = jnp.concatenate([b2, b2, b2], axis=0)                    # (96, 1)
    return w1s, b1s, w2s, b2s


# ------------------------------ wrapper --------------------------------------
@functools.partial(jax.jit, static_argnames=("tile_n",))
def face_rotate_convolution(corners, params, *, tile_n=2048):
    """corners: [B, 9, N] float32, params: dict of folded weights/biases."""
    B, C, N = corners.shape
    assert C == 9
    tile_n = min(tile_n, N)
    assert N % tile_n == 0 and tile_n % 128 == 0

    w1s, b1s, w2s, b2s = _expand_rotate_weights(
        params["w1"], params["b1"], params["w2"], params["b2"])
    w3, b3 = params["w3"], params["b3"]       # (64, 32), (64, 1)
    w4, b4 = params["w4"], params["b4"]       # (64, 64), (64, 1)

    # bf16 weights (native MXU); biases stay fp32 for the fp32 accumulators.
    w1s, w2s, w3b, w4b = (w1s.astype(jnp.bfloat16), w2s.astype(jnp.bfloat16),
                          w3.astype(jnp.bfloat16), w4.astype(jnp.bfloat16))

    x_spec = pl.BlockSpec((1, 9, tile_n), lambda b, n: (b, 0, n))
    full = lambda arr: pl.BlockSpec(arr.shape, lambda b, n: (0, 0))
    out_spec = pl.BlockSpec((1, 64, tile_n), lambda b, n: (b, 0, n))

    return pl.pallas_call(
        _frc_kernel,
        out_shape=jax.ShapeDtypeStruct((B, 64, N), corners.dtype),
        grid_spec=pltpu.PrefetchScalarGridSpec(
            num_scalar_prefetch=0,
            grid=(B, N // tile_n),
            in_specs=[x_spec,
                      full(w1s), full(b1s), full(w2s), full(b2s),
                      full(w3b), full(b3), full(w4b), full(b4)],
            out_specs=out_spec,
        ),
        compiler_params=pltpu.CompilerParams(
            dimension_semantics=("parallel", "parallel")),
    )(corners, w1s, b1s, w2s, b2s, w3b, b3, w4b, b4)


# -------------------- deterministic parameter construction -------------------
def _fold_conv_bn(key, c_in, c_out, idx):
    """Synthetic Conv1d(c_in, c_out, 1) + BatchNorm1d(c_out) folded (eval mode)."""
    kw, kb = jax.random.split(key)
    w = 0.1 * jax.random.normal(kw, (c_out, c_in), dtype=jnp.float32)
    b = 0.05 * jax.random.normal(kb, (c_out,), dtype=jnp.float32)
    gamma = 1.0 + 0.1 * jnp.sin(jnp.arange(c_out, dtype=jnp.float32) + idx)
    beta = 0.02 * jnp.cos(jnp.arange(c_out, dtype=jnp.float32) + idx)
    mean = 0.01 * jnp.arange(c_out, dtype=jnp.float32)
    var = 1.0 + 0.05 * jnp.arange(c_out, dtype=jnp.float32)
    eps = 1e-5
    scale = gamma / jnp.sqrt(var + eps)
    w_f = scale[:, None] * w
    b_f = scale * (b - mean) + beta
    return w_f, b_f[:, None]


def make_params(key):
    k1, k2, k3, k4 = jax.random.split(key, 4)
    w1, b1 = _fold_conv_bn(k1, 6, 32, 1)
    w2, b2 = _fold_conv_bn(k2, 32, 32, 2)
    w3, b3 = _fold_conv_bn(k3, 32, 64, 3)
    w4, b4 = _fold_conv_bn(k4, 64, 64, 4)
    return dict(w1=w1, b1=b1, w2=w2, b2=b2, w3=w3, b3=b3, w4=w4, b4=b4)


# ------------------------------ reference (fp32) ------------------------------
def reference(corners, p):
    def mlp2(x, wA, bA, wB, bB):
        h = jnp.maximum(jnp.einsum("oc,bcn->bon", wA, x) + bA[None], 0.0)
        return jnp.maximum(jnp.einsum("oc,bcn->bon", wB, h) + bB[None], 0.0)

    x1 = corners[:, 0:6]
    x2 = corners[:, 3:9]
    x3 = jnp.concatenate([corners[:, 6:9], corners[:, 0:3]], axis=1)
    fea = (mlp2(x1, p["w1"], p["b1"], p["w2"], p["b2"])
           + mlp2(x2, p["w1"], p["b1"], p["w2"], p["b2"])
           + mlp2(x3, p["w1"], p["b1"], p["w2"], p["b2"])) / 3.0
    return mlp2(fea, p["w3"], p["b3"], p["w4"], p["b4"])


if __name__ == "__main__":
    key = jax.random.PRNGKey(0)
    k_in, k_p = jax.random.split(key)

    B, N = 2, 4096  # corners: [B, 9, N]; grid = (2, 2) at tile_n=2048
    corners = jax.random.normal(k_in, (B, 9, N), dtype=jnp.float32)
    params = make_params(k_p)

    out = face_rotate_convolution(corners, params)
    out = jax.block_until_ready(out)

    ref = reference(corners, params)
    assert out.shape == (B, 64, N)
    # bf16 matmul inputs with fp32 accumulation -> looser tolerance vs fp32 ref.
    assert jnp.allclose(out, ref, atol=5e-2, rtol=5e-2), "mismatch vs JAX reference"

    print("KERNEL_OK")
</pallas_src>

<mosaic_0001>
module attributes {stable_mosaic.version = 11 : i64} {
  func.func @_frc_kernel(%arg0: i32, %arg1: i32, %arg2: memref<1x9x2048xf32, #tpu.memory_space<vmem>>, %arg3: memref<96x9xbf16, #tpu.memory_space<vmem>>, %arg4: memref<96x1xf32, #tpu.memory_space<vmem>>, %arg5: memref<96x96xbf16, #tpu.memory_space<vmem>>, %arg6: memref<96x1xf32, #tpu.memory_space<vmem>>, %arg7: memref<64x32xbf16, #tpu.memory_space<vmem>>, %arg8: memref<64x1xf32, #tpu.memory_space<vmem>>, %arg9: memref<64x64xbf16, #tpu.memory_space<vmem>>, %arg10: memref<64x1xf32, #tpu.memory_space<vmem>>, %arg11: memref<1x64x2048xf32, #tpu.memory_space<vmem>>) attributes {dimension_semantics = [#tpu.dimension_semantics<parallel>, #tpu.dimension_semantics<parallel>], iteration_bounds = array<i64: 2, 2>, scalar_prefetch = 0 : i64, scratch_operands = 0 : i64, tpu.core_type = #tpu.core_type<tc>, window_params = [{transform_indices = @transform_0, window_bounds = array<i64: 1, 9, 2048>}, {pipeline_mode = #tpu.pipeline_mode<synchronous>, transform_indices = @transform_1, window_bounds = array<i64: 96, 9>}, {pipeline_mode = #tpu.pipeline_mode<synchronous>, transform_indices = @transform_2, window_bounds = array<i64: 96, 1>}, {pipeline_mode = #tpu.pipeline_mode<synchronous>, transform_indices = @transform_3, window_bounds = array<i64: 96, 96>}, {pipeline_mode = #tpu.pipeline_mode<synchronous>, transform_indices = @transform_4, window_bounds = array<i64: 96, 1>}, {pipeline_mode = #tpu.pipeline_mode<synchronous>, transform_indices = @transform_5, window_bounds = array<i64: 64, 32>}, {pipeline_mode = #tpu.pipeline_mode<synchronous>, transform_indices = @transform_6, window_bounds = array<i64: 64, 1>}, {pipeline_mode = #tpu.pipeline_mode<synchronous>, transform_indices = @transform_7, window_bounds = array<i64: 64, 64>}, {pipeline_mode = #tpu.pipeline_mode<synchronous>, transform_indices = @transform_8, window_bounds = array<i64: 64, 1>}, {transform_indices = @transform_9, window_bounds = array<i64: 1, 64, 2048>}]} {
    %c0 = arith.constant 0 : index
    %c0_0 = arith.constant 0 : index
    %c0_1 = arith.constant 0 : index
    %0 = vector.load %arg2[%c0, %c0_0, %c0_1] : memref<1x9x2048xf32, #tpu.memory_space<vmem>>, vector<1x9x2048xf32>
    %1 = vector.shape_cast %0 : vector<1x9x2048xf32> to vector<9x2048xf32>
    %2 = arith.truncf %1 : vector<9x2048xf32> to vector<9x2048xbf16>
    %c0_2 = arith.constant 0 : index
    %c0_3 = arith.constant 0 : index
    %3 = vector.load %arg3[%c0_2, %c0_3] : memref<96x9xbf16, #tpu.memory_space<vmem>>, vector<96x9xbf16>
    %cst = arith.constant dense<0.000000e+00> : vector<96x2048xf32>
    %4 = tpu.matmul %3, %2, %cst {dimension_numbers = #tpu.dot_dimension_numbers<[1], [0], [0], [1], [0, 0, 1, 1], [], []>} : vector<96x9xbf16>, vector<9x2048xbf16>, vector<96x2048xf32> -> vector<96x2048xf32>
    %c0_4 = arith.constant 0 : index
    %c0_5 = arith.constant 0 : index
    %5 = vector.load %arg4[%c0_4, %c0_5] : memref<96x1xf32, #tpu.memory_space<vmem>>, vector<96x1xf32>
    %6 = vector.broadcast %5 : vector<96x1xf32> to vector<96x2048xf32>
    %7 = arith.addf %4, %6 : vector<96x2048xf32>
    %cst_6 = arith.constant 0.000000e+00 : f32
    %8 = vector.broadcast %cst_6 : f32 to vector<96x2048xf32>
    %9 = arith.maximumf %7, %8 : vector<96x2048xf32>
    %c0_7 = arith.constant 0 : index
    %c0_8 = arith.constant 0 : index
    %10 = vector.load %arg5[%c0_7, %c0_8] : memref<96x96xbf16, #tpu.memory_space<vmem>>, vector<96x96xbf16>
    %11 = arith.truncf %9 : vector<96x2048xf32> to vector<96x2048xbf16>
    %cst_9 = arith.constant dense<0.000000e+00> : vector<96x2048xf32>
    %12 = tpu.matmul %10, %11, %cst_9 {dimension_numbers = #tpu.dot_dimension_numbers<[1], [0], [0], [1], [0, 0, 1, 1], [], []>} : vector<96x96xbf16>, vector<96x2048xbf16>, vector<96x2048xf32> -> vector<96x2048xf32>
    %c0_10 = arith.constant 0 : index
    %c0_11 = arith.constant 0 : index
    %13 = vector.load %arg6[%c0_10, %c0_11] : memref<96x1xf32, #tpu.memory_space<vmem>>, vector<96x1xf32>
    %14 = vector.broadcast %13 : vector<96x1xf32> to vector<96x2048xf32>
    %15 = arith.addf %12, %14 : vector<96x2048xf32>
    %cst_12 = arith.constant 0.000000e+00 : f32
    %16 = vector.broadcast %cst_12 : f32 to vector<96x2048xf32>
    %17 = arith.maximumf %15, %16 : vector<96x2048xf32>
    %18 = vector.extract_strided_slice %17 {offsets = [0, 0], sizes = [32, 2048], strides = [1, 1]} : vector<96x2048xf32> to vector<32x2048xf32>
    %19 = vector.extract_strided_slice %17 {offsets = [32, 0], sizes = [32, 2048], strides = [1, 1]} : vector<96x2048xf32> to vector<32x2048xf32>
    %20 = arith.addf %18, %19 : vector<32x2048xf32>
    %21 = vector.extract_strided_slice %17 {offsets = [64, 0], sizes = [32, 2048], strides = [1, 1]} : vector<96x2048xf32> to vector<32x2048xf32>
    %22 = arith.addf %20, %21 : vector<32x2048xf32>
    %cst_13 = arith.constant 0.333333343 : f32
    %23 = vector.broadcast %cst_13 : f32 to vector<32x2048xf32>
    %24 = arith.mulf %22, %23 : vector<32x2048xf32>
    %c0_14 = arith.constant 0 : index
    %c0_15 = arith.constant 0 : index
    %25 = vector.load %arg7[%c0_14, %c0_15] : memref<64x32xbf16, #tpu.memory_space<vmem>>, vector<64x32xbf16>
    %26 = arith.truncf %24 : vector<32x2048xf32> to vector<32x2048xbf16>
    %cst_16 = arith.constant dense<0.000000e+00> : vector<64x2048xf32>
    %27 = tpu.matmul %25, %26, %cst_16 {dimension_numbers = #tpu.dot_dimension_numbers<[1], [0], [0], [1], [0, 0, 1, 1], [], []>} : vector<64x32xbf16>, vector<32x2048xbf16>, vector<64x2048xf32> -> vector<64x2048xf32>
    %c0_17 = arith.constant 0 : index
    %c0_18 = arith.constant 0 : index
    %28 = vector.load %arg8[%c0_17, %c0_18] : memref<64x1xf32, #tpu.memory_space<vmem>>, vector<64x1xf32>
    %29 = vector.broadcast %28 : vector<64x1xf32> to vector<64x2048xf32>
    %30 = arith.addf %27, %29 : vector<64x2048xf32>
    %cst_19 = arith.constant 0.000000e+00 : f32
    %31 = vector.broadcast %cst_19 : f32 to vector<64x2048xf32>
    %32 = arith.maximumf %30, %31 : vector<64x2048xf32>
    %c0_20 = arith.constant 0 : index
    %c0_21 = arith.constant 0 : index
    %33 = vector.load %arg9[%c0_20, %c0_21] : memref<64x64xbf16, #tpu.memory_space<vmem>>, vector<64x64xbf16>
    %34 = arith.truncf %32 : vector<64x2048xf32> to vector<64x2048xbf16>
    %cst_22 = arith.constant dense<0.000000e+00> : vector<64x2048xf32>
    %35 = tpu.matmul %33, %34, %cst_22 {dimension_numbers = #tpu.dot_dimension_numbers<[1], [0], [0], [1], [0, 0, 1, 1], [], []>} : vector<64x64xbf16>, vector<64x2048xbf16>, vector<64x2048xf32> -> vector<64x2048xf32>
    %c0_23 = arith.constant 0 : index
    %c0_24 = arith.constant 0 : index
    %36 = vector.load %arg10[%c0_23, %c0_24] : memref<64x1xf32, #tpu.memory_space<vmem>>, vector<64x1xf32>
    %37 = vector.broadcast %36 : vector<64x1xf32> to vector<64x2048xf32>
    %38 = arith.addf %35, %37 : vector<64x2048xf32>
    %cst_25 = arith.constant 0.000000e+00 : f32
    %39 = vector.broadcast %cst_25 : f32 to vector<64x2048xf32>
    %40 = arith.maximumf %38, %39 : vector<64x2048xf32>
    %c0_26 = arith.constant 0 : index
    %c0_27 = arith.constant 0 : index
    %c0_28 = arith.constant 0 : index
    %41 = vector.load %arg11[%c0_26, %c0_27, %c0_28] : memref<1x64x2048xf32, #tpu.memory_space<vmem>>, vector<1x64x2048xf32>
    %42 = vector.shape_cast %41 : vector<1x64x2048xf32> to vector<64x2048xf32>
    %43 = vector.shape_cast %40 : vector<64x2048xf32> to vector<1x64x2048xf32>
    tpu.vector_store %arg11[%c0_26, %c0_27, %c0_28], %43 {strides = array<i32>} : memref<1x64x2048xf32, #tpu.memory_space<vmem>>, vector<1x64x2048xf32>,
    return
  }
  func.func @transform_0(%arg0: i32, %arg1: i32) -> (i32, i32, i32) {
    %c0_i32 = arith.constant 0 : i32
    %c0_i32_0 = arith.constant 0 : i32
    return %arg0, %c0_i32, %arg1 : i32, i32, i32
  }
  func.func @transform_1(%arg0: i32, %arg1: i32) -> (i32, i32) {
    %c0_i32 = arith.constant 0 : i32
    %c0_i32_0 = arith.constant 0 : i32
    %c0_i32_1 = arith.constant 0 : i32
    return %c0_i32, %c0_i32_0 : i32, i32
  }
  func.func @transform_2(%arg0: i32, %arg1: i32) -> (i32, i32) {
    %c0_i32 = arith.constant 0 : i32
    %c0_i32_0 = arith.constant 0 : i32
    %c0_i32_1 = arith.constant 0 : i32
    return %c0_i32, %c0_i32_0 : i32, i32
  }
  func.func @transform_3(%arg0: i32, %arg1: i32) -> (i32, i32) {
    %c0_i32 = arith.constant 0 : i32
    %c0_i32_0 = arith.constant 0 : i32
    %c0_i32_1 = arith.constant 0 : i32
    return %c0_i32, %c0_i32_0 : i32, i32
  }
  func.func @transform_4(%arg0: i32, %arg1: i32) -> (i32, i32) {
    %c0_i32 = arith.constant 0 : i32
    %c0_i32_0 = arith.constant 0 : i32
    %c0_i32_1 = arith.constant 0 : i32
    return %c0_i32, %c0_i32_0 : i32, i32
  }
  func.func @transform_5(%arg0: i32, %arg1: i32) -> (i32, i32) {
    %c0_i32 = arith.constant 0 : i32
    %c0_i32_0 = arith.constant 0 : i32
    %c0_i32_1 = arith.constant 0 : i32
    return %c0_i32, %c0_i32_0 : i32, i32
  }
  func.func @transform_6(%arg0: i32, %arg1: i32) -> (i32, i32) {
    %c0_i32 = arith.constant 0 : i32
    %c0_i32_0 = arith.constant 0 : i32
    %c0_i32_1 = arith.constant 0 : i32
    return %c0_i32, %c0_i32_0 : i32, i32
  }
  func.func @transform_7(%arg0: i32, %arg1: i32) -> (i32, i32) {
    %c0_i32 = arith.constant 0 : i32
    %c0_i32_0 = arith.constant 0 : i32
    %c0_i32_1 = arith.constant 0 : i32
    return %c0_i32, %c0_i32_0 : i32, i32
  }
  func.func @transform_8(%arg0: i32, %arg1: i32) -> (i32, i32) {
    %c0_i32 = arith.constant 0 : i32
    %c0_i32_0 = arith.constant 0 : i32
    %c0_i32_1 = arith.constant 0 : i32
    return %c0_i32, %c0_i32_0 : i32, i32
  }
  func.func @transform_9(%arg0: i32, %arg1: i32) -> (i32, i32, i32) {
    %c0_i32 = arith.constant 0 : i32
    %c0_i32_0 = arith.constant 0 : i32
    return %arg0, %c0_i32, %arg1 : i32, i32, i32
  }
}

</mosaic_0001>

<bundles_post_ra>
// kernel: face_rotate_convolution.1
= control target key start
LH: loop header
LB: loop body
LE: loop exit
PB: predicated region body
PF: predicated region fallthrough
CT: control target
= control target key end

     0   :  { %14 = vsyncpa [#allocation4], 0  ;;  %s7493_s0 = inlined_call_operand.vmem [shape: f32[2,9,4096], index: 0, kind: input, shape index: {}]   ;;  %s7494_s1 = inlined_call_operand.vmem [shape: bf16[96,9], index: 1, kind: input, shape index: {}]   ;;  %s7495_s2 = inlined_call_operand.vmem [shape: f32[96,1], index: 2, kind: input, shape index: {}]   ;;  %s7496_s3 = inlined_call_operand.vmem [shape: bf16[96,96], index: 3, kind: input, shape index: {}]   ;;  %s7497_s4 = inlined_call_operand.vmem [shape: f32[96,1], index: 4, kind: input, shape index: {}]   ;;  %s7498_s5 = inlined_call_operand.vmem [shape: bf16[64,32], index: 5, kind: input, shape index: {}]   ;;  %s7499_s6 = inlined_call_operand.vmem [shape: f32[64,1], index: 6, kind: input, shape index: {}]   ;;  %s7500_s7 = inlined_call_operand.vmem [shape: bf16[64,64], index: 7, kind: input, shape index: {}]   ;;  %s7501_s8 = inlined_call_operand.vmem [shape: f32[64,1], index: 8, kind: input, shape index: {}]   ;;  %s7502_s9 = inlined_call_operand.hbm [shape: f32[2,64,4096], index: 9, kind: output, shape index: {}]  }
   0x1   :  { %16 = vsyncpa [#allocation4 + $0x1], 0  ;;  %s5343_s30 = smov 0   ;;  %s5345_s10 = smov 0  }
   0x2   :  { %s5347_s11 = smov 0   ;;  %s5349_s12 = smov 0  }
   0x3   :  { %s5351_s13 = smov 0   ;;  %s5353_s14 = smov 0  }
   0x4   :  { %s5355_s15 = smov 0   ;;  %s5357_s16 = smov 0  }
   0x5 LB: > { %s4887_s17 = sadd.s32 4294967295, %s5285_s16   ;;  %s4888_s18 = sadd.s32 4294967294, %s5285_s16   ;;  %s5285_s16 = sphi %s5357_s16, %s22_s16   ;;  %s5281_s15 = sphi %s5355_s15, %s7521_s15   ;;  %s5277_s14 = sphi %s5353_s14, %s7520_s14   ;;  %s5273_s13 = sphi %s5351_s13, %s7519_s13   ;;  %s5269_s12 = sphi %s5349_s12, %s7518_s12   ;;  %s5265_s11 = sphi %s5347_s11, %s7517_s11   ;;  %s5261_s10 = sphi %s5345_s10, %s7516_s10   ;;  %s5257_s30 = sphi %s5343_s30, %s7515_s30  }
   0x6   : > { %s31_s19 = sadd.s32 1, %s5277_s14  ;;  %s34_s20 = sadd.s32 1, %s5281_s15 }
   0x7   : > { %p32_p0 = scmp.ge.s32.totalorder %s31_s19, 2  ;;  %p50_p1 = scmp.ne.s32.totalorder %s5265_s11, %s5261_s10 }
   0x8   : > { %p51_p2 = scmp.eq.s32.totalorder %s5285_s16, 0  ;;  %p250_p5 = scmp.eq.s32.totalorder %s4887_s17, 3 }
   0x9   : > { %s7523_s19 = smov (%p32_p0, %s31_s19), 0  ;;  %s7525_s20 = smov (!%p32_p0, %s34_s20), %s5281_s15 }
   0xa   : > { %7506 = sst [smem:[#allocation6_spill]] %s7523_s19  ;;  %s39_s21 = ssub.s32 %s5277_s14, %s7523_s19 }
   0xb   : > { %p5395_p3 = por %p51_p2, %p50_p1  ;;  %p36_p4 = scmp.ge.s32.totalorder %s7525_s20, 2 }
   0xc   : > { %p255_p6 = scmp.ne.s32.totalorder %s5261_s10, %s5257_s30  ;;  %p256_p7 = scmp.eq.s32.totalorder %s4888_s18, 3 }
   0xd   : > { %s7527_s20 = smov (%p36_p4, %s7525_s20), 0  ;;  %p5403_p8 = por %p250_p5, %p50_p1 }
   0xe   : > { %7508 = sst [smem:[#allocation7_spill]] %s7527_s20  ;;  %p5407_p9 = por %p256_p7, %p255_p6 }
   0xf   : > { %s38_s25 = ssub.s32 %s5281_s15, %s7527_s20  ;;  %s43_s27 = sadd.s32 1, %s5265_s11 }
  0x10   : > { %s7510_s24 = scalar_select %p5407_p9, 1, 0 }
  0x11   : > { %s40_s26 = sor.u32 %s39_s21, %s38_s25  ;;  %p4890_p11 = scmp.ge.s32.totalorder %s5285_s16, 4 }
  0x12   : > { %7511 = sst [smem:[#allocation8_spill]] %s7510_s24  ;;  %p41_p10 = scmp.eq.s32.totalorder %s40_s26, 0 }
  0x13   : > { %296 = sbr.rel (%p4890_p11) target bundleno = 49 (0x31), region = 48 }
  0x14   : > { %s5415_s28 = scalar_select %p41_p10, %s5265_s11, %s43_s27  }
  0x1a   : > { %299 = sbr.rel (!%p5395_p3) target bundleno = 49 (0x31), region = 52  ;;  %s301_s29 = sand.u32 (%p5395_p3), 1, %s5265_s11  }
  0x1b   : > { %s4892_s17 = sshll.u32 (%p5395_p3), %s5277_s14, 4  ;;  %s4891_s18 = sshll.u32 (%p5395_p3), %s301_s29, 8 }
  0x1c   : > { %s4893_s19 = sshll.u32 (%p5395_p3), %s5281_s15, 6  ;;  %s5431_s22 = scalar_lea.vmem (%p5395_p3), [#allocation2], %s4891_s18 }
  0x1d   : > { %s306_s24 = sadd.s32 (%p5395_p3), %s4893_s19, %s4892_s17 }
  0x1e   : > { %s4894_s20 = sshll.u32 (%p5395_p3), %s306_s24, 3 }
  0x1f   : > { %s5426_s26 = scalar_lea.vmem (%p5395_p3), %s7493_s0, %s4894_s20 }
  0x20   : > { %v321_v0 = vld [vmem:[%s5426_s26] sm:$0xff] (%p5395_p3)  ;;  %v323_v1 = vld [vmem:[%s5426_s26 + $0x8] sm:$0xff] (%p5395_p3)  ;;  %v325_v2 = vld [vmem:[%s5426_s26 + $0x10] sm:$0xff] (%p5395_p3) }
  0x21   : > { %322 = vst [vmem:[%s5431_s22] sm:$0xff] %v321_v0  ;;  %324 = vst [vmem:[%s5431_s22 + $0x8] sm:$0xff] %v323_v1  ;;  %v327_v3 = vld [vmem:[%s5426_s26 + $0x18] sm:$0xff]  ;;  %v329_v4 = vld [vmem:[%s5426_s26 + $0x20] sm:$0xff] }
  0x22   : > { %326 = vst [vmem:[%s5431_s22 + $0x10] sm:$0xff] %v325_v2  ;;  %v331_v5 = vld [vmem:[%s5426_s26 + $0x28] sm:$0xff]  ;;  %328 = vst [vmem:[%s5431_s22 + $0x18] sm:$0xff] %v327_v3  ;;  %v333_v6 = vld [vmem:[%s5426_s26 + $0x30] sm:$0xff] }
  0x23   : > { %330 = vst [vmem:[%s5431_s22 + $0x20] sm:$0xff] %v329_v4  ;;  %332 = vst [vmem:[%s5431_s22 + $0x28] sm:$0xff] %v331_v5  ;;  %v335_v7 = vld [vmem:[%s5426_s26 + $0x38] sm:$0xff]  ;;  %v337_v8 = vld [vmem:[%s5426_s26 + $0x40] sm:$0xff] }
  0x24   : > { %334 = vst [vmem:[%s5431_s22 + $0x30] sm:$0xff] %v333_v6  ;;  %336 = vst [vmem:[%s5431_s22 + $0x38] sm:$0xff] %v335_v7  ;;  %v339_v9 = vld [vmem:[%s5426_s26 + $0x48] sm:$0xff]  ;;  %v341_v10 = vld [vmem:[%s5426_s26 + $0x50] sm:$0xff] }
  0x25   : > { %338 = vst [vmem:[%s5431_s22 + $0x40] sm:$0xff] %v337_v8  ;;  %v343_v11 = vld [vmem:[%s5426_s26 + $0x58] sm:$0xff]  ;;  %340 = vst [vmem:[%s5431_s22 + $0x48] sm:$0xff] %v339_v9  ;;  %v345_v12 = vld [vmem:[%s5426_s26 + $0x60] sm:$0xff] }
  0x26   : > { %342 = vst [vmem:[%s5431_s22 + $0x50] sm:$0xff] %v341_v10  ;;  %344 = vst [vmem:[%s5431_s22 + $0x58] sm:$0xff] %v343_v11  ;;  %v347_v13 = vld [vmem:[%s5426_s26 + $0x68] sm:$0xff]  ;;  %v349_v14 = vld [vmem:[%s5426_s26 + $0x70] sm:$0xff] }
  0x27   : > { %346 = vst [vmem:[%s5431_s22 + $0x60] sm:$0xff] %v345_v12  ;;  %348 = vst [vmem:[%s5431_s22 + $0x68] sm:$0xff] %v347_v13  ;;  %v351_v15 = vld [vmem:[%s5426_s26 + $0x78] sm:$0xff]  ;;  %v353_v16 = vld [vmem:[%s5426_s26 + $0x100] sm:$0xff] }
  0x28   : > { %350 = vst [vmem:[%s5431_s22 + $0x70] sm:$0xff] %v349_v14  ;;  %v355_v17 = vld [vmem:[%s5426_s26 + $0x108] sm:$0xff]  ;;  %352 = vst [vmem:[%s5431_s22 + $0x78] sm:$0xff] %v351_v15  ;;  %v357_v18 = vld [vmem:[%s5426_s26 + $0x110] sm:$0xff] }
  0x29   : > { %354 = vst [vmem:[%s5431_s22 + $0x80] sm:$0xff] %v353_v16  ;;  %356 = vst [vmem:[%s5431_s22 + $0x88] sm:$0xff] %v355_v17  ;;  %v359_v19 = vld [vmem:[%s5426_s26 + $0x118] sm:$0xff]  ;;  %v361_v20 = vld [vmem:[%s5426_s26 + $0x120] sm:$0xff] }
  0x2a   : > { %358 = vst [vmem:[%s5431_s22 + $0x90] sm:$0xff] %v357_v18  ;;  %360 = vst [vmem:[%s5431_s22 + $0x98] sm:$0xff] %v359_v19  ;;  %v363_v21 = vld [vmem:[%s5426_s26 + $0x128] sm:$0xff]  ;;  %v365_v22 = vld [vmem:[%s5426_s26 + $0x130] sm:$0xff] }
  0x2b   : > { %362 = vst [vmem:[%s5431_s22 + $0xa0] sm:$0xff] %v361_v20  ;;  %v367_v23 = vld [vmem:[%s5426_s26 + $0x138] sm:$0xff]  ;;  %364 = vst [vmem:[%s5431_s22 + $0xa8] sm:$0xff] %v363_v21  ;;  %v369_v24 = vld [vmem:[%s5426_s26 + $0x140] sm:$0xff] }
  0x2c   : > { %366 = vst [vmem:[%s5431_s22 + $0xb0] sm:$0xff] %v365_v22  ;;  %368 = vst [vmem:[%s5431_s22 + $0xb8] sm:$0xff] %v367_v23  ;;  %v371_v25 = vld [vmem:[%s5426_s26 + $0x148] sm:$0xff]  ;;  %v373_v26 = vld [vmem:[%s5426_s26 + $0x150] sm:$0xff] }
  0x2d   : > { %370 = vst [vmem:[%s5431_s22 + $0xc0] sm:$0xff] %v369_v24  ;;  %372 = vst [vmem:[%s5431_s22 + $0xc8] sm:$0xff] %v371_v25  ;;  %v375_v27 = vld [vmem:[%s5426_s26 + $0x158] sm:$0xff]  ;;  %v377_v28 = vld [vmem:[%s5426_s26 + $0x160] sm:$0xff] }
  0x2e   : > { %374 = vst [vmem:[%s5431_s22 + $0xd0] sm:$0xff] %v373_v26  ;;  %v379_v29 = vld [vmem:[%s5426_s26 + $0x168] sm:$0xff]  ;;  %376 = vst [vmem:[%s5431_s22 + $0xd8] sm:$0xff] %v375_v27  ;;  %v381_v30 = vld [vmem:[%s5426_s26 + $0x170] sm:$0xff] }
  0x2f   : > { %378 = vst [vmem:[%s5431_s22 + $0xe0] sm:$0xff] %v377_v28  ;;  %380 = vst [vmem:[%s5431_s22 + $0xe8] sm:$0xff] %v379_v29  ;;  %v383_v31 = vld [vmem:[%s5426_s26 + $0x178] sm:$0xff] }
  0x30   : > { %382 = vst [vmem:[%s5431_s22 + $0xf0] sm:$0xff] %v381_v30  ;;  %384 = vst [vmem:[%s5431_s22 + $0xf8] sm:$0xff] %v383_v31 }
  0x31 PF: > { %p4895_p12 = scmp.ge.s32.totalorder %s5285_s16, 1  ;;  %p389_p13 = scmp.lt.s32.totalorder %s5285_s16, 5 }
  0x33   : > { %p390_p0 = pnand %p4895_p12, %p389_p13 }
  0x34   : > { %s5497_s19 = sand.u32 (!%p390_p0), 1, %s5261_s10   ;;  %vm615_vm0 = vcmask (!%p390_p0), 1043456   ;;  %vm616_vm1 = vcmask (!%p390_p0), 1044480   ;;  %v5287_v32 = vmov (!%p390_p0), 65535   ;;  %v5288_v34 = vmov (!%p390_p0), 0   ;;  %v5522_v51 = vld [vmem:[%s7494_s1] sm:$0xff] (!%p390_p0)  }
  0x35   : > { %393 = sbr.rel (%p390_p0) target bundleno = 1253 (0x4e5), region = 75  ;;  %s4896_s20 = sshll.u32 (!%p390_p0), %s5497_s19, 8  ;;  %v617_v33 = vsel (!%p390_p0), %vm615_vm0, 4294967295, %v5287_v32  ;;  %699 = vmatprep.mubr.bf16.mxu0 (!%p390_p0), %v5288_v34  ;;  %792 = vmatprep.mubr.bf16.mxu1 (!%p390_p0), %v5288_v34  ;;  %vm596_vm2 = vcmask (!%p390_p0), 72704   ;;  %v494_v2 = vld [vmem:[%s7495_s2] sm:$0xff] (!%p390_p0)  ;;  %v495_v6 = vld [vmem:[%s7495_s2 + $0x8] sm:$0xff] (!%p390_p0) }
  0x36   : > { %5160 = vset.pattern.permute.xlu0 (!%p390_p0), %v5288_v34  ;;  %5161 = vset.pattern.permute.xlu1 (!%p390_p0), %v5288_v34  ;;  %s5504_s24 = scalar_lea.vmem (!%p390_p0), [#allocation2], %s4896_s20  ;;  %v5508_v37 = vsel (!%p390_p0), %vm616_vm1, %v617_v33, 0  ;;  %v496_v7 = vld [vmem:[%s7495_s2 + $0x10] sm:$0xff] (!%p390_p0)  ;;  %v5555_v8 = vld [vmem:[%s7494_s1 + $0x8] sm:$0xff] (!%p390_p0)   ;;  %v498_v9 = vld [vmem:[%s7495_s2 + $0x20] sm:$0xff] (!%p390_p0)  ;;  %vm1813_vm3 = vcmask (!%p390_p0), 785408  }
  0x37   : > { %v435_v35 = vld [vmem:[%s5504_s24 + $0x8] sm:$0xff] (!%p390_p0)  ;;  %v437_v38 = vld [vmem:[%s5504_s24 + $0x18] sm:$0xff] (!%p390_p0)  ;;  %v434_v41 = vld [vmem:[%s5504_s24] sm:$0xff] (!%p390_p0)  ;;  %508 = vperm.xlu0 (!%p390_p0), %5160, %v494_v2   ;;  %518 = vperm.xlu1 (!%p390_p0), %5161, %v496_v7   ;;  %vm3068_vm4 = vcmask (!%p390_p0), 261120   ;;  %vm3933_vm5 = vcmask (!%p390_p0), 523264   ;;  %s4897_s21 = sshll.u32 (!%p390_p0), %s5497_s19, 10 }
  0x38   : > { %v451_v36 = vld [vmem:[%s5504_s24 + $0x88] sm:$0x1] (!%p390_p0)  ;;  %v453_v40 = vld [vmem:[%s5504_s24 + $0x98] sm:$0x1] (!%p390_p0)  ;;  %v450_v42 = vld [vmem:[%s5504_s24 + $0x80] sm:$0x1] (!%p390_p0) }
  0x39   : > { %v467_v39 = vpack.c.bf16 (!%p390_p0), %v451_v36, %v435_v35  ;;  %v469_v43 = vpack.c.bf16 (!%p390_p0), %v453_v40, %v437_v38  ;;  %v466_v44 = vpack.c.bf16 (!%p390_p0), %v450_v42, %v434_v41  ;;  %v436_v45 = vld [vmem:[%s5504_s24 + $0x10] sm:$0xff] (!%p390_p0)  ;;  %v439_v52 = vld [vmem:[%s5504_s24 + $0x28] sm:$0xff] (!%p390_p0)  ;;  %v441_v56 = vld [vmem:[%s5504_s24 + $0x38] sm:$0xff] (!%p390_p0)  ;;  %s7166_s25 = scalar_lea.vmem (!%p390_p0), [#allocation3], %s4897_s21  ;;  %s5080_s26 = sshll.u32 (!%p390_p0), %s5273_s13, 8 }
  0x3a   : > { %v452_v46 = vld [vmem:[%s5504_s24 + $0x90] sm:$0x1] (!%p390_p0)  ;;  %v455_v53 = vld [vmem:[%s5504_s24 + $0xa8] sm:$0x1] (!%p390_p0)  ;;  %v457_v57 = vld [vmem:[%s5504_s24 + $0xb8] sm:$0x1] (!%p390_p0) }
  0x3b   : > { %v623_v47 = vand.u32 (!%p390_p0), %v5508_v37, %v467_v39  ;;  %v468_v48 = vpack.c.bf16 (!%p390_p0), %v452_v46, %v436_v45  ;;  %v629_v49 = vand.u32 (!%p390_p0), %v5508_v37, %v469_v43  ;;  %v620_v50 = vand.u32 (!%p390_p0), %v5508_v37, %v466_v44  ;;  %v438_v58 = vld [vmem:[%s5504_s24 + $0x20] sm:$0xff] (!%p390_p0)  ;;  %v440_v61 = vld [vmem:[%s5504_s24 + $0x30] sm:$0xff] (!%p390_p0)  ;;  %513 = vperm.xlu0 (!%p390_p0), %5160, %v495_v6   ;;  %v497_v10 = vld [vmem:[%s7495_s2 + $0x18] sm:$0xff] (!%p390_p0)  ;;  %s4787_s17 = scalar_lea.sflag (!%p390_p0), [#allocation4], %s5497_s19  ;;  %s5289_s21 = smov (!%p390_p0), [#allocation3]  }
  0x3c   : > { %v471_v55 = vpack.c.bf16 %v455_v53, %v439_v52  ;;  %v473_v59 = vpack.c.bf16 %v457_v57, %v441_v56  ;;  %v454_v60 = vld [vmem:[%s5504_s24 + $0xa0] sm:$0x1]  ;;  %v456_v62 = vld [vmem:[%s5504_s24 + $0xb0] sm:$0x1]  ;;  %v443_v11 = vld [vmem:[%s5504_s24 + $0x48] sm:$0xff]  ;;  %523 = vperm.xlu1 %5161, %v497_v10  }
  0x3d   : > { %667 = vmatprep.subr.bf16.mxu0 %v623_v47  ;;  %v626_v54 = vand.u32 %v5508_v37, %v468_v48  ;;  %760 = vmatprep.subr.bf16.mxu1 %v629_v49  ;;  %v470_v0 = vpack.c.bf16 %v454_v60, %v438_v58  ;;  %v472_v1 = vpack.c.bf16 %v456_v62, %v440_v61  ;;  %v459_v12 = vld [vmem:[%s5504_s24 + $0xc8] sm:$0x1]  ;;  %v500_v13 = vld [vmem:[%s7495_s2 + $0x30] sm:$0xff]  ;;  %v445_v15 = vld [vmem:[%s5504_s24 + $0x58] sm:$0xff] }
  0x3e   : > { %668 = vmatpush1.bf16.msra.mxu0 %v620_v50  ;;  %v635_v63 = vand.u32 %v5508_v37, %v471_v55  ;;  %v641_v3 = vand.u32 %v5508_v37, %v473_v59  ;;  %v475_v14 = vpack.c.bf16 %v459_v12, %v443_v11  ;;  %v461_v16 = vld [vmem:[%s5504_s24 + $0xd8] sm:$0x1]  ;;  %v499_v18 = vld [vmem:[%s7495_s2 + $0x28] sm:$0xff]  ;;  %v5583_v20 = vld [vmem:[%s7494_s1 + $0x10] sm:$0xff]  }
  0x3f   : > { %761 = vmatpush1.bf16.msra.mxu1 %v626_v54  ;;  %v632_v4 = vand.u32 %v5508_v37, %v470_v0  ;;  %v638_v5 = vand.u32 %v5508_v37, %v472_v1  ;;  %528 = vperm.xlu0 %5160, %v498_v9   ;;  %v477_v17 = vpack.c.bf16 %v461_v16, %v445_v15  ;;  %v502_v22 = vld [vmem:[%s7495_s2 + $0x40] sm:$0xff]  ;;  %v501_v23 = vld [vmem:[%s7495_s2 + $0x38] sm:$0xff]  ;;  %v504_v24 = vld [vmem:[%s7495_s2 + $0x50] sm:$0xff] }
  0x40   : > { %853 = vmatprep.subr.bf16.mxu0 %v635_v63  ;;  %946 = vmatprep.subr.bf16.mxu1 %v641_v3  ;;  %v647_v19 = vand.u32 %v5508_v37, %v475_v14  ;;  %v5604_v25 = vld [vmem:[%s7494_s1 + $0x18] sm:$0xff]   ;;  %v503_v26 = vld [vmem:[%s7495_s2 + $0x48] sm:$0xff]  ;;  %v446_v27 = vld [vmem:[%s5504_s24 + $0x60] sm:$0xff] }
  0x41   : > { %4904 = vmatmul.mubr.msk.bf16.vlgmr.msra.gmra.mrb[0].mxu0 %vm596_vm2, %v5522_v51  ;;  %v653_v21 = vand.u32 %v5508_v37, %v477_v17  ;;  %533 = vperm.xlu1 %5161, %v499_v18   ;;  %v462_v28 = vld [vmem:[%s5504_s24 + $0xe0] sm:$0x1]  ;;  %v448_v31 = vld [vmem:[%s5504_s24 + $0x70] sm:$0xff]  ;;  %v505_v35 = vld [vmem:[%s7495_s2 + $0x58] sm:$0xff] }
  0x42   : > { %4910 = vmatmul.mubr.msk.bf16.vlgmr.msra.gmra.mrb[0].mxu1 %vm596_vm2, %v5522_v51  ;;  %709 = vmatprep.mubr.bf16.mxu0 %v5288_v34  ;;  %v1711_v29 = vld [vmem:[%s7497_s4] sm:$0xff]  ;;  %v478_v30 = vpack.c.bf16 %v462_v28, %v446_v27  ;;  %v464_v32 = vld [vmem:[%s5504_s24 + $0xf0] sm:$0x1]  ;;  %v1712_v40 = vld [vmem:[%s7497_s4 + $0x8] sm:$0xff] }
  0x43   : > { %802 = vmatprep.mubr.bf16.mxu1 %v5288_v34  ;;  %854 = vmatpush1.bf16.msra.mxu0 %v632_v4  ;;  %v480_v33 = vpack.c.bf16 %v464_v32, %v448_v31  ;;  %v1715_v39 = vld [vmem:[%s7497_s4 + $0x20] sm:$0xff]  ;;  %v1716_v43 = vld [vmem:[%s7497_s4 + $0x28] sm:$0xff]  ;;  %v1713_v44 = vld [vmem:[%s7497_s4 + $0x10] sm:$0xff] }
  0x44   : > { %947 = vmatpush1.bf16.msra.mxu1 %v638_v5  ;;  %538 = vperm.xlu0 %5160, %v500_v13   ;;  %v5620_v36 = vand.u32 %v5508_v37, %v478_v30  ;;  %v5640_v41 = vld [vmem:[%s7494_s1 + $0x20] sm:$0xff]   ;;  %v1720_v45 = vld [vmem:[%s7497_s4 + $0x48] sm:$0xff]  ;;  %v1717_v47 = vld [vmem:[%s7497_s4 + $0x30] sm:$0xff] }
  0x45   : > { %1039 = vmatprep.subr.bf16.mxu0 %v647_v19  ;;  %1132 = vmatprep.subr.bf16.mxu1 %v653_v21  ;;  %v5623_v38 = vand.u32 %v5508_v37, %v480_v33  ;;  %v1719_v42 = vld [vmem:[%s7497_s4 + $0x40] sm:$0xff]  ;;  %v5663_v46 = vld [vmem:[%s7494_s1 + $0x28] sm:$0xff]   ;;  %v1714_v48 = vld [vmem:[%s7497_s4 + $0x18] sm:$0xff] }
  0x46   : > { %543 = vperm.xlu1 %5161, %v501_v23   ;;  %v442_v49 = vld [vmem:[%s5504_s24 + $0x40] sm:$0xff]  ;;  %v444_v52 = vld [vmem:[%s5504_s24 + $0x50] sm:$0xff]  ;;  %v447_v55 = vld [vmem:[%s5504_s24 + $0x68] sm:$0xff] }
  0x47   : > { %v458_v50 = vld [vmem:[%s5504_s24 + $0xc0] sm:$0x1]  ;;  %v460_v53 = vld [vmem:[%s5504_s24 + $0xd0] sm:$0x1]  ;;  %v463_v56 = vld [vmem:[%s5504_s24 + $0xe8] sm:$0x1] }
  0x48   : > { %548 = vperm.xlu0 %5160, %v502_v22   ;;  %v1721_v54 = vld [vmem:[%s7497_s4 + $0x50] sm:$0xff]  ;;  %v474_v57 = vpack.c.bf16 %v458_v50, %v442_v49  ;;  %v449_v58 = vld [vmem:[%s5504_s24 + $0x78] sm:$0xff]  ;;  %v476_v60 = vpack.c.bf16 %v460_v53, %v444_v52  ;;  %v479_v62 = vpack.c.bf16 %v463_v56, %v447_v55  ;;  %v3000_v63 = vld [vmem:[%s7499_s6] sm:$0xff] }
  0x49   : > { %4905 = vmatmul.mubr.msk.bf16.gmra.mrb[4].mxu0 %vm596_vm2, %v5555_v8  ;;  %v465_v59 = vld [vmem:[%s5504_s24 + $0xf8] sm:$0x1]  ;;  %v3002_v5 = vld [vmem:[%s7499_s6 + $0x10] sm:$0xff]  ;;  %v3001_v7 = vld [vmem:[%s7499_s6 + $0x8] sm:$0xff]  ;;  %s5079_s24 = sshll.u32 %s5269_s12, 4  ;;  %s4802_s12 = sshll.u32 %s7166_s25, 4  ;;  %s7427_s12 = int_to_ptr.vmem [resolvable:$true] %s4802_s12 }
  0x4a   : > { %4911 = vmatmul.mubr.msk.bf16.gmra.mrb[4].mxu1 %vm596_vm2, %v5555_v8  ;;  %719 = vmatprep.mubr.bf16.mxu0 %v5288_v34  ;;  %v1718_v61 = vld [vmem:[%s7497_s4 + $0x38] sm:$0xff]  ;;  %v481_v0 = vpack.c.bf16 %v465_v59, %v449_v58  ;;  %v644_v1 = vand.u32 %v5508_v37, %v474_v57  ;;  %v650_v2 = vand.u32 %v5508_v37, %v476_v60  ;;  %v3004_v9 = vld [vmem:[%s7499_s6 + $0x20] sm:$0xff]  ;;  %v3006_v10 = vld [vmem:[%s7499_s6 + $0x30] sm:$0xff]  ;;  %s7413_s22 = sadd.s32 %s5080_s26, %s5079_s24  ;;  %s5191_s18 = scalar_lea.vmem %s7427_s12, 16384 }
  0x4b   : > { %812 = vmatprep.mubr.bf16.mxu1 %v5288_v34  ;;  %553 = vperm.xlu1 %5161, %v503_v26   ;;  %v1722_v3 = vld [vmem:[%s7497_s4 + $0x58] sm:$0xff]  ;;  %v659_v4 = vand.u32 %v5508_v37, %v479_v62  ;;  %v3005_v11 = vld [vmem:[%s7499_s6 + $0x28] sm:$0xff]  ;;  %v3865_v12 = vld [vmem:[%s7501_s8] sm:$0xff]  ;;  %s5081_s13 = sshll.u32 %s7413_s22, 7  ;;  %p5192_p1 = scmp.ne.s32.totalorder %s7427_s12, %s5191_s18 }
  0x4c   : > { %558 = vperm.xlu0 %5160, %v504_v24   ;;  %v665_v6 = vand.u32 %v5508_v37, %v481_v0  ;;  %v3003_v37 = vld [vmem:[%s7499_s6 + $0x18] sm:$0xff]  ;;  %v3867_v14 = vld [vmem:[%s7501_s8 + $0x10] sm:$0xff]  ;;  %v3866_v15 = vld [vmem:[%s7501_s8 + $0x8] sm:$0xff]  ;;  %s7434_s29 = scalar_lea.hbm %s7502_s9, %s5081_s13  ;;  %s5195_s24 = sshll.u32 %s5289_s21, 4  ;;  %s5196_s24 = int_to_ptr.vmem [resolvable:$false] %s5195_s24 }
  0x4d   : > { %v3007_v13 = vld [vmem:[%s7499_s6 + $0x38] sm:$0xff]  ;;  %v3869_v16 = vld [vmem:[%s7501_s8 + $0x20] sm:$0xff]  ;;  %v3871_v18 = vld [vmem:[%s7501_s8 + $0x30] sm:$0xff]  ;;  %p5193_p2 = pnand %p5192_p1, %p5403_p8  ;;  %s5197_s26 = scalar_lea.vmem %s5196_s24, 32768 }
  0x4e   : > { %v3868_v17 = vld [vmem:[%s7501_s8 + $0x18] sm:$0xff]  ;;  %v3870_v19 = vld [vmem:[%s7501_s8 + $0x28] sm:$0xff]  ;;  %p5198_p4 = scmp.lt.s32.totalorder %s7427_s12, %s5196_s24  ;;  %p5199_p5 = scmp.lt.s32.totalorder %s5197_s26, %s5191_s18 }
  0x4f   : > { %563 = vperm.xlu1 %5161, %v505_v35   ;;  %v3872_v21 = vld [vmem:[%s7501_s8 + $0x38] sm:$0xff]  ;;  %p5194_p3 = pneg %p5193_p2 }
  0x50   : > { %1725 = vperm.xlu0 %5160, %v1711_v29   ;;  %p5200_p6 = por %p5199_p5, %p5198_p4 }
  0x51   : > { %4906 = vmatmul.mubr.msk.bf16.gmra.mrb[8].mxu0 %vm596_vm2, %v5583_v20 }
  0x52   : > { %4912 = vmatmul.mubr.msk.bf16.gmra.mrb[8].mxu1 %vm596_vm2, %v5583_v20  ;;  %729 = vmatprep.mubr.bf16.mxu0 %v5288_v34  ;;  %p5201_p7 = pnand %p5200_p6, %p5194_p3 }
  0x53   : > { %822 = vmatprep.mubr.bf16.mxu1 %v5288_v34  ;;  %1730 = vperm.xlu1 %5161, %v1712_v40  }
  0x54   : > { %1745 = vperm.xlu0 %5160, %v1715_v39  }
  0x57   : > { %1750 = vperm.xlu1 %5161, %v1716_v43  }
  0x58   : > { %1765 = vperm.xlu0 %5160, %v1719_v42  }
  0x59   : > { %4907 = vmatmul.mubr.msk.bf16.gmra.mrb[12].mxu0 %vm596_vm2, %v5604_v25 }
  0x5a   : > { %4913 = vmatmul.mubr.msk.bf16.gmra.mrb[12].mxu1 %vm596_vm2, %v5604_v25  ;;  %739 = vmatprep.mubr.bf16.mxu0 %v5288_v34 }
  0x5b   : > { %832 = vmatprep.mubr.bf16.mxu1 %v5288_v34  ;;  %1770 = vperm.xlu1 %5161, %v1720_v45  }
  0x5c   : > { %1735 = vperm.xlu0 %5160, %v1713_v44  }
  0x5f   : > { %1740 = vperm.xlu1 %5161, %v1714_v48  }
  0x60   : > { %1755 = vperm.xlu0 %5160, %v1717_v47  }
  0x61   : > { %4908 = vmatmul.mubr.msk.bf16.gmra.mrb[16].mxu0 %vm596_vm2, %v5640_v41 }
  0x62   : > { %4914 = vmatmul.mubr.msk.bf16.gmra.mrb[16].mxu1 %vm596_vm2, %v5640_v41  ;;  %749 = vmatprep.mubr.bf16.mxu0 %v5288_v34 }
  0x63   : > { %842 = vmatprep.mubr.bf16.mxu1 %v5288_v34  ;;  %1760 = vperm.xlu1 %5161, %v1718_v61  }
  0x64   : > { %1775 = vperm.xlu0 %5160, %v1721_v54  }
  0x67   : > { %1780 = vperm.xlu1 %5161, %v1722_v3  }
  0x68   : > { %3010 = vperm.xlu0 %5160, %v3000_v63  }
  0x69   : > { %4909 = vmatmul.mubr.msk.bf16.gmra.mrb[20].mxu0 %vm596_vm2, %v5663_v46 }
  0x6a   : > { %4915 = vmatmul.mubr.msk.bf16.gmra.mrb[20].mxu1 %vm596_vm2, %v5663_v46  ;;  %885 = vmatprep.mubr.bf16.mxu0 %v5288_v34 }
  0x6b   : > { %978 = vmatprep.mubr.bf16.mxu1 %v5288_v34  ;;  %3015 = vperm.xlu1 %5161, %v3001_v7  }
  0x6c   : > { %3020 = vperm.xlu0 %5160, %v3002_v5  }
  0x6f   : > { %3025 = vperm.xlu1 %5161, %v3003_v37  }
  0x70   : > { %3030 = vperm.xlu0 %5160, %v3004_v9  }
  0x71   : > { %4916 = vmatmul.mubr.msk.bf16.vlgmr.msra.gmra.mrb[24].mxu0 %vm596_vm2, %v5522_v51 }
  0x72   : > { %4922 = vmatmul.mubr.msk.bf16.vlgmr.msra.gmra.mrb[24].mxu1 %vm596_vm2, %v5522_v51  ;;  %895 = vmatprep.mubr.bf16.mxu0 %v5288_v34 }
  0x73   : > { %988 = vmatprep.mubr.bf16.mxu1 %v5288_v34  ;;  %1040 = vmatpush1.bf16.msra.mxu0 %v644_v1 }
  0x74   : > { %1133 = vmatpush1.bf16.msra.mxu1 %v650_v2  ;;  %1225 = vmatprep.subr.bf16.mxu0 %v659_v4 }
  0x75   : > { %1318 = vmatprep.subr.bf16.mxu1 %v665_v6  ;;  %3040 = vperm.xlu0 %5160, %v3006_v10  }
  0x76   : > { %3035 = vperm.xlu1 %5161, %v3005_v11  }
  0x79   : > { %4917 = vmatmul.mubr.msk.bf16.gmra.mrb[28].mxu0 %vm596_vm2, %v5555_v8  ;;  %3875 = vperm.xlu0 %5160, %v3865_v12  }
  0x7a   : > { %4923 = vmatmul.mubr.msk.bf16.gmra.mrb[28].mxu1 %vm596_vm2, %v5555_v8  ;;  %905 = vmatprep.mubr.bf16.mxu0 %v5288_v34 }
  0x7b   : > { %998 = vmatprep.mubr.bf16.mxu1 %v5288_v34  ;;  %3045 = vperm.xlu1 %5161, %v3007_v13  }
  0x7d   : > { %3885 = vperm.xlu0 %5160, %v3867_v14  }
  0x7f   : > { %3880 = vperm.xlu1 %5161, %v3866_v15  }
  0x81   : > { %4918 = vmatmul.mubr.msk.bf16.gmra.mrb[32].mxu0 %vm596_vm2, %v5583_v20  ;;  %3895 = vperm.xlu0 %5160, %v3869_v16  }
  0x82   : > { %4924 = vmatmul.mubr.msk.bf16.gmra.mrb[32].mxu1 %vm596_vm2, %v5583_v20  ;;  %915 = vmatprep.mubr.bf16.mxu0 %v5288_v34 }
  0x83   : > { %1008 = vmatprep.mubr.bf16.mxu1 %v5288_v34  ;;  %3890 = vperm.xlu1 %5161, %v3868_v17  }
  0x85   : > { %3905 = vperm.xlu0 %5160, %v3871_v18  }
  0x87   : > { %3900 = vperm.xlu1 %5161, %v3870_v19  }
  0x89   : > { %4919 = vmatmul.mubr.msk.bf16.gmra.mrb[36].mxu0 %vm596_vm2, %v5604_v25 }
  0x8a   : > { %4925 = vmatmul.mubr.msk.bf16.gmra.mrb[36].mxu1 %vm596_vm2, %v5604_v25  ;;  %925 = vmatprep.mubr.bf16.mxu0 %v5288_v34 }
  0x8b   : > { %1018 = vmatprep.mubr.bf16.mxu1 %v5288_v34  ;;  %3910 = vperm.xlu1 %5161, %v3872_v21  }
  0x91   : > { %4920 = vmatmul.mubr.msk.bf16.gmra.mrb[40].mxu0 %vm596_vm2, %v5640_v41 }
  0x92   : > { %4926 = vmatmul.mubr.msk.bf16.gmra.mrb[40].mxu1 %vm596_vm2, %v5640_v41  ;;  %935 = vmatprep.mubr.bf16.mxu0 %v5288_v34 }
  0x93   : > { %1028 = vmatprep.mubr.bf16.mxu1 %v5288_v34 }
  0x99   : > { %4921 = vmatmul.mubr.msk.bf16.gmra.mrb[44].mxu0 %vm596_vm2, %v5663_v46 }
  0x9a   : > { %4927 = vmatmul.mubr.msk.bf16.gmra.mrb[44].mxu1 %vm596_vm2, %v5663_v46  ;;  %1071 = vmatprep.mubr.bf16.mxu0 %v5288_v34 }
  0x9b   : > { %1164 = vmatprep.mubr.bf16.mxu1 %v5288_v34 }
  0xa1   : > { %4928 = vmatmul.mubr.msk.bf16.vlgmr.msra.gmra.mrb[48].mxu0 %vm596_vm2, %v5522_v51 }
  0xa2   : > { %4934 = vmatmul.mubr.msk.bf16.vlgmr.msra.gmra.mrb[48].mxu1 %vm596_vm2, %v5522_v51  ;;  %1081 = vmatprep.mubr.bf16.mxu0 %v5288_v34 }
  0xa3   : > { %1174 = vmatprep.mubr.bf16.mxu1 %v5288_v34  ;;  %1226 = vmatpush1.bf16.msra.mxu0 %v5620_v36 }
  0xa4   : > { %1319 = vmatpush1.bf16.msra.mxu1 %v5623_v38 }
  0xa9   : > { %4929 = vmatmul.mubr.msk.bf16.gmra.mrb[52].mxu0 %vm596_vm2, %v5555_v8 }
  0xaa   : > { %4935 = vmatmul.mubr.msk.bf16.gmra.mrb[52].mxu1 %vm596_vm2, %v5555_v8  ;;  %1091 = vmatprep.mubr.bf16.mxu0 %v5288_v34 }
  0xab   : > { %1184 = vmatprep.mubr.bf16.mxu1 %v5288_v34 }
  0xb1   : > { %4930 = vmatmul.mubr.msk.bf16.gmra.mrb[56].mxu0 %vm596_vm2, %v5583_v20 }
  0xb2   : > { %4936 = vmatmul.mubr.msk.bf16.gmra.mrb[56].mxu1 %vm596_vm2, %v5583_v20  ;;  %1101 = vmatprep.mubr.bf16.mxu0 %v5288_v34 }
  0xb3   : > { %1194 = vmatprep.mubr.bf16.mxu1 %v5288_v34 }
  0xb9   : > { %4931 = vmatmul.mubr.msk.bf16.gmra.mrb[60].mxu0 %vm596_vm2, %v5604_v25 }
  0xba   : > { %4937 = vmatmul.mubr.msk.bf16.gmra.mrb[60].mxu1 %vm596_vm2, %v5604_v25  ;;  %1111 = vmatprep.mubr.bf16.mxu0 %v5288_v34 }
  0xbb   : > { %1204 = vmatprep.mubr.bf16.mxu1 %v5288_v34 }
  0xc1   : > { %4932 = vmatmul.mubr.msk.bf16.gmra.mrb[64].mxu0 %vm596_vm2, %v5640_v41 }
  0xc2   : > { %4938 = vmatmul.mubr.msk.bf16.gmra.mrb[64].mxu1 %vm596_vm2, %v5640_v41  ;;  %1121 = vmatprep.mubr.bf16.mxu0 %v5288_v34 }
  0xc3   : > { %1214 = vmatprep.mubr.bf16.mxu1 %v5288_v34 }
  0xc9   : > { %4933 = vmatmul.mubr.msk.bf16.gmra.mrb[68].mxu0 %vm596_vm2, %v5663_v46 }
  0xca   : > { %4939 = vmatmul.mubr.msk.bf16.gmra.mrb[68].mxu1 %vm596_vm2, %v5663_v46  ;;  %1257 = vmatprep.mubr.bf16.mxu0 %v5288_v34 }
  0xcb   : > { %1350 = vmatprep.mubr.bf16.mxu1 %v5288_v34 }
  0xd1   : > { %4940 = vmatmul.mubr.msk.bf16.vlgmr.msra.gmra.mrb[72].mxu0 %vm596_vm2, %v5522_v51 }
  0xd2   : > { %4946 = vmatmul.mubr.msk.bf16.vlgmr.msra.gmra.mrb[72].mxu1 %vm596_vm2, %v5522_v51  ;;  %1267 = vmatprep.mubr.bf16.mxu0 %v5288_v34  ;;  %v5856_v51 = vpop.permute.xlu0 %508 }
  0xd3   : > { %1360 = vmatprep.mubr.bf16.mxu1 %v5288_v34 }
  0xd9   : > { %4941 = vmatmul.mubr.msk.bf16.gmra.mrb[76].mxu0 %vm596_vm2, %v5555_v8 }
  0xda   : > { %4947 = vmatmul.mubr.msk.bf16.gmra.mrb[76].mxu1 %vm596_vm2, %v5555_v8  ;;  %1277 = vmatprep.mubr.bf16.mxu0 %v5288_v34  ;;  %v5858_v8 = vpop.permute.xlu0 %513 }
  0xdb   : > { %1370 = vmatprep.mubr.bf16.mxu1 %v5288_v34 }
  0xde   : > { %v5880_v12 = vpop.permute.xlu0 %528 }
  0xe1   : > { %4942 = vmatmul.mubr.msk.bf16.gmra.mrb[80].mxu0 %vm596_vm2, %v5583_v20 }
  0xe2   : > { %4948 = vmatmul.mubr.msk.bf16.gmra.mrb[80].mxu1 %vm596_vm2, %v5583_v20  ;;  %1287 = vmatprep.mubr.bf16.mxu0 %v5288_v34  ;;  %v5860_v20 = vpop.permute.xlu1 %518 }
  0xe3   : > { %1380 = vmatprep.mubr.bf16.mxu1 %v5288_v34 }
  0xe6   : > { %v5870_v49 = vpop.permute.xlu1 %523 }
  0xe9   : > { %4943 = vmatmul.mubr.msk.bf16.gmra.mrb[84].mxu0 %vm596_vm2, %v5604_v25 }
  0xea   : > { %4949 = vmatmul.mubr.msk.bf16.gmra.mrb[84].mxu1 %vm596_vm2, %v5604_v25  ;;  %1297 = vmatprep.mubr.bf16.mxu0 %v5288_v34  ;;  %v5882_v16 = vpop.permute.xlu1 %533 }
  0xeb   : > { %1390 = vmatprep.mubr.bf16.mxu1 %v5288_v34 }
  0xf1   : > { %4944 = vmatmul.mubr.msk.bf16.gmra.mrb[88].mxu0 %vm596_vm2, %v5640_v41 }
  0xf2   : > { %4950 = vmatmul.mubr.msk.bf16.gmra.mrb[88].mxu1 %vm596_vm2, %v5640_v41  ;;  %1307 = vmatprep.mubr.bf16.mxu0 %v5288_v34 }
  0xf3   : > { %1400 = vmatprep.mubr.bf16.mxu1 %v5288_v34 }
  0xf9   : > { %4945 = vmatmul.mubr.msk.bf16.gmra.mrb[92].mxu0 %vm596_vm2, %v5663_v46 }
  0xfa   : > { %4951 = vmatmul.mubr.msk.bf16.gmra.mrb[92].mxu1 %vm596_vm2, %v5663_v46  ;;  %1864 = vmatprep.mubr.bf16.mxu0 %v5288_v34 }
  0xfb   : > { %1957 = vmatprep.mubr.bf16.mxu1 %v5288_v34 }
 0x114   : > { %v701_v22 = vpop.f32.mrb[0].mxu0 }
 0x115   : > { %v702_v23 = vadd.f32 %v701_v22, %v5856_v51  ;;  %v794_v24 = vpop.f32.mrb[0].mxu1  ;;  %v703_v25 = vpop.f32.mrb[1].mxu0 }
 0x116   : > { %v795_v26 = vadd.f32 %v794_v24, %v5856_v51  ;;  %v704_v27 = vadd.f32 %v703_v25, %v5856_v51  ;;  %v796_v28 = vpop.f32.mrb[1].mxu1  ;;  %v705_v29 = vpop.f32.mrb[2].mxu0 }
 0x117   : > { %v797_v30 = vadd.f32 %v796_v28, %v5856_v51  ;;  %v706_v31 = vadd.f32 %v705_v29, %v5858_v8  ;;  %v798_v32 = vpop.f32.mrb[2].mxu1  ;;  %v707_v33 = vpop.f32.mrb[3].mxu0  ;;  %v1411_v39 = vmax.f32 %v702_v23, 0.0 }
 0x118   : > { %v799_v35 = vadd.f32 %v798_v32, %v5858_v8  ;;  %v708_v36 = vadd.f32 %v707_v33, %v5858_v8  ;;  %v800_v38 = vpop.f32.mrb[3].mxu1  ;;  %v1413_v42 = vmax.f32 %v795_v26, 0.0  ;;  %v1412_v43 = vmax.f32 %v704_v27, 0.0 }
 0x119   : > { %v1427_v40 = vmax.f32 %v706_v31, 0.0  ;;  %v801_v41 = vadd.f32 %v800_v38, %v5858_v8  ;;  %v1414_v46 = vmax.f32 %v797_v30, 0.0 }
 0x11a   : > { %v1429_v44 = vmax.f32 %v799_v35, 0.0  ;;  %v1428_v45 = vmax.f32 %v708_v36, 0.0 }
 0x11b   : > { %v1615_v47 = vpack.c.bf16 %v1427_v40, %v1411_v39  ;;  %v1430_v48 = vmax.f32 %v801_v41, 0.0 }
 0x11c   : > { %v1617_v50 = vpack.c.bf16 %v1429_v44, %v1413_v42  ;;  %v711_v52 = vpop.f32.mrb[4].mxu0  ;;  %v1616_v53 = vpack.c.bf16 %v1428_v45, %v1412_v43  ;;  %v5892_v45 = vpop.permute.xlu0 %538 }
 0x11d   : > { %v712_v54 = vadd.f32 %v711_v52, %v5860_v20  ;;  %v804_v55 = vpop.f32.mrb[4].mxu1  ;;  %v713_v56 = vpop.f32.mrb[5].mxu0  ;;  %v1618_v57 = vpack.c.bf16 %v1430_v48, %v1414_v46 }
 0x11e   : > { %v805_v58 = vadd.f32 %v804_v55, %v5860_v20  ;;  %v714_v59 = vadd.f32 %v713_v56, %v5860_v20  ;;  %v806_v60 = vpop.f32.mrb[5].mxu1  ;;  %v715_v61 = vpop.f32.mrb[6].mxu0  ;;  %1832 = vmatprep.subr.bf16.mxu0 %v1616_v53 }
 0x11f   : > { %v807_v62 = vadd.f32 %v806_v60, %v5860_v20  ;;  %v716_v63 = vadd.f32 %v715_v61, %v5870_v49  ;;  %v808_v0 = vpop.f32.mrb[6].mxu1  ;;  %1925 = vmatprep.subr.bf16.mxu1 %v1618_v57  ;;  %v717_v1 = vpop.f32.mrb[7].mxu0  ;;  %1833 = vmatpush1.bf16.msra.mxu0 %v1615_v47  ;;  %v1443_v5 = vmax.f32 %v712_v54, 0.0 }
 0x120   : > { %v809_v2 = vadd.f32 %v808_v0, %v5870_v49  ;;  %v718_v3 = vadd.f32 %v717_v1, %v5870_v49  ;;  %v810_v4 = vpop.f32.mrb[7].mxu1  ;;  %1926 = vmatpush1.bf16.msra.mxu1 %v1617_v50  ;;  %v1445_v9 = vmax.f32 %v805_v58, 0.0  ;;  %v1444_v37 = vmax.f32 %v714_v59, 0.0  ;;  %v5894_v50 = vpop.permute.xlu1 %543 }
 0x121   : > { %v1459_v6 = vmax.f32 %v716_v63, 0.0  ;;  %v811_v7 = vadd.f32 %v810_v4, %v5870_v49  ;;  %v1446_v13 = vmax.f32 %v807_v62, 0.0 }
 0x122   : > { %v1461_v10 = vmax.f32 %v809_v2, 0.0  ;;  %v1460_v11 = vmax.f32 %v718_v3, 0.0 }
 0x123   : > { %v1631_v14 = vpack.c.bf16 %v1459_v6, %v1443_v5  ;;  %v1462_v15 = vmax.f32 %v811_v7, 0.0 }
 0x124   : > { %v1633_v17 = vpack.c.bf16 %v1461_v10, %v1445_v9  ;;  %v721_v18 = vpop.f32.mrb[8].mxu0  ;;  %v1632_v19 = vpack.c.bf16 %v1460_v11, %v1444_v37 }
 0x125   : > { %v722_v21 = vadd.f32 %v721_v18, %v5880_v12  ;;  %v814_v22 = vpop.f32.mrb[8].mxu1  ;;  %v723_v23 = vpop.f32.mrb[9].mxu0  ;;  %v1634_v24 = vpack.c.bf16 %v1462_v15, %v1446_v13 }
 0x126   : > { %v815_v25 = vadd.f32 %v814_v22, %v5880_v12  ;;  %v724_v26 = vadd.f32 %v723_v23, %v5880_v12  ;;  %v816_v27 = vpop.f32.mrb[9].mxu1  ;;  %v725_v28 = vpop.f32.mrb[10].mxu0  ;;  %1834 = vmatprep.subr.bf16.mxu0 %v1632_v19 }
 0x127   : > { %v817_v29 = vadd.f32 %v816_v27, %v5880_v12  ;;  %v726_v30 = vadd.f32 %v725_v28, %v5882_v16  ;;  %v818_v31 = vpop.f32.mrb[10].mxu1  ;;  %1927 = vmatprep.subr.bf16.mxu1 %v1634_v24  ;;  %v727_v32 = vpop.f32.mrb[11].mxu0  ;;  %1835 = vmatpush1.bf16.msra.mxu0 %v1631_v14  ;;  %v1475_v38 = vmax.f32 %v722_v21, 0.0 }
 0x128   : > { %v819_v33 = vadd.f32 %v818_v31, %v5882_v16  ;;  %v728_v35 = vadd.f32 %v727_v32, %v5882_v16  ;;  %v820_v36 = vpop.f32.mrb[11].mxu1  ;;  %1928 = vmatpush1.bf16.msra.mxu1 %v1633_v17  ;;  %v1477_v41 = vmax.f32 %v815_v25, 0.0  ;;  %v1476_v42 = vmax.f32 %v724_v26, 0.0  ;;  %v5904_v14 = vpop.permute.xlu0 %548 }
 0x129   : > { %v1491_v39 = vmax.f32 %v726_v30, 0.0  ;;  %v821_v40 = vadd.f32 %v820_v36, %v5882_v16  ;;  %v1478_v46 = vmax.f32 %v817_v29, 0.0  ;;  %v5906_v19 = vpop.permute.xlu1 %553 }
 0x12a   : > { %v1493_v43 = vmax.f32 %v819_v33, 0.0  ;;  %v1492_v44 = vmax.f32 %v728_v35, 0.0 }
 0x12b   : > { %v1647_v47 = vpack.c.bf16 %v1491_v39, %v1475_v38  ;;  %v1494_v48 = vmax.f32 %v821_v40, 0.0 }
 0x12c   : > { %v1649_v52 = vpack.c.bf16 %v1493_v43, %v1477_v41  ;;  %v731_v53 = vpop.f32.mrb[12].mxu0  ;;  %v1648_v54 = vpack.c.bf16 %v1492_v44, %v1476_v42 }
 0x12d   : > { %v732_v55 = vadd.f32 %v731_v53, %v5892_v45  ;;  %v824_v56 = vpop.f32.mrb[12].mxu1  ;;  %v733_v57 = vpop.f32.mrb[13].mxu0  ;;  %v1650_v58 = vpack.c.bf16 %v1494_v48, %v1478_v46 }
 0x12e   : > { %v825_v59 = vadd.f32 %v824_v56, %v5892_v45  ;;  %v734_v60 = vadd.f32 %v733_v57, %v5892_v45  ;;  %v826_v61 = vpop.f32.mrb[13].mxu1  ;;  %v735_v62 = vpop.f32.mrb[14].mxu0  ;;  %1836 = vmatprep.subr.bf16.mxu0 %v1648_v54 }
 0x12f   : > { %v827_v63 = vadd.f32 %v826_v61, %v5892_v45  ;;  %v736_v0 = vadd.f32 %v735_v62, %v5894_v50  ;;  %v828_v1 = vpop.f32.mrb[14].mxu1  ;;  %1929 = vmatprep.subr.bf16.mxu1 %v1650_v58  ;;  %v737_v2 = vpop.f32.mrb[15].mxu0  ;;  %1837 = vmatpush1.bf16.msra.mxu0 %v1647_v47  ;;  %v1507_v6 = vmax.f32 %v732_v55, 0.0 }
 0x130   : > { %v829_v3 = vadd.f32 %v828_v1, %v5894_v50  ;;  %v738_v4 = vadd.f32 %v737_v2, %v5894_v50  ;;  %v830_v5 = vpop.f32.mrb[15].mxu1  ;;  %1930 = vmatpush1.bf16.msra.mxu1 %v1649_v52  ;;  %v1509_v37 = vmax.f32 %v825_v59, 0.0  ;;  %v1508_v10 = vmax.f32 %v734_v60, 0.0  ;;  %v5916_v52 = vpop.permute.xlu0 %558 }
 0x131   : > { %v1523_v7 = vmax.f32 %v736_v0, 0.0  ;;  %v831_v9 = vadd.f32 %v830_v5, %v5894_v50  ;;  %v1510_v15 = vmax.f32 %v827_v63, 0.0  ;;  %v5918_v56 = vpop.permute.xlu1 %563 }
 0x132   : > { %v1525_v11 = vmax.f32 %v829_v3, 0.0  ;;  %v1524_v13 = vmax.f32 %v738_v4, 0.0 }
 0x133   : > { %v1663_v17 = vpack.c.bf16 %v1523_v7, %v1507_v6  ;;  %v1526_v18 = vmax.f32 %v831_v9, 0.0 }
 0x134   : > { %v1665_v21 = vpack.c.bf16 %v1525_v11, %v1509_v37  ;;  %v741_v22 = vpop.f32.mrb[16].mxu0  ;;  %v1664_v23 = vpack.c.bf16 %v1524_v13, %v1508_v10 }
 0x135   : > { %v742_v24 = vadd.f32 %v741_v22, %v5904_v14  ;;  %v834_v25 = vpop.f32.mrb[16].mxu1  ;;  %v743_v26 = vpop.f32.mrb[17].mxu0  ;;  %v1666_v27 = vpack.c.bf16 %v1526_v18, %v1510_v15 }
 0x136   : > { %v835_v28 = vadd.f32 %v834_v25, %v5904_v14  ;;  %v744_v29 = vadd.f32 %v743_v26, %v5904_v14  ;;  %v836_v30 = vpop.f32.mrb[17].mxu1  ;;  %v745_v31 = vpop.f32.mrb[18].mxu0  ;;  %1838 = vmatprep.subr.bf16.mxu0 %v1664_v23 }
 0x137   : > { %v837_v32 = vadd.f32 %v836_v30, %v5904_v14  ;;  %v746_v33 = vadd.f32 %v745_v31, %v5906_v19  ;;  %v838_v35 = vpop.f32.mrb[18].mxu1  ;;  %1931 = vmatprep.subr.bf16.mxu1 %v1666_v27  ;;  %v747_v36 = vpop.f32.mrb[19].mxu0  ;;  %1839 = vmatpush1.bf16.msra.mxu0 %v1663_v17  ;;  %v1539_v41 = vmax.f32 %v742_v24, 0.0 }
 0x138   : > { %v839_v38 = vadd.f32 %v838_v35, %v5906_v19  ;;  %v748_v39 = vadd.f32 %v747_v36, %v5906_v19  ;;  %v840_v40 = vpop.f32.mrb[19].mxu1  ;;  %1932 = vmatpush1.bf16.msra.mxu1 %v1665_v21  ;;  %v1541_v44 = vmax.f32 %v835_v28, 0.0  ;;  %v1540_v46 = vmax.f32 %v744_v29, 0.0 }
 0x139   : > { %v1555_v42 = vmax.f32 %v746_v33, 0.0  ;;  %v841_v43 = vadd.f32 %v840_v40, %v5906_v19  ;;  %v1542_v53 = vmax.f32 %v837_v32, 0.0 }
 0x13a   : > { %v1557_v47 = vmax.f32 %v839_v38, 0.0  ;;  %v1556_v48 = vmax.f32 %v748_v39, 0.0  ;;  %v5934_v39 = vld [vmem:[%s7496_s3] sm:$0xff]  }
 0x13b   : > { %v1679_v54 = vpack.c.bf16 %v1555_v42, %v1539_v41  ;;  %v1558_v55 = vmax.f32 %v841_v43, 0.0 }
 0x13c   : > { %v1681_v57 = vpack.c.bf16 %v1557_v47, %v1541_v44  ;;  %v751_v58 = vpop.f32.mrb[20].mxu0  ;;  %v1680_v59 = vpack.c.bf16 %v1556_v48, %v1540_v46 }
 0x13d   : > { %v752_v60 = vadd.f32 %v751_v58, %v5916_v52  ;;  %v844_v61 = vpop.f32.mrb[20].mxu1  ;;  %v753_v62 = vpop.f32.mrb[21].mxu0  ;;  %v1682_v63 = vpack.c.bf16 %v1558_v55, %v1542_v53 }
 0x13e   : > { %v845_v0 = vadd.f32 %v844_v61, %v5916_v52  ;;  %v754_v1 = vadd.f32 %v753_v62, %v5916_v52  ;;  %v846_v2 = vpop.f32.mrb[21].mxu1  ;;  %v755_v3 = vpop.f32.mrb[22].mxu0  ;;  %1840 = vmatprep.subr.bf16.mxu0 %v1680_v59 }
 0x13f   : > { %v847_v4 = vadd.f32 %v846_v2, %v5916_v52  ;;  %v756_v5 = vadd.f32 %v755_v3, %v5918_v56  ;;  %v848_v6 = vpop.f32.mrb[22].mxu1  ;;  %1933 = vmatprep.subr.bf16.mxu1 %v1682_v63  ;;  %v757_v7 = vpop.f32.mrb[23].mxu0  ;;  %1841 = vmatpush1.bf16.msra.mxu0 %v1679_v54  ;;  %v1571_v11 = vmax.f32 %v752_v60, 0.0 }
 0x140   : > { %v849_v9 = vadd.f32 %v848_v6, %v5918_v56  ;;  %v758_v37 = vadd.f32 %v757_v7, %v5918_v56  ;;  %v850_v10 = vpop.f32.mrb[23].mxu1  ;;  %1934 = vmatpush1.bf16.msra.mxu1 %v1681_v57  ;;  %v1573_v17 = vmax.f32 %v845_v0, 0.0  ;;  %v1572_v18 = vmax.f32 %v754_v1, 0.0 }
 0x141   : > { %v1587_v13 = vmax.f32 %v756_v5, 0.0  ;;  %v851_v15 = vadd.f32 %v850_v10, %v5918_v56  ;;  %v1574_v23 = vmax.f32 %v847_v4, 0.0  ;;  %v5953_v10 = vld [vmem:[%s7496_s3 + $0x8] sm:$0xff]  }
 0x142   : > { %v1589_v21 = vmax.f32 %v849_v9, 0.0  ;;  %v1588_v22 = vmax.f32 %v758_v37, 0.0 }
 0x143   : > { %v1695_v24 = vpack.c.bf16 %v1587_v13, %v1571_v11  ;;  %v1590_v25 = vmax.f32 %v851_v15, 0.0 }
 0x144   : > { %v1697_v26 = vpack.c.bf16 %v1589_v21, %v1573_v17  ;;  %v887_v27 = vpop.f32.mrb[24].mxu0  ;;  %v1696_v28 = vpack.c.bf16 %v1588_v22, %v1572_v18 }
 0x145   : > { %v888_v29 = vadd.f32 %v887_v27, %v5856_v51  ;;  %v980_v30 = vpop.f32.mrb[24].mxu1  ;;  %v889_v31 = vpop.f32.mrb[25].mxu0  ;;  %v1698_v32 = vpack.c.bf16 %v1590_v25, %v1574_v23 }
 0x146   : > { %v981_v33 = vadd.f32 %v980_v30, %v5856_v51  ;;  %v890_v35 = vadd.f32 %v889_v31, %v5856_v51  ;;  %v982_v36 = vpop.f32.mrb[25].mxu1  ;;  %v891_v38 = vpop.f32.mrb[26].mxu0  ;;  %1842 = vmatprep.subr.bf16.mxu0 %v1696_v28 }
 0x147   : > { %v983_v40 = vadd.f32 %v982_v36, %v5856_v51  ;;  %v892_v41 = vadd.f32 %v891_v38, %v5858_v8  ;;  %v984_v42 = vpop.f32.mrb[26].mxu1  ;;  %1935 = vmatprep.subr.bf16.mxu1 %v1698_v32  ;;  %v893_v43 = vpop.f32.mrb[27].mxu0  ;;  %1843 = vmatpush1.bf16.msra.mxu0 %v1695_v24  ;;  %v1415_v48 = vmax.f32 %v888_v29, 0.0 }
 0x148   : > { %v985_v44 = vadd.f32 %v984_v42, %v5858_v8  ;;  %v894_v46 = vadd.f32 %v893_v43, %v5858_v8  ;;  %v986_v47 = vpop.f32.mrb[27].mxu1  ;;  %1936 = vmatpush1.bf16.msra.mxu1 %v1697_v26  ;;  %v1417_v55 = vmax.f32 %v981_v33, 0.0  ;;  %v1416_v57 = vmax.f32 %v890_v35, 0.0 }
 0x149   : > { %v1431_v53 = vmax.f32 %v892_v41, 0.0  ;;  %v987_v54 = vadd.f32 %v986_v47, %v5858_v8  ;;  %v1418_v60 = vmax.f32 %v983_v40, 0.0 }
 0x14a   : > { %v1433_v58 = vmax.f32 %v985_v44, 0.0  ;;  %v1432_v59 = vmax.f32 %v894_v46, 0.0  ;;  %4958 = vmatmul.mubr.msk.bf16.vlgmr.msra.gmra.mrb[96].mxu0 %vm1813_vm3, %v5934_v39 }
 0x14b   : > { %v1619_v61 = vpack.c.bf16 %v1431_v53, %v1415_v48  ;;  %v1434_v62 = vmax.f32 %v987_v54, 0.0  ;;  %4964 = vmatmul.mubr.msk.bf16.vlgmr.msra.gmra.mrb[96].mxu1 %vm1813_vm3, %v5934_v39  ;;  %1874 = vmatprep.mubr.bf16.mxu0 %v5288_v34  ;;  %v5972_v48 = vld [vmem:[%s7496_s3 + $0x10] sm:$0xff]  }
 0x14c   : > { %v1621_v63 = vpack.c.bf16 %v1433_v58, %v1417_v55  ;;  %v897_v0 = vpop.f32.mrb[28].mxu0  ;;  %v1620_v1 = vpack.c.bf16 %v1432_v59, %v1416_v57  ;;  %1967 = vmatprep.mubr.bf16.mxu1 %v5288_v34 }
 0x14d   : > { %v898_v2 = vadd.f32 %v897_v0, %v5860_v20  ;;  %v990_v3 = vpop.f32.mrb[28].mxu1  ;;  %v899_v4 = vpop.f32.mrb[29].mxu0  ;;  %v1622_v5 = vpack.c.bf16 %v1434_v62, %v1418_v60 }
 0x14e   : > { %v991_v6 = vadd.f32 %v990_v3, %v5860_v20  ;;  %v900_v7 = vadd.f32 %v899_v4, %v5860_v20  ;;  %v992_v9 = vpop.f32.mrb[29].mxu1  ;;  %v901_v37 = vpop.f32.mrb[30].mxu0  ;;  %2018 = vmatprep.subr.bf16.mxu0 %v1620_v1 }
 0x14f   : > { %v993_v11 = vadd.f32 %v992_v9, %v5860_v20  ;;  %v902_v13 = vadd.f32 %v901_v37, %v5870_v49  ;;  %v994_v15 = vpop.f32.mrb[30].mxu1  ;;  %2111 = vmatprep.subr.bf16.mxu1 %v1622_v5  ;;  %v903_v17 = vpop.f32.mrb[31].mxu0  ;;  %2019 = vmatpush1.bf16.msra.mxu0 %v1619_v61  ;;  %v1447_v23 = vmax.f32 %v898_v2, 0.0 }
 0x150   : > { %v995_v18 = vadd.f32 %v994_v15, %v5870_v49  ;;  %v904_v21 = vadd.f32 %v903_v17, %v5870_v49  ;;  %v996_v22 = vpop.f32.mrb[31].mxu1  ;;  %2112 = vmatpush1.bf16.msra.mxu1 %v1621_v63  ;;  %v1449_v26 = vmax.f32 %v991_v6, 0.0  ;;  %v1448_v27 = vmax.f32 %v900_v7, 0.0 }
 0x151   : > { %v1463_v24 = vmax.f32 %v902_v13, 0.0  ;;  %v997_v25 = vadd.f32 %v996_v22, %v5870_v49  ;;  %v1450_v30 = vmax.f32 %v993_v11, 0.0 }
 0x152   : > { %v1465_v28 = vmax.f32 %v995_v18, 0.0  ;;  %v1464_v29 = vmax.f32 %v904_v21, 0.0  ;;  %4959 = vmatmul.mubr.msk.bf16.gmra.mrb[100].mxu0 %vm1813_vm3, %v5953_v10 }
 0x153   : > { %v1635_v31 = vpack.c.bf16 %v1463_v24, %v1447_v23  ;;  %v1466_v32 = vmax.f32 %v997_v25, 0.0  ;;  %4965 = vmatmul.mubr.msk.bf16.gmra.mrb[100].mxu1 %vm1813_vm3, %v5953_v10  ;;  %1884 = vmatprep.mubr.bf16.mxu0 %v5288_v34  ;;  %v5991_v24 = vld [vmem:[%s7496_s3 + $0x18] sm:$0xff]  }
 0x154   : > { %v1637_v33 = vpack.c.bf16 %v1465_v28, %v1449_v26  ;;  %v907_v35 = vpop.f32.mrb[32].mxu0  ;;  %v1636_v36 = vpack.c.bf16 %v1464_v29, %v1448_v27  ;;  %1977 = vmatprep.mubr.bf16.mxu1 %v5288_v34 }
 0x155   : > { %v908_v38 = vadd.f32 %v907_v35, %v5880_v12  ;;  %v1000_v40 = vpop.f32.mrb[32].mxu1  ;;  %v909_v41 = vpop.f32.mrb[33].mxu0  ;;  %v1638_v42 = vpack.c.bf16 %v1466_v32, %v1450_v30 }
 0x156   : > { %v1001_v43 = vadd.f32 %v1000_v40, %v5880_v12  ;;  %v910_v44 = vadd.f32 %v909_v41, %v5880_v12  ;;  %v1002_v46 = vpop.f32.mrb[33].mxu1  ;;  %v911_v47 = vpop.f32.mrb[34].mxu0  ;;  %2020 = vmatprep.subr.bf16.mxu0 %v1636_v36 }
 0x157   : > { %v1003_v53 = vadd.f32 %v1002_v46, %v5880_v12  ;;  %v912_v54 = vadd.f32 %v911_v47, %v5882_v16  ;;  %v1004_v55 = vpop.f32.mrb[34].mxu1  ;;  %2113 = vmatprep.subr.bf16.mxu1 %v1638_v42  ;;  %v913_v57 = vpop.f32.mrb[35].mxu0  ;;  %2021 = vmatpush1.bf16.msra.mxu0 %v1635_v31  ;;  %v1479_v61 = vmax.f32 %v908_v38, 0.0 }
 0x158   : > { %v1005_v58 = vadd.f32 %v1004_v55, %v5882_v16  ;;  %v914_v59 = vadd.f32 %v913_v57, %v5882_v16  ;;  %v1006_v60 = vpop.f32.mrb[35].mxu1  ;;  %2114 = vmatpush1.bf16.msra.mxu1 %v1637_v33  ;;  %v1481_v0 = vmax.f32 %v1001_v43, 0.0  ;;  %v1480_v1 = vmax.f32 %v910_v44, 0.0 }
 0x159   : > { %v1495_v62 = vmax.f32 %v912_v54, 0.0  ;;  %v1007_v63 = vadd.f32 %v1006_v60, %v5882_v16  ;;  %v1482_v4 = vmax.f32 %v1003_v53, 0.0 }
 0x15a   : > { %v1497_v2 = vmax.f32 %v1005_v58, 0.0  ;;  %v1496_v3 = vmax.f32 %v914_v59, 0.0  ;;  %4960 = vmatmul.mubr.msk.bf16.gmra.mrb[104].mxu0 %vm1813_vm3, %v5972_v48 }
 0x15b   : > { %v1651_v5 = vpack.c.bf16 %v1495_v62, %v1479_v61  ;;  %v1498_v6 = vmax.f32 %v1007_v63, 0.0  ;;  %4966 = vmatmul.mubr.msk.bf16.gmra.mrb[104].mxu1 %vm1813_vm3, %v5972_v48  ;;  %1894 = vmatprep.mubr.bf16.mxu0 %v5288_v34  ;;  %v6010_v63 = vld [vmem:[%s7496_s3 + $0x20] sm:$0xff]  }
 0x15c   : > { %v1653_v7 = vpack.c.bf16 %v1497_v2, %v1481_v0  ;;  %v917_v9 = vpop.f32.mrb[36].mxu0  ;;  %v1652_v37 = vpack.c.bf16 %v1496_v3, %v1480_v1  ;;  %1987 = vmatprep.mubr.bf16.mxu1 %v5288_v34 }
 0x15d   : > { %v918_v11 = vadd.f32 %v917_v9, %v5892_v45  ;;  %v1010_v13 = vpop.f32.mrb[36].mxu1  ;;  %v919_v15 = vpop.f32.mrb[37].mxu0  ;;  %v1654_v17 = vpack.c.bf16 %v1498_v6, %v1482_v4 }
 0x15e   : > { %v1011_v18 = vadd.f32 %v1010_v13, %v5892_v45  ;;  %v920_v21 = vadd.f32 %v919_v15, %v5892_v45  ;;  %v1012_v22 = vpop.f32.mrb[37].mxu1  ;;  %v921_v23 = vpop.f32.mrb[38].mxu0  ;;  %2022 = vmatprep.subr.bf16.mxu0 %v1652_v37 }
 0x15f   : > { %v1013_v25 = vadd.f32 %v1012_v22, %v5892_v45  ;;  %v922_v26 = vadd.f32 %v921_v23, %v5894_v50  ;;  %v1014_v27 = vpop.f32.mrb[38].mxu1  ;;  %2115 = vmatprep.subr.bf16.mxu1 %v1654_v17  ;;  %v923_v28 = vpop.f32.mrb[39].mxu0  ;;  %2023 = vmatpush1.bf16.msra.mxu0 %v1651_v5  ;;  %v1511_v32 = vmax.f32 %v918_v11, 0.0 }
 0x160   : > { %v1015_v29 = vadd.f32 %v1014_v27, %v5894_v50  ;;  %v924_v30 = vadd.f32 %v923_v28, %v5894_v50  ;;  %v1016_v31 = vpop.f32.mrb[39].mxu1  ;;  %2116 = vmatpush1.bf16.msra.mxu1 %v1653_v7  ;;  %v1513_v36 = vmax.f32 %v1011_v18, 0.0  ;;  %v1512_v38 = vmax.f32 %v920_v21, 0.0 }
 0x161   : > { %v1527_v33 = vmax.f32 %v922_v26, 0.0  ;;  %v1017_v35 = vadd.f32 %v1016_v31, %v5894_v50  ;;  %v1514_v42 = vmax.f32 %v1013_v25, 0.0 }
 0x162   : > { %v1529_v40 = vmax.f32 %v1015_v29, 0.0  ;;  %v1528_v41 = vmax.f32 %v924_v30, 0.0  ;;  %4961 = vmatmul.mubr.msk.bf16.gmra.mrb[108].mxu0 %vm1813_vm3, %v5991_v24 }
 0x163   : > { %v1667_v43 = vpack.c.bf16 %v1527_v33, %v1511_v32  ;;  %v1530_v44 = vmax.f32 %v1017_v35, 0.0  ;;  %4967 = vmatmul.mubr.msk.bf16.gmra.mrb[108].mxu1 %vm1813_vm3, %v5991_v24  ;;  %1904 = vmatprep.mubr.bf16.mxu0 %v5288_v34 }
 0x164   : > { %v1669_v46 = vpack.c.bf16 %v1529_v40, %v1513_v36  ;;  %v927_v47 = vpop.f32.mrb[40].mxu0  ;;  %v1668_v53 = vpack.c.bf16 %v1528_v41, %v1512_v38  ;;  %1997 = vmatprep.mubr.bf16.mxu1 %v5288_v34  ;;  %v6029_v36 = vld [vmem:[%s7496_s3 + $0x28] sm:$0xff]  }
 0x165   : > { %v928_v54 = vadd.f32 %v927_v47, %v5904_v14  ;;  %v1020_v55 = vpop.f32.mrb[40].mxu1  ;;  %v929_v57 = vpop.f32.mrb[41].mxu0  ;;  %v1670_v58 = vpack.c.bf16 %v1530_v44, %v1514_v42 }
 0x166   : > { %v1021_v59 = vadd.f32 %v1020_v55, %v5904_v14  ;;  %v930_v60 = vadd.f32 %v929_v57, %v5904_v14  ;;  %v1022_v61 = vpop.f32.mrb[41].mxu1  ;;  %v931_v62 = vpop.f32.mrb[42].mxu0  ;;  %2024 = vmatprep.subr.bf16.mxu0 %v1668_v53 }
 0x167   : > { %v1023_v0 = vadd.f32 %v1022_v61, %v5904_v14  ;;  %v932_v1 = vadd.f32 %v931_v62, %v5906_v19  ;;  %v1024_v2 = vpop.f32.mrb[42].mxu1  ;;  %2117 = vmatprep.subr.bf16.mxu1 %v1670_v58  ;;  %v933_v3 = vpop.f32.mrb[43].mxu0  ;;  %2025 = vmatpush1.bf16.msra.mxu0 %v1667_v43  ;;  %v1543_v7 = vmax.f32 %v928_v54, 0.0 }
 0x168   : > { %v1025_v4 = vadd.f32 %v1024_v2, %v5906_v19  ;;  %v934_v5 = vadd.f32 %v933_v3, %v5906_v19  ;;  %v1026_v6 = vpop.f32.mrb[43].mxu1  ;;  %2118 = vmatpush1.bf16.msra.mxu1 %v1669_v46  ;;  %v1545_v11 = vmax.f32 %v1021_v59, 0.0  ;;  %v1544_v13 = vmax.f32 %v930_v60, 0.0 }
 0x169   : > { %v1559_v9 = vmax.f32 %v932_v1, 0.0  ;;  %v1027_v37 = vadd.f32 %v1026_v6, %v5906_v19  ;;  %v1546_v18 = vmax.f32 %v1023_v0, 0.0 }
 0x16a   : > { %v1561_v15 = vmax.f32 %v1025_v4, 0.0  ;;  %v1560_v17 = vmax.f32 %v934_v5, 0.0  ;;  %4962 = vmatmul.mubr.msk.bf16.gmra.mrb[112].mxu0 %vm1813_vm3, %v6010_v63 }
 0x16b   : > { %v1683_v21 = vpack.c.bf16 %v1559_v9, %v1543_v7  ;;  %v1562_v22 = vmax.f32 %v1027_v37, 0.0  ;;  %4968 = vmatmul.mubr.msk.bf16.gmra.mrb[112].mxu1 %vm1813_vm3, %v6010_v63  ;;  %1914 = vmatprep.mubr.bf16.mxu0 %v5288_v34 }
 0x16c   : > { %v1685_v23 = vpack.c.bf16 %v1561_v15, %v1545_v11  ;;  %v937_v25 = vpop.f32.mrb[44].mxu0  ;;  %v1684_v26 = vpack.c.bf16 %v1560_v17, %v1544_v13  ;;  %2007 = vmatprep.mubr.bf16.mxu1 %v5288_v34 }
 0x16d   : > { %v938_v27 = vadd.f32 %v937_v25, %v5916_v52  ;;  %v1030_v28 = vpop.f32.mrb[44].mxu1  ;;  %v939_v29 = vpop.f32.mrb[45].mxu0  ;;  %v1686_v30 = vpack.c.bf16 %v1562_v22, %v1546_v18 }
 0x16e   : > { %v1031_v31 = vadd.f32 %v1030_v28, %v5916_v52  ;;  %v940_v32 = vadd.f32 %v939_v29, %v5916_v52  ;;  %v1032_v33 = vpop.f32.mrb[45].mxu1  ;;  %v941_v35 = vpop.f32.mrb[46].mxu0  ;;  %2026 = vmatprep.subr.bf16.mxu0 %v1684_v26 }
 0x16f   : > { %v1033_v38 = vadd.f32 %v1032_v33, %v5916_v52  ;;  %v942_v40 = vadd.f32 %v941_v35, %v5918_v56  ;;  %v1034_v41 = vpop.f32.mrb[46].mxu1  ;;  %2119 = vmatprep.subr.bf16.mxu1 %v1686_v30  ;;  %v943_v42 = vpop.f32.mrb[47].mxu0  ;;  %2027 = vmatpush1.bf16.msra.mxu0 %v1683_v21  ;;  %v1575_v47 = vmax.f32 %v938_v27, 0.0 }
 0x170   : > { %v1035_v43 = vadd.f32 %v1034_v41, %v5918_v56  ;;  %v944_v44 = vadd.f32 %v943_v42, %v5918_v56  ;;  %v1036_v46 = vpop.f32.mrb[47].mxu1  ;;  %2120 = vmatpush1.bf16.msra.mxu1 %v1685_v23  ;;  %v1577_v55 = vmax.f32 %v1031_v31, 0.0  ;;  %v1576_v57 = vmax.f32 %v940_v32, 0.0 }
 0x171   : > { %v1591_v53 = vmax.f32 %v942_v40, 0.0  ;;  %v1037_v54 = vadd.f32 %v1036_v46, %v5918_v56  ;;  %v1578_v60 = vmax.f32 %v1033_v38, 0.0 }
 0x172   : > { %v1593_v58 = vmax.f32 %v1035_v43, 0.0  ;;  %v1592_v59 = vmax.f32 %v944_v44, 0.0  ;;  %4963 = vmatmul.mubr.msk.bf16.gmra.mrb[116].mxu0 %vm1813_vm3, %v6029_v36 }
 0x173   : > { %v1699_v61 = vpack.c.bf16 %v1591_v53, %v1575_v47  ;;  %v1594_v62 = vmax.f32 %v1037_v54, 0.0  ;;  %4969 = vmatmul.mubr.msk.bf16.gmra.mrb[116].mxu1 %vm1813_vm3, %v6029_v36  ;;  %2050 = vmatprep.mubr.bf16.mxu0 %v5288_v34 }
 0x174   : > { %v1701_v0 = vpack.c.bf16 %v1593_v58, %v1577_v55  ;;  %v1073_v1 = vpop.f32.mrb[48].mxu0  ;;  %v1700_v2 = vpack.c.bf16 %v1592_v59, %v1576_v57  ;;  %2143 = vmatprep.mubr.bf16.mxu1 %v5288_v34 }
 0x175   : > { %v1074_v3 = vadd.f32 %v1073_v1, %v5856_v51  ;;  %v1166_v4 = vpop.f32.mrb[48].mxu1  ;;  %v1075_v5 = vpop.f32.mrb[49].mxu0  ;;  %v1702_v6 = vpack.c.bf16 %v1594_v62, %v1578_v60 }
 0x176   : > { %v1167_v7 = vadd.f32 %v1166_v4, %v5856_v51  ;;  %v1076_v9 = vadd.f32 %v1075_v5, %v5856_v51  ;;  %v1168_v37 = vpop.f32.mrb[49].mxu1  ;;  %v1077_v11 = vpop.f32.mrb[50].mxu0  ;;  %2028 = vmatprep.subr.bf16.mxu0 %v1700_v2 }
 0x177   : > { %v1169_v13 = vadd.f32 %v1168_v37, %v5856_v51  ;;  %v1078_v15 = vadd.f32 %v1077_v11, %v5858_v8  ;;  %v1170_v17 = vpop.f32.mrb[50].mxu1  ;;  %2121 = vmatprep.subr.bf16.mxu1 %v1702_v6  ;;  %v1079_v18 = vpop.f32.mrb[51].mxu0  ;;  %2029 = vmatpush1.bf16.msra.mxu0 %v1699_v61  ;;  %v1419_v25 = vmax.f32 %v1074_v3, 0.0 }
 0x178   : > { %v1171_v21 = vadd.f32 %v1170_v17, %v5858_v8  ;;  %v1080_v22 = vadd.f32 %v1079_v18, %v5858_v8  ;;  %v1172_v23 = vpop.f32.mrb[51].mxu1  ;;  %2122 = vmatpush1.bf16.msra.mxu1 %v1701_v0  ;;  %v1421_v28 = vmax.f32 %v1167_v7, 0.0  ;;  %v1420_v29 = vmax.f32 %v1076_v9, 0.0 }
 0x179   : > { %v1435_v26 = vmax.f32 %v1078_v15, 0.0  ;;  %v1173_v27 = vadd.f32 %v1172_v23, %v5858_v8  ;;  %v1422_v32 = vmax.f32 %v1169_v13, 0.0 }
 0x17a   : > { %v1437_v30 = vmax.f32 %v1171_v21, 0.0  ;;  %v1436_v31 = vmax.f32 %v1080_v22, 0.0  ;;  %4970 = vmatmul.mubr.msk.bf16.vlgmr.msra.gmra.mrb[120].mxu0 %vm1813_vm3, %v5934_v39 }
 0x17b   : > { %v1623_v33 = vpack.c.bf16 %v1435_v26, %v1419_v25  ;;  %v1438_v35 = vmax.f32 %v1173_v27, 0.0  ;;  %4976 = vmatmul.mubr.msk.bf16.vlgmr.msra.gmra.mrb[120].mxu1 %vm1813_vm3, %v5934_v39  ;;  %2060 = vmatprep.mubr.bf16.mxu0 %v5288_v34 }
 0x17c   : > { %v1625_v38 = vpack.c.bf16 %v1437_v30, %v1421_v28  ;;  %v1083_v40 = vpop.f32.mrb[52].mxu0  ;;  %v1624_v41 = vpack.c.bf16 %v1436_v31, %v1420_v29  ;;  %2153 = vmatprep.mubr.bf16.mxu1 %v5288_v34 }
 0x17d   : > { %v1084_v42 = vadd.f32 %v1083_v40, %v5860_v20  ;;  %v1176_v43 = vpop.f32.mrb[52].mxu1  ;;  %v1085_v44 = vpop.f32.mrb[53].mxu0  ;;  %v1626_v46 = vpack.c.bf16 %v1438_v35, %v1422_v32 }
 0x17e   : > { %v1177_v47 = vadd.f32 %v1176_v43, %v5860_v20  ;;  %v1086_v53 = vadd.f32 %v1085_v44, %v5860_v20  ;;  %v1178_v54 = vpop.f32.mrb[53].mxu1  ;;  %v1087_v55 = vpop.f32.mrb[54].mxu0  ;;  %2204 = vmatprep.subr.bf16.mxu0 %v1624_v41 }
 0x17f   : > { %v1179_v57 = vadd.f32 %v1178_v54, %v5860_v20  ;;  %v1088_v58 = vadd.f32 %v1087_v55, %v5870_v49  ;;  %v1180_v59 = vpop.f32.mrb[54].mxu1  ;;  %2297 = vmatprep.subr.bf16.mxu1 %v1626_v46  ;;  %v1089_v60 = vpop.f32.mrb[55].mxu0  ;;  %2205 = vmatpush1.bf16.msra.mxu0 %v1623_v33  ;;  %v1451_v1 = vmax.f32 %v1084_v42, 0.0 }
 0x180   : > { %v1181_v61 = vadd.f32 %v1180_v59, %v5870_v49  ;;  %v1090_v62 = vadd.f32 %v1089_v60, %v5870_v49  ;;  %v1182_v0 = vpop.f32.mrb[55].mxu1  ;;  %2298 = vmatpush1.bf16.msra.mxu1 %v1625_v38  ;;  %v1453_v4 = vmax.f32 %v1177_v47, 0.0  ;;  %v1452_v5 = vmax.f32 %v1086_v53, 0.0 }
 0x181   : > { %v1467_v2 = vmax.f32 %v1088_v58, 0.0  ;;  %v1183_v3 = vadd.f32 %v1182_v0, %v5870_v49  ;;  %v1454_v9 = vmax.f32 %v1179_v57, 0.0 }
 0x182   : > { %v1469_v6 = vmax.f32 %v1181_v61, 0.0  ;;  %v1468_v7 = vmax.f32 %v1090_v62, 0.0  ;;  %4971 = vmatmul.mubr.msk.bf16.gmra.mrb[124].mxu0 %vm1813_vm3, %v5953_v10 }
 0x183   : > { %v1639_v37 = vpack.c.bf16 %v1467_v2, %v1451_v1  ;;  %v1470_v11 = vmax.f32 %v1183_v3, 0.0  ;;  %4977 = vmatmul.mubr.msk.bf16.gmra.mrb[124].mxu1 %vm1813_vm3, %v5953_v10  ;;  %2070 = vmatprep.mubr.bf16.mxu0 %v5288_v34 }
 0x184   : > { %v1641_v13 = vpack.c.bf16 %v1469_v6, %v1453_v4  ;;  %v1093_v15 = vpop.f32.mrb[56].mxu0  ;;  %v1640_v17 = vpack.c.bf16 %v1468_v7, %v1452_v5  ;;  %2163 = vmatprep.mubr.bf16.mxu1 %v5288_v34 }
 0x185   : > { %v1094_v18 = vadd.f32 %v1093_v15, %v5880_v12  ;;  %v1186_v21 = vpop.f32.mrb[56].mxu1  ;;  %v1095_v22 = vpop.f32.mrb[57].mxu0  ;;  %v1642_v23 = vpack.c.bf16 %v1470_v11, %v1454_v9 }
 0x186   : > { %v1187_v25 = vadd.f32 %v1186_v21, %v5880_v12  ;;  %v1096_v26 = vadd.f32 %v1095_v22, %v5880_v12  ;;  %v1188_v27 = vpop.f32.mrb[57].mxu1  ;;  %v1097_v28 = vpop.f32.mrb[58].mxu0  ;;  %2206 = vmatprep.subr.bf16.mxu0 %v1640_v17 }
 0x187   : > { %v1189_v29 = vadd.f32 %v1188_v27, %v5880_v12  ;;  %v1098_v30 = vadd.f32 %v1097_v28, %v5882_v16  ;;  %v1190_v31 = vpop.f32.mrb[58].mxu1  ;;  %2299 = vmatprep.subr.bf16.mxu1 %v1642_v23  ;;  %v1099_v32 = vpop.f32.mrb[59].mxu0  ;;  %2207 = vmatpush1.bf16.msra.mxu0 %v1639_v37  ;;  %v1483_v40 = vmax.f32 %v1094_v18, 0.0 }
 0x188   : > { %v1191_v33 = vadd.f32 %v1190_v31, %v5882_v16  ;;  %v1100_v35 = vadd.f32 %v1099_v32, %v5882_v16  ;;  %v1192_v38 = vpop.f32.mrb[59].mxu1  ;;  %2300 = vmatpush1.bf16.msra.mxu1 %v1641_v13  ;;  %v1485_v43 = vmax.f32 %v1187_v25, 0.0  ;;  %v1484_v44 = vmax.f32 %v1096_v26, 0.0 }
 0x189   : > { %v1499_v41 = vmax.f32 %v1098_v30, 0.0  ;;  %v1193_v42 = vadd.f32 %v1192_v38, %v5882_v16  ;;  %v1486_v53 = vmax.f32 %v1189_v29, 0.0 }
 0x18a   : > { %v1501_v46 = vmax.f32 %v1191_v33, 0.0  ;;  %v1500_v47 = vmax.f32 %v1100_v35, 0.0  ;;  %4972 = vmatmul.mubr.msk.bf16.gmra.mrb[128].mxu0 %vm1813_vm3, %v5972_v48 }
 0x18b   : > { %v1655_v54 = vpack.c.bf16 %v1499_v41, %v1483_v40  ;;  %v1502_v55 = vmax.f32 %v1193_v42, 0.0  ;;  %4978 = vmatmul.mubr.msk.bf16.gmra.mrb[128].mxu1 %vm1813_vm3, %v5972_v48  ;;  %2080 = vmatprep.mubr.bf16.mxu0 %v5288_v34 }
 0x18c   : > { %v1657_v57 = vpack.c.bf16 %v1501_v46, %v1485_v43  ;;  %v1103_v58 = vpop.f32.mrb[60].mxu0  ;;  %v1656_v59 = vpack.c.bf16 %v1500_v47, %v1484_v44  ;;  %2173 = vmatprep.mubr.bf16.mxu1 %v5288_v34 }
 0x18d   : > { %v1104_v60 = vadd.f32 %v1103_v58, %v5892_v45  ;;  %v1196_v61 = vpop.f32.mrb[60].mxu1  ;;  %v1105_v62 = vpop.f32.mrb[61].mxu0  ;;  %v1658_v0 = vpack.c.bf16 %v1502_v55, %v1486_v53 }
 0x18e   : > { %v1197_v1 = vadd.f32 %v1196_v61, %v5892_v45  ;;  %v1106_v2 = vadd.f32 %v1105_v62, %v5892_v45  ;;  %v1198_v3 = vpop.f32.mrb[61].mxu1  ;;  %v1107_v4 = vpop.f32.mrb[62].mxu0  ;;  %2208 = vmatprep.subr.bf16.mxu0 %v1656_v59 }
 0x18f   : > { %v1199_v5 = vadd.f32 %v1198_v3, %v5892_v45  ;;  %v1108_v6 = vadd.f32 %v1107_v4, %v5894_v50  ;;  %v1200_v7 = vpop.f32.mrb[62].mxu1  ;;  %2301 = vmatprep.subr.bf16.mxu1 %v1658_v0  ;;  %v1109_v9 = vpop.f32.mrb[63].mxu0  ;;  %2209 = vmatpush1.bf16.msra.mxu0 %v1655_v54  ;;  %v1515_v15 = vmax.f32 %v1104_v60, 0.0 }
 0x190   : > { %v1201_v37 = vadd.f32 %v1200_v7, %v5894_v50  ;;  %v1110_v11 = vadd.f32 %v1109_v9, %v5894_v50  ;;  %v1202_v13 = vpop.f32.mrb[63].mxu1  ;;  %2302 = vmatpush1.bf16.msra.mxu1 %v1657_v57  ;;  %v1517_v21 = vmax.f32 %v1197_v1, 0.0  ;;  %v1516_v22 = vmax.f32 %v1106_v2, 0.0 }
 0x191   : > { %v1531_v17 = vmax.f32 %v1108_v6, 0.0  ;;  %v1203_v18 = vadd.f32 %v1202_v13, %v5894_v50  ;;  %v1518_v26 = vmax.f32 %v1199_v5, 0.0 }
 0x192   : > { %v1533_v23 = vmax.f32 %v1201_v37, 0.0  ;;  %v1532_v25 = vmax.f32 %v1110_v11, 0.0  ;;  %4973 = vmatmul.mubr.msk.bf16.gmra.mrb[132].mxu0 %vm1813_vm3, %v5991_v24 }
 0x193   : > { %v1671_v27 = vpack.c.bf16 %v1531_v17, %v1515_v15  ;;  %v1534_v28 = vmax.f32 %v1203_v18, 0.0  ;;  %4979 = vmatmul.mubr.msk.bf16.gmra.mrb[132].mxu1 %vm1813_vm3, %v5991_v24  ;;  %2090 = vmatprep.mubr.bf16.mxu0 %v5288_v34 }
 0x194   : > { %v1673_v29 = vpack.c.bf16 %v1533_v23, %v1517_v21  ;;  %v1113_v30 = vpop.f32.mrb[64].mxu0  ;;  %v1672_v31 = vpack.c.bf16 %v1532_v25, %v1516_v22  ;;  %2183 = vmatprep.mubr.bf16.mxu1 %v5288_v34 }
 0x195   : > { %v1114_v32 = vadd.f32 %v1113_v30, %v5904_v14  ;;  %v1206_v33 = vpop.f32.mrb[64].mxu1  ;;  %v1115_v35 = vpop.f32.mrb[65].mxu0  ;;  %v1674_v38 = vpack.c.bf16 %v1534_v28, %v1518_v26 }
 0x196   : > { %v1207_v40 = vadd.f32 %v1206_v33, %v5904_v14  ;;  %v1116_v41 = vadd.f32 %v1115_v35, %v5904_v14  ;;  %v1208_v42 = vpop.f32.mrb[65].mxu1  ;;  %v1117_v43 = vpop.f32.mrb[66].mxu0  ;;  %2210 = vmatprep.subr.bf16.mxu0 %v1672_v31 }
 0x197   : > { %v1209_v44 = vadd.f32 %v1208_v42, %v5904_v14  ;;  %v1118_v46 = vadd.f32 %v1117_v43, %v5906_v19  ;;  %v1210_v47 = vpop.f32.mrb[66].mxu1  ;;  %2303 = vmatprep.subr.bf16.mxu1 %v1674_v38  ;;  %v1119_v53 = vpop.f32.mrb[67].mxu0  ;;  %2211 = vmatpush1.bf16.msra.mxu0 %v1671_v27  ;;  %v1547_v58 = vmax.f32 %v1114_v32, 0.0 }
 0x198   : > { %v1211_v54 = vadd.f32 %v1210_v47, %v5906_v19  ;;  %v1120_v55 = vadd.f32 %v1119_v53, %v5906_v19  ;;  %v1212_v57 = vpop.f32.mrb[67].mxu1  ;;  %2304 = vmatpush1.bf16.msra.mxu1 %v1673_v29  ;;  %v1549_v61 = vmax.f32 %v1207_v40, 0.0  ;;  %v1548_v62 = vmax.f32 %v1116_v41, 0.0 }
 0x199   : > { %v1563_v59 = vmax.f32 %v1118_v46, 0.0  ;;  %v1213_v60 = vadd.f32 %v1212_v57, %v5906_v19  ;;  %v1550_v2 = vmax.f32 %v1209_v44, 0.0 }
 0x19a   : > { %v1565_v0 = vmax.f32 %v1211_v54, 0.0  ;;  %v1564_v1 = vmax.f32 %v1120_v55, 0.0  ;;  %4974 = vmatmul.mubr.msk.bf16.gmra.mrb[136].mxu0 %vm1813_vm3, %v6010_v63 }
 0x19b   : > { %v1687_v3 = vpack.c.bf16 %v1563_v59, %v1547_v58  ;;  %v1566_v4 = vmax.f32 %v1213_v60, 0.0  ;;  %4980 = vmatmul.mubr.msk.bf16.gmra.mrb[136].mxu1 %vm1813_vm3, %v6010_v63  ;;  %2100 = vmatprep.mubr.bf16.mxu0 %v5288_v34 }
 0x19c   : > { %v1689_v5 = vpack.c.bf16 %v1565_v0, %v1549_v61  ;;  %v1688_v6 = vpack.c.bf16 %v1564_v1, %v1548_v62  ;;  %v1123_v7 = vpop.f32.mrb[68].mxu0  ;;  %2193 = vmatprep.mubr.bf16.mxu1 %v5288_v34 }
 0x19d   : > { %v1690_v9 = vpack.c.bf16 %v1566_v4, %v1550_v2  ;;  %v1124_v37 = vadd.f32 %v1123_v7, %v5916_v52  ;;  %v1216_v11 = vpop.f32.mrb[68].mxu1  ;;  %v1125_v13 = vpop.f32.mrb[69].mxu0 }
 0x19e   : > { %v1217_v15 = vadd.f32 %v1216_v11, %v5916_v52  ;;  %v1126_v17 = vadd.f32 %v1125_v13, %v5916_v52  ;;  %v1218_v18 = vpop.f32.mrb[69].mxu1  ;;  %v1127_v21 = vpop.f32.mrb[70].mxu0  ;;  %2212 = vmatprep.subr.bf16.mxu0 %v1688_v6 }
 0x19f   : > { %v1219_v22 = vadd.f32 %v1218_v18, %v5916_v52  ;;  %v1128_v23 = vadd.f32 %v1127_v21, %v5918_v56  ;;  %v1220_v25 = vpop.f32.mrb[70].mxu1  ;;  %2305 = vmatprep.subr.bf16.mxu1 %v1690_v9  ;;  %v1129_v26 = vpop.f32.mrb[71].mxu0  ;;  %2213 = vmatpush1.bf16.msra.mxu0 %v1687_v3  ;;  %v1579_v30 = vmax.f32 %v1124_v37, 0.0 }
 0x1a0   : > { %v1221_v27 = vadd.f32 %v1220_v25, %v5918_v56  ;;  %v1130_v28 = vadd.f32 %v1129_v26, %v5918_v56  ;;  %v1222_v29 = vpop.f32.mrb[71].mxu1  ;;  %2306 = vmatpush1.bf16.msra.mxu1 %v1689_v5  ;;  %v1581_v33 = vmax.f32 %v1217_v15, 0.0  ;;  %v1580_v35 = vmax.f32 %v1126_v17, 0.0 }
 0x1a1   : > { %v1595_v31 = vmax.f32 %v1128_v23, 0.0  ;;  %v1223_v32 = vadd.f32 %v1222_v29, %v5918_v56  ;;  %v1582_v41 = vmax.f32 %v1219_v22, 0.0 }
 0x1a2   : > { %v1597_v38 = vmax.f32 %v1221_v27, 0.0  ;;  %v1596_v40 = vmax.f32 %v1130_v28, 0.0  ;;  %4975 = vmatmul.mubr.msk.bf16.gmra.mrb[140].mxu0 %vm1813_vm3, %v6029_v36 }
 0x1a3   : > { %v1703_v42 = vpack.c.bf16 %v1595_v31, %v1579_v30  ;;  %v1598_v43 = vmax.f32 %v1223_v32, 0.0  ;;  %4981 = vmatmul.mubr.msk.bf16.gmra.mrb[140].mxu1 %vm1813_vm3, %v6029_v36  ;;  %2236 = vmatprep.mubr.bf16.mxu0 %v5288_v34 }
 0x1a4   : > { %v1705_v44 = vpack.c.bf16 %v1597_v38, %v1581_v33  ;;  %v1704_v46 = vpack.c.bf16 %v1596_v40, %v1580_v35  ;;  %v1259_v47 = vpop.f32.mrb[72].mxu0  ;;  %2329 = vmatprep.mubr.bf16.mxu1 %v5288_v34 }
 0x1a5   : > { %v1706_v53 = vpack.c.bf16 %v1598_v43, %v1582_v41  ;;  %v1260_v54 = vadd.f32 %v1259_v47, %v5856_v51  ;;  %v1352_v55 = vpop.f32.mrb[72].mxu1  ;;  %v1261_v57 = vpop.f32.mrb[73].mxu0 }
 0x1a6   : > { %v1353_v58 = vadd.f32 %v1352_v55, %v5856_v51  ;;  %v1262_v59 = vadd.f32 %v1261_v57, %v5856_v51  ;;  %v1354_v60 = vpop.f32.mrb[73].mxu1  ;;  %v1263_v61 = vpop.f32.mrb[74].mxu0  ;;  %2214 = vmatprep.subr.bf16.mxu0 %v1704_v46 }
 0x1a7   : > { %v1355_v62 = vadd.f32 %v1354_v60, %v5856_v51  ;;  %v1264_v0 = vadd.f32 %v1263_v61, %v5858_v8  ;;  %v1356_v1 = vpop.f32.mrb[74].mxu1  ;;  %2307 = vmatprep.subr.bf16.mxu1 %v1706_v53  ;;  %v1265_v2 = vpop.f32.mrb[75].mxu0  ;;  %2215 = vmatpush1.bf16.msra.mxu0 %v1703_v42  ;;  %v1423_v6 = vmax.f32 %v1260_v54, 0.0 }
 0x1a8   : > { %v1357_v3 = vadd.f32 %v1356_v1, %v5858_v8  ;;  %v1266_v4 = vadd.f32 %v1265_v2, %v5858_v8  ;;  %v1358_v5 = vpop.f32.mrb[75].mxu1  ;;  %2308 = vmatpush1.bf16.msra.mxu1 %v1705_v44  ;;  %v1425_v37 = vmax.f32 %v1353_v58, 0.0  ;;  %v1424_v11 = vmax.f32 %v1262_v59, 0.0 }
 0x1a9   : > { %v1439_v7 = vmax.f32 %v1264_v0, 0.0  ;;  %v1359_v9 = vadd.f32 %v1358_v5, %v5858_v8  ;;  %v1426_v15 = vmax.f32 %v1355_v62, 0.0 }
 0x1aa   : > { %v1441_v13 = vmax.f32 %v1357_v3, 0.0  ;;  %v1440_v51 = vmax.f32 %v1266_v4, 0.0  ;;  %4982 = vmatmul.mubr.msk.bf16.vlgmr.msra.gmra.mrb[144].mxu0 %vm1813_vm3, %v5934_v39 }
 0x1ab   : > { %v1627_v17 = vpack.c.bf16 %v1439_v7, %v1423_v6  ;;  %v1442_v18 = vmax.f32 %v1359_v9, 0.0  ;;  %4988 = vmatmul.mubr.msk.bf16.vlgmr.msra.gmra.mrb[144].mxu1 %vm1813_vm3, %v5934_v39  ;;  %2246 = vmatprep.mubr.bf16.mxu0 %v5288_v34 }
 0x1ac   : > { %v1629_v21 = vpack.c.bf16 %v1441_v13, %v1425_v37  ;;  %v1628_v22 = vpack.c.bf16 %v1440_v51, %v1424_v11  ;;  %v1269_v23 = vpop.f32.mrb[76].mxu0  ;;  %2339 = vmatprep.mubr.bf16.mxu1 %v5288_v34 }
 0x1ad   : > { %v1630_v8 = vpack.c.bf16 %v1442_v18, %v1426_v15  ;;  %v1270_v25 = vadd.f32 %v1269_v23, %v5860_v20  ;;  %v1362_v26 = vpop.f32.mrb[76].mxu1  ;;  %v1271_v27 = vpop.f32.mrb[77].mxu0 }
 0x1ae   : > { %v1363_v28 = vadd.f32 %v1362_v26, %v5860_v20  ;;  %v1272_v29 = vadd.f32 %v1271_v27, %v5860_v20  ;;  %v1364_v30 = vpop.f32.mrb[77].mxu1  ;;  %v1273_v31 = vpop.f32.mrb[78].mxu0  ;;  %2390 = vmatprep.subr.bf16.mxu0 %v1628_v22 }
 0x1af   : > { %v1365_v39 = vadd.f32 %v1364_v30, %v5860_v20  ;;  %v1274_v32 = vadd.f32 %v1273_v31, %v5870_v49  ;;  %v1366_v33 = vpop.f32.mrb[78].mxu1  ;;  %2483 = vmatprep.subr.bf16.mxu1 %v1630_v8  ;;  %v1275_v35 = vpop.f32.mrb[79].mxu0  ;;  %2391 = vmatpush1.bf16.msra.mxu0 %v1627_v17  ;;  %v1455_v42 = vmax.f32 %v1270_v25, 0.0 }
 0x1b0   : > { %v1367_v38 = vadd.f32 %v1366_v33, %v5870_v49  ;;  %v1276_v40 = vadd.f32 %v1275_v35, %v5870_v49  ;;  %v1368_v41 = vpop.f32.mrb[79].mxu1  ;;  %2484 = vmatpush1.bf16.msra.mxu1 %v1629_v21  ;;  %v1457_v46 = vmax.f32 %v1363_v28, 0.0  ;;  %v1456_v47 = vmax.f32 %v1272_v29, 0.0 }
 0x1b1   : > { %v1471_v43 = vmax.f32 %v1274_v32, 0.0  ;;  %v1369_v44 = vadd.f32 %v1368_v41, %v5870_v49  ;;  %v1458_v54 = vmax.f32 %v1365_v39, 0.0 }
 0x1b2   : > { %v1473_v53 = vmax.f32 %v1367_v38, 0.0  ;;  %v1472_v20 = vmax.f32 %v1276_v40, 0.0  ;;  %4983 = vmatmul.mubr.msk.bf16.gmra.mrb[148].mxu0 %vm1813_vm3, %v5953_v10 }
 0x1b3   : > { %v1643_v55 = vpack.c.bf16 %v1471_v43, %v1455_v42  ;;  %v1474_v57 = vmax.f32 %v1369_v44, 0.0  ;;  %4989 = vmatmul.mubr.msk.bf16.gmra.mrb[148].mxu1 %vm1813_vm3, %v5953_v10  ;;  %2256 = vmatprep.mubr.bf16.mxu0 %v5288_v34 }
 0x1b4   : > { %v1645_v58 = vpack.c.bf16 %v1473_v53, %v1457_v46  ;;  %v1644_v59 = vpack.c.bf16 %v1472_v20, %v1456_v47  ;;  %v1279_v60 = vpop.f32.mrb[80].mxu0  ;;  %2349 = vmatprep.mubr.bf16.mxu1 %v5288_v34 }
 0x1b5   : > { %v1646_v49 = vpack.c.bf16 %v1474_v57, %v1458_v54  ;;  %v1280_v61 = vadd.f32 %v1279_v60, %v5880_v12  ;;  %v1372_v62 = vpop.f32.mrb[80].mxu1  ;;  %v1281_v0 = vpop.f32.mrb[81].mxu0 }
 0x1b6   : > { %v1373_v1 = vadd.f32 %v1372_v62, %v5880_v12  ;;  %v1282_v2 = vadd.f32 %v1281_v0, %v5880_v12  ;;  %v1374_v3 = vpop.f32.mrb[81].mxu1  ;;  %v1283_v4 = vpop.f32.mrb[82].mxu0  ;;  %2392 = vmatprep.subr.bf16.mxu0 %v1644_v59 }
 0x1b7   : > { %v1375_v10 = vadd.f32 %v1374_v3, %v5880_v12  ;;  %v1284_v5 = vadd.f32 %v1283_v4, %v5882_v16  ;;  %v1376_v6 = vpop.f32.mrb[82].mxu1  ;;  %2485 = vmatprep.subr.bf16.mxu1 %v1646_v49  ;;  %v1285_v7 = vpop.f32.mrb[83].mxu0  ;;  %2393 = vmatpush1.bf16.msra.mxu0 %v1643_v55  ;;  %v1487_v13 = vmax.f32 %v1280_v61, 0.0 }
 0x1b8   : > { %v1377_v9 = vadd.f32 %v1376_v6, %v5882_v16  ;;  %v1286_v37 = vadd.f32 %v1285_v7, %v5882_v16  ;;  %v1378_v11 = vpop.f32.mrb[83].mxu1  ;;  %2486 = vmatpush1.bf16.msra.mxu1 %v1645_v58  ;;  %v1489_v17 = vmax.f32 %v1373_v1, 0.0  ;;  %v1488_v18 = vmax.f32 %v1282_v2, 0.0 }
 0x1b9   : > { %v1503_v51 = vmax.f32 %v1284_v5, 0.0  ;;  %v1379_v15 = vadd.f32 %v1378_v11, %v5882_v16  ;;  %v1490_v22 = vmax.f32 %v1375_v10, 0.0 }
 0x1ba   : > { %v1505_v21 = vmax.f32 %v1377_v9, 0.0  ;;  %v1504_v12 = vmax.f32 %v1286_v37, 0.0  ;;  %4984 = vmatmul.mubr.msk.bf16.gmra.mrb[152].mxu0 %vm1813_vm3, %v5972_v48 }
 0x1bb   : > { %v1659_v23 = vpack.c.bf16 %v1503_v51, %v1487_v13  ;;  %v1506_v8 = vmax.f32 %v1379_v15, 0.0  ;;  %4990 = vmatmul.mubr.msk.bf16.gmra.mrb[152].mxu1 %vm1813_vm3, %v5972_v48  ;;  %2266 = vmatprep.mubr.bf16.mxu0 %v5288_v34 }
 0x1bc   : > { %v1661_v25 = vpack.c.bf16 %v1505_v21, %v1489_v17  ;;  %v1660_v26 = vpack.c.bf16 %v1504_v12, %v1488_v18  ;;  %v1289_v27 = vpop.f32.mrb[84].mxu0  ;;  %2359 = vmatprep.mubr.bf16.mxu1 %v5288_v34 }
 0x1bd   : > { %v1662_v16 = vpack.c.bf16 %v1506_v8, %v1490_v22  ;;  %v1290_v28 = vadd.f32 %v1289_v27, %v5892_v45  ;;  %v1382_v29 = vpop.f32.mrb[84].mxu1  ;;  %v1291_v30 = vpop.f32.mrb[85].mxu0 }
 0x1be   : > { %v1383_v31 = vadd.f32 %v1382_v29, %v5892_v45  ;;  %v1292_v39 = vadd.f32 %v1291_v30, %v5892_v45  ;;  %v1384_v32 = vpop.f32.mrb[85].mxu1  ;;  %v1293_v33 = vpop.f32.mrb[86].mxu0  ;;  %2394 = vmatprep.subr.bf16.mxu0 %v1660_v26 }
 0x1bf   : > { %v1385_v48 = vadd.f32 %v1384_v32, %v5892_v45  ;;  %v1294_v35 = vadd.f32 %v1293_v33, %v5894_v50  ;;  %v1386_v38 = vpop.f32.mrb[86].mxu1  ;;  %2487 = vmatprep.subr.bf16.mxu1 %v1662_v16  ;;  %v1295_v40 = vpop.f32.mrb[87].mxu0  ;;  %2395 = vmatpush1.bf16.msra.mxu0 %v1659_v23  ;;  %v1519_v44 = vmax.f32 %v1290_v28, 0.0 }
 0x1c0   : > { %v1387_v41 = vadd.f32 %v1386_v38, %v5894_v50  ;;  %v1296_v42 = vadd.f32 %v1295_v40, %v5894_v50  ;;  %v1388_v43 = vpop.f32.mrb[87].mxu1  ;;  %2488 = vmatpush1.bf16.msra.mxu1 %v1661_v25  ;;  %v1521_v53 = vmax.f32 %v1383_v31, 0.0  ;;  %v1520_v20 = vmax.f32 %v1292_v39, 0.0 }
 0x1c1   : > { %v1535_v46 = vmax.f32 %v1294_v35, 0.0  ;;  %v1389_v47 = vadd.f32 %v1388_v43, %v5894_v50  ;;  %v1522_v55 = vmax.f32 %v1385_v48, 0.0 }
 0x1c2   : > { %v1537_v54 = vmax.f32 %v1387_v41, 0.0  ;;  %v1536_v45 = vmax.f32 %v1296_v42, 0.0  ;;  %4985 = vmatmul.mubr.msk.bf16.gmra.mrb[156].mxu0 %vm1813_vm3, %v5991_v24 }
 0x1c3   : > { %v1675_v57 = vpack.c.bf16 %v1535_v46, %v1519_v44  ;;  %v1538_v58 = vmax.f32 %v1389_v47, 0.0  ;;  %4991 = vmatmul.mubr.msk.bf16.gmra.mrb[156].mxu1 %vm1813_vm3, %v5991_v24  ;;  %2276 = vmatprep.mubr.bf16.mxu0 %v5288_v34 }
 0x1c4   : > { %v1677_v59 = vpack.c.bf16 %v1537_v54, %v1521_v53  ;;  %v1676_v60 = vpack.c.bf16 %v1536_v45, %v1520_v20  ;;  %v1299_v49 = vpop.f32.mrb[88].mxu0  ;;  %2369 = vmatprep.mubr.bf16.mxu1 %v5288_v34 }
 0x1c5   : > { %v1678_v50 = vpack.c.bf16 %v1538_v58, %v1522_v55  ;;  %v1300_v61 = vadd.f32 %v1299_v49, %v5904_v14  ;;  %v1392_v62 = vpop.f32.mrb[88].mxu1  ;;  %v1301_v0 = vpop.f32.mrb[89].mxu0  ;;  %v5182_v55 = vld [vmem:[%s7496_s3] sm:$0xff]   ;;  %v5184_v58 = vld [vmem:[%s7496_s3 + $0x10] sm:$0xff]  }
 0x1c6   : > { %v1393_v1 = vadd.f32 %v1392_v62, %v5904_v14  ;;  %v1302_v2 = vadd.f32 %v1301_v0, %v5904_v14  ;;  %v1394_v3 = vpop.f32.mrb[89].mxu1  ;;  %v1303_v4 = vpop.f32.mrb[90].mxu0  ;;  %2396 = vmatprep.subr.bf16.mxu0 %v1676_v60  ;;  %v5186_v60 = vld [vmem:[%s7496_s3 + $0x20] sm:$0xff]  }
 0x1c7   : > { %v1395_v24 = vadd.f32 %v1394_v3, %v5904_v14  ;;  %v1304_v10 = vadd.f32 %v1303_v4, %v5906_v19  ;;  %v1396_v5 = vpop.f32.mrb[90].mxu1  ;;  %2489 = vmatprep.subr.bf16.mxu1 %v1678_v50  ;;  %v1305_v6 = vpop.f32.mrb[91].mxu0  ;;  %2397 = vmatpush1.bf16.msra.mxu0 %v1675_v57  ;;  %v1551_v11 = vmax.f32 %v1300_v61, 0.0  ;;  %v5183_v57 = vld [vmem:[%s7496_s3 + $0x8] sm:$0xff]  }
 0x1c8   : > { %v1397_v7 = vadd.f32 %v1396_v5, %v5906_v19  ;;  %v1306_v9 = vadd.f32 %v1305_v6, %v5906_v19  ;;  %v1398_v37 = vpop.f32.mrb[91].mxu1  ;;  %2490 = vmatpush1.bf16.msra.mxu1 %v1677_v59  ;;  %v1553_v15 = vmax.f32 %v1393_v1, 0.0  ;;  %v1552_v17 = vmax.f32 %v1302_v2, 0.0  ;;  %v5185_v59 = vld [vmem:[%s7496_s3 + $0x18] sm:$0xff]   ;;  %v6251_v49 = vpop.permute.xlu0 %1725 }
 0x1c9   : > { %v1567_v13 = vmax.f32 %v1304_v10, 0.0  ;;  %v1399_v51 = vadd.f32 %v1398_v37, %v5906_v19  ;;  %v1554_v21 = vmax.f32 %v1395_v24, 0.0  ;;  %v6253_v50 = vpop.permute.xlu1 %1730 }
 0x1ca   : > { %v1569_v18 = vmax.f32 %v1397_v7, 0.0  ;;  %v1568_v14 = vmax.f32 %v1306_v9, 0.0  ;;  %4986 = vmatmul.mubr.msk.bf16.gmra.mrb[160].mxu0 %vm1813_vm3, %v6010_v63 }
 0x1cb   : > { %v1691_v12 = vpack.c.bf16 %v1567_v13, %v1551_v11  ;;  %v1570_v22 = vmax.f32 %v1399_v51, 0.0  ;;  %4992 = vmatmul.mubr.msk.bf16.gmra.mrb[160].mxu1 %vm1813_vm3, %v6010_v63  ;;  %2286 = vmatprep.mubr.bf16.mxu0 %v5288_v34 }
 0x1cc   : > { %v1693_v23 = vpack.c.bf16 %v1569_v18, %v1553_v15  ;;  %v1692_v8 = vpack.c.bf16 %v1568_v14, %v1552_v17  ;;  %v1309_v25 = vpop.f32.mrb[92].mxu0  ;;  %2379 = vmatprep.mubr.bf16.mxu1 %v5288_v34  ;;  %v6255_v61 = vpop.permute.xlu0 %1745 }
 0x1cd   : > { %v1694_v19 = vpack.c.bf16 %v1570_v22, %v1554_v21  ;;  %v1310_v26 = vadd.f32 %v1309_v25, %v5916_v52  ;;  %v1402_v27 = vpop.f32.mrb[92].mxu1  ;;  %v1311_v16 = vpop.f32.mrb[93].mxu0 }
 0x1ce   : > { %v1403_v28 = vadd.f32 %v1402_v27, %v5916_v52  ;;  %v1312_v29 = vadd.f32 %v1311_v16, %v5916_v52  ;;  %v1404_v30 = vpop.f32.mrb[93].mxu1  ;;  %v1313_v31 = vpop.f32.mrb[94].mxu0  ;;  %2398 = vmatprep.subr.bf16.mxu0 %v1692_v8 }
 0x1cf   : > { %v1405_v63 = vadd.f32 %v1404_v30, %v5916_v52  ;;  %v1314_v39 = vadd.f32 %v1313_v31, %v5918_v56  ;;  %v1406_v32 = vpop.f32.mrb[94].mxu1  ;;  %2491 = vmatprep.subr.bf16.mxu1 %v1694_v19  ;;  %v1315_v33 = vpop.f32.mrb[95].mxu0  ;;  %2399 = vmatpush1.bf16.msra.mxu0 %v1691_v12  ;;  %v1583_v40 = vmax.f32 %v1310_v26, 0.0 }
 0x1d0   : > { %v1407_v48 = vadd.f32 %v1406_v32, %v5918_v56  ;;  %v1316_v35 = vadd.f32 %v1315_v33, %v5918_v56  ;;  %v1408_v38 = vpop.f32.mrb[95].mxu1  ;;  %2492 = vmatpush1.bf16.msra.mxu1 %v1693_v23  ;;  %v1585_v43 = vmax.f32 %v1403_v28, 0.0  ;;  %v1584_v44 = vmax.f32 %v1312_v29, 0.0  ;;  %v6257_v62 = vpop.permute.xlu1 %1750 }
 0x1d1   : > { %v1599_v41 = vmax.f32 %v1314_v39, 0.0  ;;  %v1409_v42 = vadd.f32 %v1408_v38, %v5918_v56  ;;  %v1586_v47 = vmax.f32 %v1405_v63, 0.0  ;;  %v6259_v5 = vpop.permute.xlu0 %1765 }
 0x1d2   : > { %v1601_v46 = vmax.f32 %v1407_v48, 0.0  ;;  %v1600_v52 = vmax.f32 %v1316_v35, 0.0  ;;  %4987 = vmatmul.mubr.msk.bf16.gmra.mrb[164].mxu0 %vm1813_vm3, %v6029_v36 }
 0x1d3   : > { %v1707_v53 = vpack.c.bf16 %v1599_v41, %v1583_v40  ;;  %v1602_v20 = vmax.f32 %v1409_v42, 0.0  ;;  %4993 = vmatmul.mubr.msk.bf16.gmra.mrb[164].mxu1 %vm1813_vm3, %v6029_v36  ;;  %2422 = vmatprep.mubr.bf16.mxu0 %v5288_v34 }
 0x1d4   : > { %v1709_v54 = vpack.c.bf16 %v1601_v46, %v1585_v43  ;;  %v1708_v45 = vpack.c.bf16 %v1600_v52, %v1584_v44  ;;  %2515 = vmatprep.mubr.bf16.mxu1 %v5288_v34  ;;  %v6261_v6 = vpop.permute.xlu1 %1770 }
 0x1d5   : > { %v1710_v56 = vpack.c.bf16 %v1602_v20, %v1586_v47  ;;  %v6267_v12 = vpop.permute.xlu0 %1735 }
 0x1d6   : > { %2400 = vmatprep.subr.bf16.mxu0 %v1708_v45 }
 0x1d7   : > { %2493 = vmatprep.subr.bf16.mxu1 %v1710_v56  ;;  %2401 = vmatpush1.bf16.msra.mxu0 %v1707_v53 }
 0x1d8   : > { %2494 = vmatpush1.bf16.msra.mxu1 %v1709_v54  ;;  %v6276_v30 = vpop.permute.xlu1 %1740 }
 0x1da   : > { %4994 = vmatmul.mubr.msk.bf16.vlgmr.msra.gmra.mrb[168].mxu0 %vm1813_vm3, %v5182_v55 }
 0x1db   : > { %5000 = vmatmul.mubr.msk.bf16.vlgmr.msra.gmra.mrb[168].mxu1 %vm1813_vm3, %v5182_v55  ;;  %2432 = vmatprep.mubr.bf16.mxu0 %v5288_v34 }
 0x1dc   : > { %2525 = vmatprep.mubr.bf16.mxu1 %v5288_v34 }
 0x1e2   : > { %4995 = vmatmul.mubr.msk.bf16.gmra.mrb[172].mxu0 %vm1813_vm3, %v5183_v57 }
 0x1e3   : > { %5001 = vmatmul.mubr.msk.bf16.gmra.mrb[172].mxu1 %vm1813_vm3, %v5183_v57  ;;  %2442 = vmatprep.mubr.bf16.mxu0 %v5288_v34 }
 0x1e4   : > { %2535 = vmatprep.mubr.bf16.mxu1 %v5288_v34 }
 0x1ea   : > { %4996 = vmatmul.mubr.msk.bf16.gmra.mrb[176].mxu0 %vm1813_vm3, %v5184_v58 }
 0x1eb   : > { %5002 = vmatmul.mubr.msk.bf16.gmra.mrb[176].mxu1 %vm1813_vm3, %v5184_v58  ;;  %2452 = vmatprep.mubr.bf16.mxu0 %v5288_v34 }
 0x1ec   : > { %2545 = vmatprep.mubr.bf16.mxu1 %v5288_v34 }
 0x1f2   : > { %4997 = vmatmul.mubr.msk.bf16.gmra.mrb[180].mxu0 %vm1813_vm3, %v5185_v59 }
 0x1f3   : > { %5003 = vmatmul.mubr.msk.bf16.gmra.mrb[180].mxu1 %vm1813_vm3, %v5185_v59  ;;  %2462 = vmatprep.mubr.bf16.mxu0 %v5288_v34 }
 0x1f4   : > { %2555 = vmatprep.mubr.bf16.mxu1 %v5288_v34 }
 0x1fa   : > { %4998 = vmatmul.mubr.msk.bf16.gmra.mrb[184].mxu0 %vm1813_vm3, %v5186_v60 }
 0x1fb   : > { %5004 = vmatmul.mubr.msk.bf16.gmra.mrb[184].mxu1 %vm1813_vm3, %v5186_v60  ;;  %2472 = vmatprep.mubr.bf16.mxu0 %v5288_v34 }
 0x1fc   : > { %2565 = vmatprep.mubr.bf16.mxu1 %v5288_v34 }
 0x202   : > { %4999 = vmatmul.mubr.msk.bf16.gmra.mrb[188].mxu0 %vm1813_vm3, %v6029_v36 }
 0x203   : > { %5005 = vmatmul.mubr.msk.bf16.gmra.mrb[188].mxu1 %vm1813_vm3, %v6029_v36  ;;  %3113 = vmatprep.mubr.bf16.mxu0 %v5288_v34 }
 0x204   : > { %3186 = vmatprep.mubr.bf16.mxu1 %v5288_v34 }
 0x21d   : > { %v1866_v0 = vpop.f32.mrb[96].mxu0 }
 0x21e   : > { %v1959_v1 = vpop.f32.mrb[96].mxu1  ;;  %v1868_v2 = vpop.f32.mrb[97].mxu0  ;;  %v1867_v51 = vadd.f32 %v1866_v0, %v6251_v49 }
 0x21f   : > { %v1961_v3 = vpop.f32.mrb[97].mxu1  ;;  %v1870_v4 = vpop.f32.mrb[98].mxu0  ;;  %v1960_v15 = vadd.f32 %v1959_v1, %v6251_v49  ;;  %v1869_v17 = vadd.f32 %v1868_v2, %v6251_v49 }
 0x220   : > { %v1963_v24 = vpop.f32.mrb[98].mxu1  ;;  %v1872_v10 = vpop.f32.mrb[99].mxu0  ;;  %v1962_v18 = vadd.f32 %v1961_v3, %v6251_v49  ;;  %v1871_v22 = vadd.f32 %v1870_v4, %v6253_v50  ;;  %v2576_v27 = vmax.f32 %v1867_v51, 0.0 }
 0x221   : > { %v1965_v36 = vpop.f32.mrb[99].mxu1  ;;  %v1964_v23 = vadd.f32 %v1963_v24, %v6253_v50  ;;  %v1873_v8 = vadd.f32 %v1872_v10, %v6253_v50  ;;  %v2578_v16 = vmax.f32 %v1960_v15, 0.0  ;;  %v2577_v28 = vmax.f32 %v1869_v17, 0.0  ;;  %v6315_v17 = vpop.permute.xlu1 %1760 }
 0x222   : > { %v1966_v25 = vadd.f32 %v1965_v36, %v6253_v50  ;;  %v2579_v29 = vmax.f32 %v1962_v18, 0.0  ;;  %v2592_v31 = vmax.f32 %v1871_v22, 0.0 }
 0x223   : > { %v2594_v63 = vmax.f32 %v1964_v23, 0.0  ;;  %v2593_v39 = vmax.f32 %v1873_v8, 0.0 }
 0x224   : > { %v2595_v32 = vmax.f32 %v1966_v25, 0.0 }
 0x225   : > { %v1876_v7 = vpop.f32.mrb[100].mxu0 }
 0x226   : > { %v1969_v9 = vpop.f32.mrb[100].mxu1  ;;  %v1878_v37 = vpop.f32.mrb[101].mxu0  ;;  %v6274_v26 = vadd.f32 %v1876_v7, %v6267_v12 }
 0x227   : > { %v1971_v11 = vpop.f32.mrb[101].mxu1  ;;  %v1880_v13 = vpop.f32.mrb[102].mxu0  ;;  %v6280_v35 = vadd.f32 %v1969_v9, %v6267_v12  ;;  %v6283_v38 = vadd.f32 %v1878_v37, %v6267_v12 }
 0x228   : > { %v1973_v14 = vpop.f32.mrb[102].mxu1  ;;  %v1882_v21 = vpop.f32.mrb[103].mxu0  ;;  %v2608_v48 = vmax.f32 %v6274_v26, 0.0  ;;  %v6287_v43 = vadd.f32 %v1971_v11, %v6267_v12  ;;  %v6290_v44 = vadd.f32 %v1880_v13, %v6276_v30 }
 0x229   : > { %v1975_v19 = vpop.f32.mrb[103].mxu1  ;;  %v6295_v20 = vadd.f32 %v1973_v14, %v6276_v30  ;;  %v6308_v37 = vpop.permute.xlu0 %1755  ;;  %v1883_v11 = vadd.f32 %v1882_v21, %v6276_v30  ;;  %v2610_v18 = vmax.f32 %v6280_v35, 0.0  ;;  %v2609_v14 = vmax.f32 %v6283_v38, 0.0 }
 0x22a   : > { %v2611_v25 = vmax.f32 %v6287_v43, 0.0  ;;  %v2624_v21 = vmax.f32 %v6290_v44, 0.0 }
 0x22d   : > { %v1886_v33 = vpop.f32.mrb[104].mxu0 }
 0x22e   : > { %v1887_v40 = vadd.f32 %v1886_v33, %v6255_v61  ;;  %v1979_v41 = vpop.f32.mrb[104].mxu1  ;;  %v1888_v42 = vpop.f32.mrb[105].mxu0  ;;  %v1976_v33 = vadd.f32 %v1975_v19, %v6276_v30 }
 0x22f   : > { %v1980_v46 = vadd.f32 %v1979_v41, %v6255_v61  ;;  %v1889_v52 = vadd.f32 %v1888_v42, %v6255_v61  ;;  %v1981_v47 = vpop.f32.mrb[105].mxu1  ;;  %v1890_v53 = vpop.f32.mrb[106].mxu0 }
 0x230   : > { %v2640_v54 = vmax.f32 %v1887_v40, 0.0  ;;  %v1982_v45 = vadd.f32 %v1981_v47, %v6255_v61  ;;  %v1891_v56 = vadd.f32 %v1890_v53, %v6257_v62  ;;  %v1983_v55 = vpop.f32.mrb[106].mxu1  ;;  %v1892_v57 = vpop.f32.mrb[107].mxu0  ;;  %v2625_v40 = vmax.f32 %v1883_v11, 0.0 }
 0x231   : > { %v2642_v58 = vmax.f32 %v1980_v46, 0.0  ;;  %v2641_v59 = vmax.f32 %v1889_v52, 0.0  ;;  %v1984_v60 = vadd.f32 %v1983_v55, %v6257_v62  ;;  %v1893_v0 = vadd.f32 %v1892_v57, %v6257_v62  ;;  %v1985_v1 = vpop.f32.mrb[107].mxu1 }
 0x232   : > { %v6301_v2 = vadd.f32 %v2640_v54, %v2576_v27  ;;  %v2643_v3 = vmax.f32 %v1982_v45, 0.0  ;;  %v2656_v4 = vmax.f32 %v1891_v56, 0.0  ;;  %v1986_v24 = vadd.f32 %v1985_v1, %v6257_v62 }
 0x233   : > { %v6304_v10 = vadd.f32 %v2642_v58, %v2578_v16  ;;  %v6306_v36 = vadd.f32 %v2641_v59, %v2577_v28  ;;  %v2658_v7 = vmax.f32 %v1984_v60, 0.0  ;;  %v2657_v9 = vmax.f32 %v1893_v0, 0.0 }
 0x234   : > { %v6311_v13 = vadd.f32 %v2643_v3, %v2579_v29  ;;  %v6313_v51 = vadd.f32 %v2656_v4, %v2592_v31  ;;  %v2659_v15 = vmax.f32 %v1986_v24, 0.0  ;;  %v2626_v31 = vmax.f32 %v6295_v20, 0.0 }
 0x235   : > { %v6319_v22 = vadd.f32 %v2658_v7, %v2594_v63  ;;  %v6321_v23 = vadd.f32 %v2657_v9, %v2593_v39  ;;  %v1896_v8 = vpop.f32.mrb[108].mxu0  ;;  %v2627_v60 = vmax.f32 %v1976_v33, 0.0 }
 0x236   : > { %v6325_v27 = vadd.f32 %v2659_v15, %v2595_v32  ;;  %v1897_v16 = vadd.f32 %v1896_v8, %v6308_v37  ;;  %v1989_v28 = vpop.f32.mrb[108].mxu1  ;;  %v1898_v29 = vpop.f32.mrb[109].mxu0 }
 0x237   : > { %v1990_v63 = vadd.f32 %v1989_v28, %v6308_v37  ;;  %v1899_v39 = vadd.f32 %v1898_v29, %v6308_v37  ;;  %v1991_v35 = vpop.f32.mrb[109].mxu1  ;;  %v1900_v38 = vpop.f32.mrb[110].mxu0 }
 0x238   : > { %v2672_v41 = vmax.f32 %v1897_v16, 0.0  ;;  %v1992_v42 = vadd.f32 %v1991_v35, %v6308_v37  ;;  %v1901_v32 = vadd.f32 %v1900_v38, %v6315_v17  ;;  %v1993_v43 = vpop.f32.mrb[110].mxu1  ;;  %v1902_v44 = vpop.f32.mrb[111].mxu0 }
 0x239   : > { %v2674_v46 = vmax.f32 %v1990_v63, 0.0  ;;  %v2673_v52 = vmax.f32 %v1899_v39, 0.0  ;;  %v1994_v47 = vadd.f32 %v1993_v43, %v6315_v17  ;;  %v1903_v19 = vadd.f32 %v1902_v44, %v6315_v17  ;;  %v1995_v53 = vpop.f32.mrb[111].mxu1 }
 0x23a   : > { %v6338_v20 = vadd.f32 %v2672_v41, %v2608_v48  ;;  %v2675_v54 = vmax.f32 %v1992_v42, 0.0  ;;  %v2688_v45 = vmax.f32 %v1901_v32, 0.0  ;;  %v1996_v56 = vadd.f32 %v1995_v53, %v6315_v17 }
 0x23b   : > { %v6341_v55 = vadd.f32 %v2674_v46, %v2610_v18  ;;  %v6343_v57 = vadd.f32 %v2673_v52, %v2609_v14  ;;  %v2690_v58 = vmax.f32 %v1994_v47, 0.0  ;;  %v2689_v59 = vmax.f32 %v1903_v19, 0.0  ;;  %v6366_v52 = vpop.permute.xlu0 %1775 }
 0x23c   : > { %v6345_v0 = vadd.f32 %v2675_v54, %v2611_v25  ;;  %v6347_v1 = vadd.f32 %v2688_v45, %v2624_v21  ;;  %v2691_v3 = vmax.f32 %v1996_v56, 0.0  ;;  %v6370_v54 = vpop.permute.xlu1 %1780 }
 0x23d   : > { %v6349_v4 = vadd.f32 %v2690_v58, %v2626_v31  ;;  %v6351_v26 = vadd.f32 %v2689_v59, %v2625_v40  ;;  %v1906_v48 = vpop.f32.mrb[112].mxu0 }
 0x23e   : > { %v6353_v24 = vadd.f32 %v2691_v3, %v2627_v60  ;;  %v1907_v7 = vadd.f32 %v1906_v48, %v6259_v5  ;;  %v1999_v9 = vpop.f32.mrb[112].mxu1  ;;  %v1908_v11 = vpop.f32.mrb[113].mxu0 }
 0x23f   : > { %v2000_v15 = vadd.f32 %v1999_v9, %v6259_v5  ;;  %v1909_v18 = vadd.f32 %v1908_v11, %v6259_v5  ;;  %v2001_v14 = vpop.f32.mrb[113].mxu1  ;;  %v1910_v8 = vpop.f32.mrb[114].mxu0 }
 0x240   : > { %v2704_v25 = vmax.f32 %v1907_v7, 0.0  ;;  %v2002_v21 = vadd.f32 %v2001_v14, %v6259_v5  ;;  %v1911_v16 = vadd.f32 %v1910_v8, %v6261_v6  ;;  %v2003_v28 = vpop.f32.mrb[114].mxu1  ;;  %v1912_v29 = vpop.f32.mrb[115].mxu0 }
 0x241   : > { %v2706_v31 = vmax.f32 %v2000_v15, 0.0  ;;  %v2705_v33 = vmax.f32 %v1909_v18, 0.0  ;;  %v2004_v63 = vadd.f32 %v2003_v28, %v6261_v6  ;;  %v1913_v39 = vadd.f32 %v1912_v29, %v6261_v6  ;;  %v2005_v35 = vpop.f32.mrb[115].mxu1 }
 0x242   : > { %v2832_v38 = vadd.f32 %v6301_v2, %v2704_v25  ;;  %v2707_v40 = vmax.f32 %v2002_v21, 0.0  ;;  %v2720_v41 = vmax.f32 %v1911_v16, 0.0  ;;  %v2006_v42 = vadd.f32 %v2005_v35, %v6261_v6 }
 0x243   : > { %v2834_v32 = vadd.f32 %v6304_v10, %v2706_v31  ;;  %v2833_v43 = vadd.f32 %v6306_v36, %v2705_v33  ;;  %v2722_v44 = vmax.f32 %v2004_v63, 0.0  ;;  %v2721_v46 = vmax.f32 %v1913_v39, 0.0 }
 0x244   : > { %v2835_v47 = vadd.f32 %v6311_v13, %v2707_v40  ;;  %v2848_v19 = vadd.f32 %v6313_v51, %v2720_v41  ;;  %v2723_v53 = vmax.f32 %v2006_v42, 0.0  ;;  %v6372_v2 = vmul.f32 0.33333334, %v2832_v38 }
 0x245   : > { %v2850_v45 = vadd.f32 %v6319_v22, %v2722_v44  ;;  %v2849_v56 = vadd.f32 %v6321_v23, %v2721_v46  ;;  %v1916_v10 = vpop.f32.mrb[116].mxu0  ;;  %v6376_v58 = vmul.f32 0.33333334, %v2834_v32  ;;  %v2897_v42 = vmul.f32 0.33333334, %v2833_v43 }
 0x246   : > { %v2912_v36 = vmul.f32 0.33333334, %v2848_v19  ;;  %v2851_v59 = vadd.f32 %v6325_v27, %v2723_v53  ;;  %v1917_v60 = vadd.f32 %v1916_v10, %v6366_v52  ;;  %v2009_v13 = vpop.f32.mrb[116].mxu1  ;;  %v1918_v3 = vpop.f32.mrb[117].mxu0  ;;  %v2899_v19 = vmul.f32 0.33333334, %v2835_v47 }
 0x247   : > { %v2914_v51 = vmul.f32 0.33333334, %v2850_v45  ;;  %v2913_v48 = vmul.f32 0.33333334, %v2849_v56  ;;  %v2010_v7 = vadd.f32 %v2009_v13, %v6366_v52  ;;  %v1919_v9 = vadd.f32 %v1918_v3, %v6366_v52  ;;  %v2011_v11 = vpop.f32.mrb[117].mxu1  ;;  %v1920_v22 = vpop.f32.mrb[118].mxu0 }
 0x248   : > { %v2968_v23 = vpack.c.bf16 %v2912_v36, %v6372_v2  ;;  %v2915_v15 = vmul.f32 0.33333334, %v2851_v59  ;;  %v2736_v18 = vmax.f32 %v1917_v60, 0.0  ;;  %v2012_v14 = vadd.f32 %v2011_v11, %v6366_v52  ;;  %v2013_v8 = vpop.f32.mrb[118].mxu1  ;;  %v1922_v27 = vpop.f32.mrb[119].mxu0 }
 0x249   : > { %v2970_v25 = vpack.c.bf16 %v2914_v51, %v6376_v58  ;;  %v2738_v21 = vmax.f32 %v2010_v7, 0.0  ;;  %v2737_v16 = vmax.f32 %v1919_v9, 0.0  ;;  %v1921_v28 = vadd.f32 %v1920_v22, %v6370_v54  ;;  %v2015_v29 = vpop.f32.mrb[119].mxu1 }
 0x24a   : > { %v2864_v31 = vadd.f32 %v6338_v20, %v2736_v18  ;;  %v2739_v33 = vmax.f32 %v2012_v14, 0.0  ;;  %v2014_v63 = vadd.f32 %v2013_v8, %v6370_v54  ;;  %v1923_v39 = vadd.f32 %v1922_v27, %v6370_v54  ;;  %v6400_v8 = vld [vmem:[%s7498_s5] sm:$0xff]  }
 0x24b   : > { %v2866_v35 = vadd.f32 %v6341_v55, %v2738_v21  ;;  %v2865_v38 = vadd.f32 %v6343_v57, %v2737_v16  ;;  %v2752_v40 = vmax.f32 %v1921_v28, 0.0  ;;  %v2016_v41 = vadd.f32 %v2015_v29, %v6370_v54 }
 0x24c   : > { %v2867_v32 = vadd.f32 %v6345_v0, %v2739_v33  ;;  %v2754_v44 = vmax.f32 %v2014_v63, 0.0  ;;  %v2753_v46 = vmax.f32 %v1923_v39, 0.0  ;;  %v2928_v45 = vmul.f32 0.33333334, %v2864_v31 }
 0x24d   : > { %v2880_v20 = vadd.f32 %v6347_v1, %v2752_v40  ;;  %v2755_v53 = vmax.f32 %v2016_v41, 0.0  ;;  %v2052_v2 = vpop.f32.mrb[120].mxu0  ;;  %v2969_v10 = vpack.c.bf16 %v2913_v48, %v2897_v42  ;;  %v2930_v36 = vmul.f32 0.33333334, %v2866_v35 }
 0x24e   : > { %v2882_v56 = vadd.f32 %v6349_v4, %v2754_v44  ;;  %v2881_v55 = vadd.f32 %v6351_v26, %v2753_v46  ;;  %v2145_v57 = vpop.f32.mrb[120].mxu1  ;;  %v2054_v58 = vpop.f32.mrb[121].mxu0  ;;  %v2971_v0 = vpack.c.bf16 %v2915_v15, %v2899_v19  ;;  %v2929_v26 = vmul.f32 0.33333334, %v2865_v38 }
 0x24f   : > { %v2944_v59 = vmul.f32 0.33333334, %v2880_v20  ;;  %v2883_v43 = vadd.f32 %v6353_v24, %v2755_v53  ;;  %v2147_v60 = vpop.f32.mrb[121].mxu1  ;;  %v2056_v13 = vpop.f32.mrb[122].mxu0  ;;  %3081 = vmatprep.subr.bf16.mxu0 %v2969_v10  ;;  %v2931_v48 = vmul.f32 0.33333334, %v2867_v32  ;;  %v2053_v21 = vadd.f32 %v2052_v2, %v6251_v49 }
 0x250   : > { %v2946_v47 = vmul.f32 0.33333334, %v2882_v56  ;;  %v2945_v3 = vmul.f32 0.33333334, %v2881_v55  ;;  %v2149_v1 = vpop.f32.mrb[122].mxu1  ;;  %v2058_v51 = vpop.f32.mrb[123].mxu0  ;;  %3154 = vmatprep.subr.bf16.mxu1 %v2971_v0  ;;  %3082 = vmatpush1.bf16.msra.mxu0 %v2968_v23  ;;  %v2055_v16 = vadd.f32 %v2054_v58, %v6251_v49  ;;  %v2148_v28 = vadd.f32 %v2147_v60, %v6251_v49 }
 0x251   : > { %v2984_v7 = vpack.c.bf16 %v2944_v59, %v2928_v45  ;;  %v2947_v9 = vmul.f32 0.33333334, %v2883_v43  ;;  %v2151_v4 = vpop.f32.mrb[123].mxu1  ;;  %3155 = vmatpush1.bf16.msra.mxu1 %v2970_v25  ;;  %v2146_v25 = vadd.f32 %v2145_v57, %v6251_v49  ;;  %v2057_v33 = vadd.f32 %v2056_v13, %v6253_v50 }
 0x252   : > { %v2986_v11 = vpack.c.bf16 %v2946_v47, %v2930_v36  ;;  %v2985_v22 = vpack.c.bf16 %v2945_v3, %v2929_v26  ;;  %v2150_v63 = vadd.f32 %v2149_v1, %v6253_v50  ;;  %v2059_v39 = vadd.f32 %v2058_v51, %v6253_v50  ;;  %v6435_v36 = vld [vmem:[%s7498_s5 + $0x8] sm:$0xff]  }
 0x253   : > { %v2987_v18 = vpack.c.bf16 %v2947_v9, %v2931_v48  ;;  %v6410_v35 = vadd.f32 %v2151_v4, %v6253_v50  ;;  %v2580_v41 = vmax.f32 %v2053_v21, 0.0  ;;  %v2582_v42 = vmax.f32 %v2146_v25, 0.0 }
 0x254   : > { %3083 = vmatprep.subr.bf16.mxu0 %v2985_v22  ;;  %v2581_v32 = vmax.f32 %v2055_v16, 0.0  ;;  %v2583_v44 = vmax.f32 %v2148_v28, 0.0  ;;  %v2596_v46 = vmax.f32 %v2057_v33, 0.0  ;;  %v2598_v19 = vmax.f32 %v2150_v63, 0.0 }
 0x255   : > { %v2062_v24 = vpop.f32.mrb[124].mxu0  ;;  %3156 = vmatprep.subr.bf16.mxu1 %v2987_v18  ;;  %3084 = vmatpush1.bf16.msra.mxu0 %v2984_v7  ;;  %v2597_v20 = vmax.f32 %v2059_v39, 0.0  ;;  %v2599_v53 = vmax.f32 %v6410_v35, 0.0 }
 0x256   : > { %v2155_v15 = vpop.f32.mrb[124].mxu1  ;;  %v2064_v14 = vpop.f32.mrb[125].mxu0  ;;  %3157 = vmatpush1.bf16.msra.mxu1 %v2986_v11  ;;  %v6415_v40 = vadd.f32 %v2062_v24, %v6267_v12 }
 0x257   : > { %v2157_v23 = vpop.f32.mrb[125].mxu1  ;;  %v2066_v27 = vpop.f32.mrb[126].mxu0  ;;  %v6426_v56 = vadd.f32 %v2155_v15, %v6267_v12  ;;  %v6429_v55 = vadd.f32 %v2064_v14, %v6267_v12 }
 0x258   : > { %v2159_v29 = vpop.f32.mrb[126].mxu1  ;;  %v2068_v31 = vpop.f32.mrb[127].mxu0  ;;  %5010 = vmatmul.mubr.msk.bf16.vlgmr.msra.gmra.mrb[192].mxu0 %vm3068_vm4, %v6400_v8  ;;  %v2612_v45 = vmax.f32 %v6415_v40, 0.0  ;;  %v6438_v59 = vadd.f32 %v2157_v23, %v6267_v12  ;;  %v6441_v43 = vadd.f32 %v2066_v27, %v6276_v30 }
 0x259   : > { %v6412_v38 = vpop.f32.mrb[127].mxu1  ;;  %5014 = vmatmul.mubr.msk.bf16.vlgmr.msra.gmra.mrb[192].mxu1 %vm3068_vm4, %v6400_v8  ;;  %3123 = vmatprep.mubr.bf16.mxu0 %v5288_v34  ;;  %v6446_v3 = vadd.f32 %v2159_v29, %v6276_v30  ;;  %v2069_v28 = vadd.f32 %v2068_v31, %v6276_v30  ;;  %v2614_v39 = vmax.f32 %v6426_v56, 0.0  ;;  %v2613_v35 = vmax.f32 %v6429_v55, 0.0  ;;  %v6484_v56 = vld [vmem:[%s7498_s5 + $0x10] sm:$0xff]  }
 0x25a   : > { %3196 = vmatprep.mubr.bf16.mxu1 %v5288_v34 }
 0x25d   : > { %v2072_v2 = vpop.f32.mrb[128].mxu0 }
 0x25e   : > { %v2073_v10 = vadd.f32 %v2072_v2, %v6255_v61  ;;  %v2165_v57 = vpop.f32.mrb[128].mxu1  ;;  %v2074_v58 = vpop.f32.mrb[129].mxu0  ;;  %v2615_v2 = vmax.f32 %v6438_v59, 0.0 }
 0x25f   : > { %v2166_v0 = vadd.f32 %v2165_v57, %v6255_v61  ;;  %v2075_v60 = vadd.f32 %v2074_v58, %v6255_v61  ;;  %v2167_v13 = vpop.f32.mrb[129].mxu1  ;;  %v2076_v47 = vpop.f32.mrb[130].mxu0 }
 0x260   : > { %v2644_v1 = vmax.f32 %v2073_v10, 0.0  ;;  %v2168_v51 = vadd.f32 %v2167_v13, %v6255_v61  ;;  %v2077_v7 = vadd.f32 %v2076_v47, %v6257_v62  ;;  %v2169_v9 = vpop.f32.mrb[130].mxu1  ;;  %v2078_v4 = vpop.f32.mrb[131].mxu0  ;;  %5011 = vmatmul.mubr.msk.bf16.gmra.mrb[196].mxu0 %vm3068_vm4, %v6435_v36  ;;  %v2628_v10 = vmax.f32 %v6441_v43, 0.0 }
 0x261   : > { %v2646_v26 = vmax.f32 %v2166_v0, 0.0  ;;  %v2645_v48 = vmax.f32 %v2075_v60, 0.0  ;;  %v2170_v11 = vadd.f32 %v2169_v9, %v6257_v62  ;;  %v2079_v22 = vadd.f32 %v2078_v4, %v6257_v62  ;;  %v2171_v18 = vpop.f32.mrb[131].mxu1  ;;  %5015 = vmatmul.mubr.msk.bf16.gmra.mrb[196].mxu1 %vm3068_vm4, %v6435_v36  ;;  %3133 = vmatprep.mubr.bf16.mxu0 %v5288_v34 }
 0x262   : > { %v6452_v24 = vadd.f32 %v2644_v1, %v2580_v41  ;;  %v2647_v15 = vmax.f32 %v2168_v51, 0.0  ;;  %v2660_v14 = vmax.f32 %v2077_v7, 0.0  ;;  %v2172_v23 = vadd.f32 %v2171_v18, %v6257_v62  ;;  %3206 = vmatprep.mubr.bf16.mxu1 %v5288_v34 }
 0x263   : > { %v6459_v27 = vadd.f32 %v2646_v26, %v2582_v42  ;;  %v6461_v21 = vadd.f32 %v2645_v48, %v2581_v32  ;;  %v2662_v25 = vmax.f32 %v2170_v11, 0.0  ;;  %v2661_v16 = vmax.f32 %v2079_v22, 0.0 }
 0x264   : > { %v6466_v29 = vadd.f32 %v2647_v15, %v2583_v44  ;;  %v6468_v33 = vadd.f32 %v2660_v14, %v2596_v46  ;;  %v2663_v63 = vmax.f32 %v2172_v23, 0.0  ;;  %v2629_v43 = vmax.f32 %v2069_v28, 0.0 }
 0x265   : > { %v6472_v41 = vadd.f32 %v2662_v25, %v2598_v19  ;;  %v6474_v42 = vadd.f32 %v2661_v16, %v2597_v20  ;;  %v2082_v32 = vpop.f32.mrb[132].mxu0  ;;  %v2630_v19 = vmax.f32 %v6446_v3, 0.0  ;;  %v2162_v20 = vadd.f32 %v6412_v38, %v6276_v30 }
 0x266   : > { %v6478_v57 = vadd.f32 %v2663_v63, %v2599_v53  ;;  %v2083_v31 = vadd.f32 %v2082_v32, %v6308_v37  ;;  %v2175_v44 = vpop.f32.mrb[132].mxu1  ;;  %v2084_v46 = vpop.f32.mrb[133].mxu0 }
 0x267   : > { %v2176_v55 = vadd.f32 %v2175_v44, %v6308_v37  ;;  %v2085_v58 = vadd.f32 %v2084_v46, %v6308_v37  ;;  %v2177_v53 = vpop.f32.mrb[133].mxu1  ;;  %v2086_v59 = vpop.f32.mrb[134].mxu0  ;;  %v2631_v40 = vmax.f32 %v2162_v20, 0.0  ;;  %v6524_v44 = vld [vmem:[%s7498_s5 + $0x18] sm:$0xff]  }
 0x268   : > { %v2676_v0 = vmax.f32 %v2083_v31, 0.0  ;;  %v2178_v60 = vadd.f32 %v2177_v53, %v6308_v37  ;;  %v2087_v13 = vadd.f32 %v2086_v59, %v6315_v17  ;;  %v2179_v47 = vpop.f32.mrb[134].mxu1  ;;  %v2088_v1 = vpop.f32.mrb[135].mxu0  ;;  %5012 = vmatmul.mubr.msk.bf16.gmra.mrb[200].mxu0 %vm3068_vm4, %v6484_v56 }
 0x269   : > { %v2678_v51 = vmax.f32 %v2176_v55, 0.0  ;;  %v2677_v7 = vmax.f32 %v2085_v58, 0.0  ;;  %v2180_v3 = vadd.f32 %v2179_v47, %v6315_v17  ;;  %v2089_v38 = vadd.f32 %v2088_v1, %v6315_v17  ;;  %v2181_v9 = vpop.f32.mrb[135].mxu1  ;;  %5016 = vmatmul.mubr.msk.bf16.gmra.mrb[200].mxu1 %vm3068_vm4, %v6484_v56  ;;  %3143 = vmatprep.mubr.bf16.mxu0 %v5288_v34 }
 0x26a   : > { %v6497_v4 = vadd.f32 %v2676_v0, %v2612_v45  ;;  %v2679_v26 = vmax.f32 %v2178_v60, 0.0  ;;  %v2692_v48 = vmax.f32 %v2087_v13, 0.0  ;;  %v2182_v11 = vadd.f32 %v2181_v9, %v6315_v17  ;;  %3216 = vmatprep.mubr.bf16.mxu1 %v5288_v34 }
 0x26b   : > { %v6504_v22 = vadd.f32 %v2678_v51, %v2614_v39  ;;  %v6506_v18 = vadd.f32 %v2677_v7, %v2613_v35  ;;  %v2694_v15 = vmax.f32 %v2180_v3, 0.0  ;;  %v2693_v14 = vmax.f32 %v2089_v38, 0.0 }
 0x26c   : > { %v6510_v45 = vadd.f32 %v2679_v26, %v2615_v2  ;;  %v6512_v23 = vadd.f32 %v2692_v48, %v2628_v10  ;;  %v2695_v25 = vmax.f32 %v2182_v11, 0.0 }
 0x26d   : > { %v6514_v16 = vadd.f32 %v2694_v15, %v2630_v19  ;;  %v6516_v28 = vadd.f32 %v2693_v14, %v2629_v43  ;;  %v2092_v63 = vpop.f32.mrb[136].mxu0 }
 0x26e   : > { %v6518_v39 = vadd.f32 %v2695_v25, %v2631_v40  ;;  %v2093_v35 = vadd.f32 %v2092_v63, %v6259_v5  ;;  %v2185_v32 = vpop.f32.mrb[136].mxu1  ;;  %v2094_v31 = vpop.f32.mrb[137].mxu0 }
 0x26f   : > { %v2186_v2 = vadd.f32 %v2185_v32, %v6259_v5  ;;  %v2095_v10 = vadd.f32 %v2094_v31, %v6259_v5  ;;  %v2187_v46 = vpop.f32.mrb[137].mxu1  ;;  %v2096_v19 = vpop.f32.mrb[138].mxu0 }
 0x270   : > { %v2708_v20 = vmax.f32 %v2093_v35, 0.0  ;;  %v2188_v55 = vadd.f32 %v2187_v46, %v6259_v5  ;;  %v2097_v58 = vadd.f32 %v2096_v19, %v6261_v6  ;;  %v2189_v53 = vpop.f32.mrb[138].mxu1  ;;  %v2098_v59 = vpop.f32.mrb[139].mxu0  ;;  %5013 = vmatmul.mubr.msk.bf16.gmra.mrb[204].mxu0 %vm3068_vm4, %v6524_v44 }
 0x271   : > { %v2710_v43 = vmax.f32 %v2186_v2, 0.0  ;;  %v2709_v0 = vmax.f32 %v2095_v10, 0.0  ;;  %v2190_v60 = vadd.f32 %v2189_v53, %v6261_v6  ;;  %v2099_v13 = vadd.f32 %v2098_v59, %v6261_v6  ;;  %v2191_v47 = vpop.f32.mrb[139].mxu1  ;;  %5017 = vmatmul.mubr.msk.bf16.gmra.mrb[204].mxu1 %vm3068_vm4, %v6524_v44  ;;  %3259 = vmatprep.mubr.bf16.mxu0 %v5288_v34 }
 0x272   : > { %v2836_v1 = vadd.f32 %v6452_v24, %v2708_v20  ;;  %v2711_v51 = vmax.f32 %v2188_v55, 0.0  ;;  %v2724_v7 = vmax.f32 %v2097_v58, 0.0  ;;  %v2192_v3 = vadd.f32 %v2191_v47, %v6261_v6  ;;  %3332 = vmatprep.mubr.bf16.mxu1 %v5288_v34 }
 0x273   : > { %v2838_v38 = vadd.f32 %v6459_v27, %v2710_v43  ;;  %v2837_v9 = vadd.f32 %v6461_v21, %v2709_v0  ;;  %v2726_v26 = vmax.f32 %v2190_v60, 0.0  ;;  %v2725_v48 = vmax.f32 %v2099_v13, 0.0 }
 0x274   : > { %v2839_v24 = vadd.f32 %v6466_v29, %v2711_v51  ;;  %v2852_v11 = vadd.f32 %v6468_v33, %v2724_v7  ;;  %v2727_v15 = vmax.f32 %v2192_v3, 0.0  ;;  %v6544_v14 = vmul.f32 0.33333334, %v2836_v1 }
 0x275   : > { %v2854_v40 = vadd.f32 %v6472_v41, %v2726_v26  ;;  %v2853_v25 = vadd.f32 %v6474_v42, %v2725_v48  ;;  %v2102_v27 = vpop.f32.mrb[140].mxu0  ;;  %v6548_v63 = vmul.f32 0.33333334, %v2838_v38 }
 0x276   : > { %v2916_v21 = vmul.f32 0.33333334, %v2852_v11  ;;  %v2855_v35 = vadd.f32 %v6478_v57, %v2727_v15  ;;  %v2103_v32 = vadd.f32 %v2102_v27, %v6366_v52  ;;  %v2195_v31 = vpop.f32.mrb[140].mxu1  ;;  %v2104_v2 = vpop.f32.mrb[141].mxu0  ;;  %v2901_v11 = vmul.f32 0.33333334, %v2837_v9 }
 0x277   : > { %v2918_v29 = vmul.f32 0.33333334, %v2854_v40  ;;  %v2917_v10 = vmul.f32 0.33333334, %v2853_v25  ;;  %v2196_v33 = vadd.f32 %v2195_v31, %v6366_v52  ;;  %v2105_v46 = vadd.f32 %v2104_v2, %v6366_v52  ;;  %v2197_v19 = vpop.f32.mrb[141].mxu1  ;;  %v2106_v41 = vpop.f32.mrb[142].mxu0 }
 0x278   : > { %v2972_v42 = vpack.c.bf16 %v2916_v21, %v6544_v14  ;;  %v2919_v20 = vmul.f32 0.33333334, %v2855_v35  ;;  %v2740_v55 = vmax.f32 %v2103_v32, 0.0  ;;  %v2198_v58 = vadd.f32 %v2197_v19, %v6366_v52  ;;  %v2199_v53 = vpop.f32.mrb[142].mxu1  ;;  %v2108_v57 = vpop.f32.mrb[143].mxu0 }
 0x279   : > { %v2974_v59 = vpack.c.bf16 %v2918_v29, %v6548_v63  ;;  %v2742_v43 = vmax.f32 %v2196_v33, 0.0  ;;  %v2741_v0 = vmax.f32 %v2105_v46, 0.0  ;;  %v2107_v60 = vadd.f32 %v2106_v41, %v6370_v54  ;;  %v2201_v13 = vpop.f32.mrb[143].mxu1 }
 0x27a   : > { %v2868_v47 = vadd.f32 %v6497_v4, %v2740_v55  ;;  %v2743_v1 = vmax.f32 %v2198_v58, 0.0  ;;  %v2200_v51 = vadd.f32 %v2199_v53, %v6370_v54  ;;  %v2109_v7 = vadd.f32 %v2108_v57, %v6370_v54 }
 0x27b   : > { %v2870_v3 = vadd.f32 %v6504_v22, %v2742_v43  ;;  %v2869_v38 = vadd.f32 %v6506_v18, %v2741_v0  ;;  %v2756_v26 = vmax.f32 %v2107_v60, 0.0  ;;  %v2202_v48 = vadd.f32 %v2201_v13, %v6370_v54 }
 0x27c   : > { %v2871_v15 = vadd.f32 %v6510_v45, %v2743_v1  ;;  %v2758_v14 = vmax.f32 %v2200_v51, 0.0  ;;  %v2757_v40 = vmax.f32 %v2109_v7, 0.0  ;;  %v2903_v25 = vmul.f32 0.33333334, %v2839_v24 }
 0x27d   : > { %v2884_v4 = vadd.f32 %v6512_v23, %v2756_v26  ;;  %v2759_v27 = vmax.f32 %v2202_v48, 0.0  ;;  %v2238_v63 = vpop.f32.mrb[144].mxu0  ;;  %v2932_v21 = vmul.f32 0.33333334, %v2868_v47  ;;  %v2973_v32 = vpack.c.bf16 %v2917_v10, %v2901_v11 }
 0x27e   : > { %v2886_v35 = vadd.f32 %v6514_v16, %v2758_v14  ;;  %v2885_v22 = vadd.f32 %v6516_v28, %v2757_v40  ;;  %v2331_v18 = vpop.f32.mrb[144].mxu1  ;;  %v2240_v31 = vpop.f32.mrb[145].mxu0  ;;  %v2934_v2 = vmul.f32 0.33333334, %v2870_v3  ;;  %v2975_v45 = vpack.c.bf16 %v2919_v20, %v2903_v25 }
 0x27f   : > { %v2948_v29 = vmul.f32 0.33333334, %v2884_v4  ;;  %v2887_v9 = vadd.f32 %v6518_v39, %v2759_v27  ;;  %v2333_v33 = vpop.f32.mrb[145].mxu1  ;;  %v2242_v46 = vpop.f32.mrb[146].mxu0  ;;  %3227 = vmatprep.subr.bf16.mxu0 %v2973_v32  ;;  %v2933_v28 = vmul.f32 0.33333334, %v2869_v38  ;;  %v2239_v47 = vadd.f32 %v2238_v63, %v6251_v49 }
 0x280   : > { %v2950_v24 = vmul.f32 0.33333334, %v2886_v35  ;;  %v2949_v19 = vmul.f32 0.33333334, %v2885_v22  ;;  %v2335_v23 = vpop.f32.mrb[146].mxu1  ;;  %v2244_v41 = vpop.f32.mrb[147].mxu0  ;;  %3300 = vmatprep.subr.bf16.mxu1 %v2975_v45  ;;  %3228 = vmatpush1.bf16.msra.mxu0 %v2972_v42  ;;  %v2332_v42 = vadd.f32 %v2331_v18, %v6251_v49  ;;  %v2241_v1 = vadd.f32 %v2240_v31, %v6251_v49 }
 0x281   : > { %v2988_v55 = vpack.c.bf16 %v2948_v29, %v2932_v21  ;;  %v2951_v58 = vmul.f32 0.33333334, %v2887_v9  ;;  %v2337_v16 = vpop.f32.mrb[147].mxu1  ;;  %v2935_v10 = vmul.f32 0.33333334, %v2871_v15  ;;  %3301 = vmatpush1.bf16.msra.mxu1 %v2974_v59  ;;  %v2334_v51 = vadd.f32 %v2333_v33, %v6251_v49 }
 0x282   : > { %v2990_v53 = vpack.c.bf16 %v2950_v24, %v2934_v2  ;;  %v2989_v57 = vpack.c.bf16 %v2949_v19, %v2933_v28  ;;  %v2243_v3 = vadd.f32 %v2242_v46, %v6253_v50  ;;  %v2336_v38 = vadd.f32 %v2335_v23, %v6253_v50 }
 0x283   : > { %v2991_v43 = vpack.c.bf16 %v2951_v58, %v2935_v10  ;;  %v2245_v26 = vadd.f32 %v2244_v41, %v6253_v50  ;;  %v6577_v48 = vadd.f32 %v2337_v16, %v6253_v50  ;;  %v2584_v14 = vmax.f32 %v2239_v47, 0.0 }
 0x284   : > { %3229 = vmatprep.subr.bf16.mxu0 %v2989_v57  ;;  %v2586_v40 = vmax.f32 %v2332_v42, 0.0  ;;  %v2585_v25 = vmax.f32 %v2241_v1, 0.0  ;;  %v2587_v4 = vmax.f32 %v2334_v51, 0.0  ;;  %v2600_v27 = vmax.f32 %v2243_v3, 0.0 }
 0x285   : > { %v2248_v39 = vpop.f32.mrb[148].mxu0  ;;  %3302 = vmatprep.subr.bf16.mxu1 %v2991_v43  ;;  %3230 = vmatpush1.bf16.msra.mxu0 %v2988_v55  ;;  %v2602_v63 = vmax.f32 %v2336_v38, 0.0  ;;  %v2601_v21 = vmax.f32 %v2245_v26, 0.0  ;;  %v2603_v35 = vmax.f32 %v6577_v48, 0.0 }
 0x286   : > { %v2341_v20 = vpop.f32.mrb[148].mxu1  ;;  %v2250_v0 = vpop.f32.mrb[149].mxu0  ;;  %3303 = vmatpush1.bf16.msra.mxu1 %v2990_v53  ;;  %v6582_v15 = vadd.f32 %v2248_v39, %v6267_v12 }
 0x287   : > { %v2343_v60 = vpop.f32.mrb[149].mxu1  ;;  %v2252_v13 = vpop.f32.mrb[150].mxu0  ;;  %v6593_v18 = vadd.f32 %v2341_v20, %v6267_v12  ;;  %v6596_v31 = vadd.f32 %v2250_v0, %v6267_v12 }
 0x288   : > { %v2345_v59 = vpop.f32.mrb[150].mxu1  ;;  %v2254_v7 = vpop.f32.mrb[151].mxu0  ;;  %5018 = vmatmul.mubr.msk.bf16.vlgmr.msra.gmra.mrb[208].mxu0 %vm3068_vm4, %v6400_v8  ;;  %v2616_v32 = vmax.f32 %v6582_v15, 0.0  ;;  %v6600_v45 = vadd.f32 %v2343_v60, %v6267_v12  ;;  %v6603_v33 = vadd.f32 %v2252_v13, %v6276_v30 }
 0x289   : > { %v6579_v11 = vpop.f32.mrb[151].mxu1  ;;  %5022 = vmatmul.mubr.msk.bf16.vlgmr.msra.gmra.mrb[208].mxu1 %vm3068_vm4, %v6400_v8  ;;  %3269 = vmatprep.mubr.bf16.mxu0 %v5288_v34  ;;  %v6608_v41 = vadd.f32 %v2345_v59, %v6276_v30  ;;  %v2255_v3 = vadd.f32 %v2254_v7, %v6276_v30 }
 0x28a   : > { %3342 = vmatprep.mubr.bf16.mxu1 %v5288_v34 }
 0x28d   : > { %v2258_v22 = vpop.f32.mrb[152].mxu0 }
 0x28e   : > { %v2259_v2 = vadd.f32 %v2258_v22, %v6255_v61  ;;  %v2351_v29 = vpop.f32.mrb[152].mxu1  ;;  %v2260_v9 = vpop.f32.mrb[153].mxu0 }
 0x28f   : > { %v2352_v46 = vadd.f32 %v2351_v29, %v6255_v61  ;;  %v2261_v24 = vadd.f32 %v2260_v9, %v6255_v61  ;;  %v2353_v19 = vpop.f32.mrb[153].mxu1  ;;  %v2262_v23 = vpop.f32.mrb[154].mxu0  ;;  %v2619_v29 = vmax.f32 %v6600_v45, 0.0  ;;  %v2632_v9 = vmax.f32 %v6603_v33, 0.0 }
 0x290   : > { %v2648_v55 = vmax.f32 %v2259_v2, 0.0  ;;  %v2354_v58 = vadd.f32 %v2353_v19, %v6255_v61  ;;  %v2263_v16 = vadd.f32 %v2262_v23, %v6257_v62  ;;  %v2355_v28 = vpop.f32.mrb[154].mxu1  ;;  %v2264_v10 = vpop.f32.mrb[155].mxu0  ;;  %5019 = vmatmul.mubr.msk.bf16.gmra.mrb[212].mxu0 %vm3068_vm4, %v6435_v36  ;;  %v2633_v45 = vmax.f32 %v2255_v3, 0.0 }
 0x291   : > { %v2650_v53 = vmax.f32 %v2352_v46, 0.0  ;;  %v2649_v57 = vmax.f32 %v2261_v24, 0.0  ;;  %v2356_v43 = vadd.f32 %v2355_v28, %v6257_v62  ;;  %v2265_v39 = vadd.f32 %v2264_v10, %v6257_v62  ;;  %v2357_v20 = vpop.f32.mrb[155].mxu1  ;;  %5023 = vmatmul.mubr.msk.bf16.gmra.mrb[212].mxu1 %vm3068_vm4, %v6435_v36  ;;  %3279 = vmatprep.mubr.bf16.mxu0 %v5288_v34 }
 0x292   : > { %v6614_v0 = vadd.f32 %v2648_v55, %v2584_v14  ;;  %v2651_v60 = vmax.f32 %v2354_v58, 0.0  ;;  %v2664_v13 = vmax.f32 %v2263_v16, 0.0  ;;  %v2358_v47 = vadd.f32 %v2357_v20, %v6257_v62  ;;  %3352 = vmatprep.mubr.bf16.mxu1 %v5288_v34 }
 0x293   : > { %v6621_v42 = vadd.f32 %v2650_v53, %v2586_v40  ;;  %v6623_v1 = vadd.f32 %v2649_v57, %v2585_v25  ;;  %v2666_v51 = vmax.f32 %v2356_v43, 0.0  ;;  %v2665_v59 = vmax.f32 %v2265_v39, 0.0 }
 0x294   : > { %v6628_v38 = vadd.f32 %v2651_v60, %v2587_v4  ;;  %v6630_v26 = vadd.f32 %v2664_v13, %v2600_v27  ;;  %v2667_v48 = vmax.f32 %v2358_v47, 0.0  ;;  %v2618_v14 = vmax.f32 %v6593_v18, 0.0 }
 0x295   : > { %v2617_v40 = vmax.f32 %v6596_v31, 0.0  ;;  %v6634_v22 = vadd.f32 %v2666_v51, %v2602_v63  ;;  %v6636_v25 = vadd.f32 %v2665_v59, %v2601_v21  ;;  %v2268_v2 = vpop.f32.mrb[156].mxu0  ;;  %v2634_v24 = vmax.f32 %v6608_v41, 0.0 }
 0x296   : > { %v6640_v46 = vadd.f32 %v2667_v48, %v2603_v35  ;;  %v2269_v7 = vadd.f32 %v2268_v2, %v6308_v37  ;;  %v2361_v4 = vpop.f32.mrb[156].mxu1  ;;  %v2270_v27 = vpop.f32.mrb[157].mxu0  ;;  %v2348_v18 = vadd.f32 %v6579_v11, %v6276_v30 }
 0x297   : > { %v2362_v63 = vadd.f32 %v2361_v4, %v6308_v37  ;;  %v2271_v21 = vadd.f32 %v2270_v27, %v6308_v37  ;;  %v2363_v31 = vpop.f32.mrb[157].mxu1  ;;  %v2272_v19 = vpop.f32.mrb[158].mxu0 }
 0x298   : > { %v2680_v23 = vmax.f32 %v2269_v7, 0.0  ;;  %v2364_v35 = vadd.f32 %v2363_v31, %v6308_v37  ;;  %v2273_v33 = vadd.f32 %v2272_v19, %v6315_v17  ;;  %v2365_v55 = vpop.f32.mrb[158].mxu1  ;;  %v2274_v58 = vpop.f32.mrb[159].mxu0  ;;  %5020 = vmatmul.mubr.msk.bf16.gmra.mrb[216].mxu0 %vm3068_vm4, %v6484_v56  ;;  %v2635_v15 = vmax.f32 %v2348_v18, 0.0 }
 0x299   : > { %v2682_v16 = vmax.f32 %v2362_v63, 0.0  ;;  %v2681_v28 = vmax.f32 %v2271_v21, 0.0  ;;  %v2366_v41 = vadd.f32 %v2365_v55, %v6315_v17  ;;  %v2275_v11 = vadd.f32 %v2274_v58, %v6315_v17  ;;  %v2367_v10 = vpop.f32.mrb[159].mxu1  ;;  %5024 = vmatmul.mubr.msk.bf16.gmra.mrb[216].mxu1 %vm3068_vm4, %v6484_v56  ;;  %3289 = vmatprep.mubr.bf16.mxu0 %v5288_v34 }
 0x29a   : > { %v6654_v53 = vadd.f32 %v2680_v23, %v2616_v32  ;;  %v2683_v57 = vmax.f32 %v2364_v35, 0.0  ;;  %v2696_v43 = vmax.f32 %v2273_v33, 0.0  ;;  %v2368_v39 = vadd.f32 %v2367_v10, %v6315_v17  ;;  %3362 = vmatprep.mubr.bf16.mxu1 %v5288_v34 }
 0x29b   : > { %v6661_v20 = vadd.f32 %v2682_v16, %v2618_v14  ;;  %v6663_v60 = vadd.f32 %v2681_v28, %v2617_v40  ;;  %v2698_v13 = vmax.f32 %v2366_v41, 0.0  ;;  %v2697_v47 = vmax.f32 %v2275_v11, 0.0 }
 0x29c   : > { %v6667_v32 = vadd.f32 %v2683_v57, %v2619_v29  ;;  %v6669_v51 = vadd.f32 %v2696_v43, %v2632_v9  ;;  %v2699_v59 = vmax.f32 %v2368_v39, 0.0 }
 0x29d   : > { %v6671_v3 = vadd.f32 %v2698_v13, %v2634_v24  ;;  %v6673_v48 = vadd.f32 %v2697_v47, %v2633_v45  ;;  %v2278_v14 = vpop.f32.mrb[160].mxu0 }
 0x29e   : > { %v6675_v2 = vadd.f32 %v2699_v59, %v2635_v15  ;;  %v2279_v40 = vadd.f32 %v2278_v14, %v6259_v5  ;;  %v2371_v7 = vpop.f32.mrb[160].mxu1  ;;  %v2280_v4 = vpop.f32.mrb[161].mxu0 }
 0x29f   : > { %v2372_v27 = vadd.f32 %v2371_v7, %v6259_v5  ;;  %v2281_v18 = vadd.f32 %v2280_v4, %v6259_v5  ;;  %v2373_v29 = vpop.f32.mrb[161].mxu1  ;;  %v2282_v63 = vpop.f32.mrb[162].mxu0 }
 0x2a0   : > { %v2712_v9 = vmax.f32 %v2279_v40, 0.0  ;;  %v2374_v21 = vadd.f32 %v2373_v29, %v6259_v5  ;;  %v2283_v24 = vadd.f32 %v2282_v63, %v6261_v6  ;;  %v2375_v31 = vpop.f32.mrb[162].mxu1  ;;  %v2284_v19 = vpop.f32.mrb[163].mxu0  ;;  %5021 = vmatmul.mubr.msk.bf16.gmra.mrb[220].mxu0 %vm3068_vm4, %v6524_v44 }
 0x2a1   : > { %v2714_v45 = vmax.f32 %v2372_v27, 0.0  ;;  %v2713_v23 = vmax.f32 %v2281_v18, 0.0  ;;  %v2376_v35 = vadd.f32 %v2375_v31, %v6261_v6  ;;  %v2285_v33 = vadd.f32 %v2284_v19, %v6261_v6  ;;  %v2377_v55 = vpop.f32.mrb[163].mxu1  ;;  %5025 = vmatmul.mubr.msk.bf16.gmra.mrb[220].mxu1 %vm3068_vm4, %v6524_v44  ;;  %3405 = vmatprep.mubr.bf16.mxu0 %v5288_v34 }
 0x2a2   : > { %v2840_v58 = vadd.f32 %v6614_v0, %v2712_v9  ;;  %v2715_v16 = vmax.f32 %v2374_v21, 0.0  ;;  %v2728_v28 = vmax.f32 %v2283_v24, 0.0  ;;  %v2378_v41 = vadd.f32 %v2377_v55, %v6261_v6  ;;  %3478 = vmatprep.mubr.bf16.mxu1 %v5288_v34 }
 0x2a3   : > { %v2842_v11 = vadd.f32 %v6621_v42, %v2714_v45  ;;  %v2841_v10 = vadd.f32 %v6623_v1, %v2713_v23  ;;  %v2730_v57 = vmax.f32 %v2376_v35, 0.0  ;;  %v2729_v43 = vmax.f32 %v2285_v33, 0.0 }
 0x2a4   : > { %v2843_v0 = vadd.f32 %v6628_v38, %v2715_v16  ;;  %v2856_v39 = vadd.f32 %v6630_v26, %v2728_v28  ;;  %v2731_v13 = vmax.f32 %v2378_v41, 0.0  ;;  %v6696_v47 = vmul.f32 0.33333334, %v2840_v58 }
 0x2a5   : > { %v2858_v15 = vadd.f32 %v6634_v22, %v2730_v57  ;;  %v2857_v59 = vadd.f32 %v6636_v25, %v2729_v43  ;;  %v2288_v42 = vpop.f32.mrb[164].mxu0  ;;  %v6700_v14 = vmul.f32 0.33333334, %v2842_v11 }
 0x2a6   : > { %v2920_v1 = vmul.f32 0.33333334, %v2856_v39  ;;  %v2859_v40 = vadd.f32 %v6640_v46, %v2731_v13  ;;  %v2289_v7 = vadd.f32 %v2288_v42, %v6366_v52  ;;  %v2381_v4 = vpop.f32.mrb[164].mxu1  ;;  %v2290_v27 = vpop.f32.mrb[165].mxu0  ;;  %v2905_v39 = vmul.f32 0.33333334, %v2841_v10 }
 0x2a7   : > { %v2922_v38 = vmul.f32 0.33333334, %v2858_v15  ;;  %v2921_v18 = vmul.f32 0.33333334, %v2857_v59  ;;  %v2382_v26 = vadd.f32 %v2381_v4, %v6366_v52  ;;  %v2291_v29 = vadd.f32 %v2290_v27, %v6366_v52  ;;  %v2383_v63 = vpop.f32.mrb[165].mxu1  ;;  %v2292_v22 = vpop.f32.mrb[166].mxu0 }
 0x2a8   : > { %v2976_v25 = vpack.c.bf16 %v2920_v1, %v6696_v47  ;;  %v2923_v9 = vmul.f32 0.33333334, %v2859_v40  ;;  %v2744_v21 = vmax.f32 %v2289_v7, 0.0  ;;  %v2384_v24 = vadd.f32 %v2383_v63, %v6366_v52  ;;  %v2385_v31 = vpop.f32.mrb[166].mxu1  ;;  %v2294_v46 = vpop.f32.mrb[167].mxu0 }
 0x2a9   : > { %v2978_v19 = vpack.c.bf16 %v2922_v38, %v6700_v14  ;;  %v2746_v45 = vmax.f32 %v2382_v26, 0.0  ;;  %v2745_v23 = vmax.f32 %v2291_v29, 0.0  ;;  %v2293_v35 = vadd.f32 %v2292_v22, %v6370_v54  ;;  %v2387_v33 = vpop.f32.mrb[167].mxu1 }
 0x2aa   : > { %v2872_v55 = vadd.f32 %v6654_v53, %v2744_v21  ;;  %v2747_v58 = vmax.f32 %v2384_v24, 0.0  ;;  %v2386_v16 = vadd.f32 %v2385_v31, %v6370_v54  ;;  %v2295_v28 = vadd.f32 %v2294_v46, %v6370_v54 }
 0x2ab   : > { %v2874_v41 = vadd.f32 %v6661_v20, %v2746_v45  ;;  %v2873_v11 = vadd.f32 %v6663_v60, %v2745_v23  ;;  %v2760_v57 = vmax.f32 %v2293_v35, 0.0  ;;  %v2388_v43 = vadd.f32 %v2387_v33, %v6370_v54 }
 0x2ac   : > { %v2875_v13 = vadd.f32 %v6667_v32, %v2747_v58  ;;  %v2762_v47 = vmax.f32 %v2386_v16, 0.0  ;;  %v2761_v15 = vmax.f32 %v2295_v28, 0.0  ;;  %v2907_v59 = vmul.f32 0.33333334, %v2843_v0 }
 0x2ad   : > { %v2888_v53 = vadd.f32 %v6669_v51, %v2760_v57  ;;  %v2763_v42 = vmax.f32 %v2388_v43, 0.0  ;;  %v2424_v14 = vpop.f32.mrb[168].mxu0  ;;  %v2936_v1 = vmul.f32 0.33333334, %v2872_v55  ;;  %v2977_v7 = vpack.c.bf16 %v2921_v18, %v2905_v39 }
 0x2ae   : > { %v2890_v40 = vadd.f32 %v6671_v3, %v2762_v47  ;;  %v2889_v20 = vadd.f32 %v6673_v48, %v2761_v15  ;;  %v2517_v60 = vpop.f32.mrb[168].mxu1  ;;  %v2426_v4 = vpop.f32.mrb[169].mxu0  ;;  %v2938_v27 = vmul.f32 0.33333334, %v2874_v41  ;;  %v2979_v32 = vpack.c.bf16 %v2923_v9, %v2907_v59 }
 0x2af   : > { %v2952_v38 = vmul.f32 0.33333334, %v2888_v53  ;;  %v2891_v10 = vadd.f32 %v6675_v2, %v2763_v42  ;;  %v2519_v26 = vpop.f32.mrb[169].mxu1  ;;  %v2428_v29 = vpop.f32.mrb[170].mxu0  ;;  %3373 = vmatprep.subr.bf16.mxu0 %v2977_v7  ;;  %v2937_v48 = vmul.f32 0.33333334, %v2873_v11  ;;  %v2425_v55 = vadd.f32 %v2424_v14, %v6251_v49 }
 0x2b0   : > { %v2954_v0 = vmul.f32 0.33333334, %v2890_v40  ;;  %v2953_v63 = vmul.f32 0.33333334, %v2889_v20  ;;  %v2521_v51 = vpop.f32.mrb[170].mxu1  ;;  %v2430_v22 = vpop.f32.mrb[171].mxu0  ;;  %3446 = vmatprep.subr.bf16.mxu1 %v2979_v32  ;;  %3374 = vmatpush1.bf16.msra.mxu0 %v2976_v25  ;;  %v2518_v25 = vadd.f32 %v2517_v60, %v6251_v49  ;;  %v2427_v58 = vadd.f32 %v2426_v4, %v6251_v49 }
 0x2b1   : > { %v2992_v21 = vpack.c.bf16 %v2952_v38, %v2936_v1  ;;  %v2955_v24 = vmul.f32 0.33333334, %v2891_v10  ;;  %v2523_v3 = vpop.f32.mrb[171].mxu1  ;;  %v2939_v18 = vmul.f32 0.33333334, %v2875_v13  ;;  %3447 = vmatpush1.bf16.msra.mxu1 %v2978_v19  ;;  %v2520_v16 = vadd.f32 %v2519_v26, %v6251_v49 }
 0x2b2   : > { %v2994_v31 = vpack.c.bf16 %v2954_v0, %v2938_v27  ;;  %v2993_v46 = vpack.c.bf16 %v2953_v63, %v2937_v48  ;;  %v2429_v41 = vadd.f32 %v2428_v29, %v6253_v50  ;;  %v2522_v11 = vadd.f32 %v2521_v51, %v6253_v50 }
 0x2b3   : > { %v2995_v45 = vpack.c.bf16 %v2955_v24, %v2939_v18  ;;  %v2431_v57 = vadd.f32 %v2430_v22, %v6253_v50  ;;  %v6729_v43 = vadd.f32 %v2523_v3, %v6253_v50  ;;  %v2588_v49 = vmax.f32 %v2425_v55, 0.0 }
 0x2b4   : > { %3375 = vmatprep.subr.bf16.mxu0 %v2993_v46  ;;  %v2590_v47 = vmax.f32 %v2518_v25, 0.0  ;;  %v2589_v15 = vmax.f32 %v2427_v58, 0.0  ;;  %v2591_v50 = vmax.f32 %v2520_v16, 0.0  ;;  %v2604_v59 = vmax.f32 %v2429_v41, 0.0 }
 0x2b5   : > { %v2434_v2 = vpop.f32.mrb[172].mxu0  ;;  %3448 = vmatprep.subr.bf16.mxu1 %v2995_v45  ;;  %3376 = vmatpush1.bf16.msra.mxu0 %v2992_v21  ;;  %v2606_v53 = vmax.f32 %v2522_v11, 0.0  ;;  %v2605_v42 = vmax.f32 %v2431_v57, 0.0  ;;  %v2607_v14 = vmax.f32 %v6729_v43, 0.0 }
 0x2b6   : > { %v2527_v9 = vpop.f32.mrb[172].mxu1  ;;  %v2436_v23 = vpop.f32.mrb[173].mxu0  ;;  %3449 = vmatpush1.bf16.msra.mxu1 %v2994_v31  ;;  %v6734_v13 = vadd.f32 %v2434_v2, %v6267_v12 }
 0x2b7   : > { %v2529_v35 = vpop.f32.mrb[173].mxu1  ;;  %v2438_v33 = vpop.f32.mrb[174].mxu0  ;;  %v6745_v20 = vadd.f32 %v2527_v9, %v6267_v12 }
 0x2b8   : > { %v2531_v19 = vpop.f32.mrb[174].mxu1  ;;  %v2440_v28 = vpop.f32.mrb[175].mxu0  ;;  %5026 = vmatmul.mubr.msk.bf16.vlgmr.msra.gmra.mrb[224].mxu0 %vm3068_vm4, %v6400_v8  ;;  %v2620_v40 = vmax.f32 %v6734_v13, 0.0  ;;  %v6752_v27 = vadd.f32 %v2529_v35, %v6267_v12  ;;  %v6755_v38 = vadd.f32 %v2438_v33, %v6276_v30 }
 0x2b9   : > { %v6731_v39 = vpop.f32.mrb[175].mxu1  ;;  %5030 = vmatmul.mubr.msk.bf16.vlgmr.msra.gmra.mrb[224].mxu1 %vm3068_vm4, %v6400_v8  ;;  %3415 = vmatprep.mubr.bf16.mxu0 %v5288_v34  ;;  %v6748_v8 = vadd.f32 %v2436_v23, %v6267_v12  ;;  %v6760_v0 = vadd.f32 %v2531_v19, %v6276_v30  ;;  %v2441_v55 = vadd.f32 %v2440_v28, %v6276_v30 }
 0x2ba   : > { %3488 = vmatprep.mubr.bf16.mxu1 %v5288_v34  ;;  %v2623_v57 = vmax.f32 %v6752_v27, 0.0  ;;  %v2636_v43 = vmax.f32 %v6755_v38, 0.0 }
 0x2bd   : > { %v2444_v1 = vpop.f32.mrb[176].mxu0 }
 0x2be   : > { %v2445_v7 = vadd.f32 %v2444_v1, %v6255_v61  ;;  %v2537_v60 = vpop.f32.mrb[176].mxu1  ;;  %v2446_v4 = vpop.f32.mrb[177].mxu0 }
 0x2bf   : > { %v2538_v10 = vadd.f32 %v2537_v60, %v6255_v61  ;;  %v2447_v32 = vadd.f32 %v2446_v4, %v6255_v61  ;;  %v2539_v26 = vpop.f32.mrb[177].mxu1  ;;  %v2448_v29 = vpop.f32.mrb[178].mxu0 }
 0x2c0   : > { %v2652_v63 = vmax.f32 %v2445_v7, 0.0  ;;  %v2540_v51 = vadd.f32 %v2539_v26, %v6255_v61  ;;  %v2449_v22 = vadd.f32 %v2448_v29, %v6257_v62  ;;  %v2541_v21 = vpop.f32.mrb[178].mxu1  ;;  %v2450_v12 = vpop.f32.mrb[179].mxu0  ;;  %5027 = vmatmul.mubr.msk.bf16.gmra.mrb[228].mxu0 %vm3068_vm4, %v6435_v36 }
 0x2c1   : > { %v2654_v24 = vmax.f32 %v2538_v10, 0.0  ;;  %v2653_v3 = vmax.f32 %v2447_v32, 0.0  ;;  %v2542_v48 = vadd.f32 %v2541_v21, %v6257_v62  ;;  %v2451_v18 = vadd.f32 %v2450_v12, %v6257_v62  ;;  %v2543_v31 = vpop.f32.mrb[179].mxu1  ;;  %5031 = vmatmul.mubr.msk.bf16.gmra.mrb[228].mxu1 %vm3068_vm4, %v6435_v36  ;;  %3425 = vmatprep.mubr.bf16.mxu0 %v5288_v34 }
 0x2c2   : > { %v6766_v46 = vadd.f32 %v2652_v63, %v2588_v49  ;;  %v2655_v45 = vmax.f32 %v2540_v51, 0.0  ;;  %v2668_v2 = vmax.f32 %v2449_v22, 0.0  ;;  %v2544_v61 = vadd.f32 %v2543_v31, %v6257_v62  ;;  %3498 = vmatprep.mubr.bf16.mxu1 %v5288_v34 }
 0x2c3   : > { %v6773_v9 = vadd.f32 %v2654_v24, %v2590_v47  ;;  %v6775_v23 = vadd.f32 %v2653_v3, %v2589_v15  ;;  %v2670_v35 = vmax.f32 %v2542_v48, 0.0  ;;  %v2669_v33 = vmax.f32 %v2451_v18, 0.0 }
 0x2c4   : > { %v6780_v25 = vadd.f32 %v2655_v45, %v2591_v50  ;;  %v6782_v58 = vadd.f32 %v2668_v2, %v2604_v59  ;;  %v2671_v16 = vmax.f32 %v2544_v61, 0.0  ;;  %v2622_v36 = vmax.f32 %v6745_v20, 0.0 }
 0x2c5   : > { %v2621_v62 = vmax.f32 %v6748_v8, 0.0  ;;  %v6786_v19 = vadd.f32 %v2670_v35, %v2606_v53  ;;  %v6788_v41 = vadd.f32 %v2669_v33, %v2605_v42  ;;  %v2454_v11 = vpop.f32.mrb[180].mxu0  ;;  %v2638_v50 = vmax.f32 %v6760_v0, 0.0 }
 0x2c6   : > { %v6792_v49 = vadd.f32 %v2671_v16, %v2607_v14  ;;  %v2455_v28 = vadd.f32 %v2454_v11, %v6308_v37  ;;  %v2547_v47 = vpop.f32.mrb[180].mxu1  ;;  %v2456_v15 = vpop.f32.mrb[181].mxu0  ;;  %v2534_v59 = vadd.f32 %v6731_v39, %v6276_v30  ;;  %v2637_v8 = vmax.f32 %v2441_v55, 0.0 }
 0x2c7   : > { %v2548_v53 = vadd.f32 %v2547_v47, %v6308_v37  ;;  %v2457_v42 = vadd.f32 %v2456_v15, %v6308_v37  ;;  %v2549_v1 = vpop.f32.mrb[181].mxu1  ;;  %v2458_v20 = vpop.f32.mrb[182].mxu0 }
 0x2c8   : > { %v2684_v7 = vmax.f32 %v2455_v28, 0.0  ;;  %v2550_v14 = vadd.f32 %v2549_v1, %v6308_v37  ;;  %v2459_v60 = vadd.f32 %v2458_v20, %v6315_v17  ;;  %v2551_v4 = vpop.f32.mrb[182].mxu1  ;;  %v2460_v27 = vpop.f32.mrb[183].mxu0  ;;  %5028 = vmatmul.mubr.msk.bf16.gmra.mrb[232].mxu0 %vm3068_vm4, %v6484_v56  ;;  %v2639_v13 = vmax.f32 %v2534_v59, 0.0 }
 0x2c9   : > { %v2686_v38 = vmax.f32 %v2548_v53, 0.0  ;;  %v2685_v10 = vmax.f32 %v2457_v42, 0.0  ;;  %v2552_v32 = vadd.f32 %v2551_v4, %v6315_v17  ;;  %v2461_v30 = vadd.f32 %v2460_v27, %v6315_v17  ;;  %v2553_v39 = vpop.f32.mrb[183].mxu1  ;;  %5032 = vmatmul.mubr.msk.bf16.gmra.mrb[232].mxu1 %vm3068_vm4, %v6484_v56  ;;  %3435 = vmatprep.mubr.bf16.mxu0 %v5288_v34 }
 0x2ca   : > { %v6806_v26 = vadd.f32 %v2684_v7, %v2620_v40  ;;  %v2687_v29 = vmax.f32 %v2550_v14, 0.0  ;;  %v2700_v0 = vmax.f32 %v2459_v60, 0.0  ;;  %v2554_v37 = vadd.f32 %v2553_v39, %v6315_v17  ;;  %3508 = vmatprep.mubr.bf16.mxu1 %v5288_v34 }
 0x2cb   : > { %v6813_v63 = vadd.f32 %v2686_v38, %v2622_v36  ;;  %v6815_v51 = vadd.f32 %v2685_v10, %v2621_v62  ;;  %v2702_v22 = vmax.f32 %v2552_v32, 0.0  ;;  %v2701_v21 = vmax.f32 %v2461_v30, 0.0 }
 0x2cc   : > { %v6819_v40 = vadd.f32 %v2687_v29, %v2623_v57  ;;  %v6821_v12 = vadd.f32 %v2700_v0, %v2636_v43  ;;  %v2703_v24 = vmax.f32 %v2554_v37, 0.0 }
 0x2cd   : > { %v6823_v3 = vadd.f32 %v2702_v22, %v2638_v50  ;;  %v6825_v56 = vadd.f32 %v2701_v21, %v2637_v8  ;;  %v2464_v17 = vpop.f32.mrb[184].mxu0 }
 0x2ce   : > { %v6827_v48 = vadd.f32 %v2703_v24, %v2639_v13  ;;  %v2465_v18 = vadd.f32 %v2464_v17, %v6259_v5  ;;  %v2557_v31 = vpop.f32.mrb[184].mxu1  ;;  %v2466_v45 = vpop.f32.mrb[185].mxu0 }
 0x2cf   : > { %v2558_v2 = vadd.f32 %v2557_v31, %v6259_v5  ;;  %v2467_v61 = vadd.f32 %v2466_v45, %v6259_v5  ;;  %v2559_v35 = vpop.f32.mrb[185].mxu1  ;;  %v2468_v33 = vpop.f32.mrb[186].mxu0 }
 0x2d0   : > { %v2716_v55 = vmax.f32 %v2465_v18, 0.0  ;;  %v2560_v16 = vadd.f32 %v2559_v35, %v6259_v5  ;;  %v2469_v36 = vadd.f32 %v2468_v33, %v6261_v6  ;;  %v2561_v62 = vpop.f32.mrb[186].mxu1  ;;  %v2470_v11 = vpop.f32.mrb[187].mxu0  ;;  %5029 = vmatmul.mubr.msk.bf16.gmra.mrb[236].mxu0 %vm3068_vm4, %v6524_v44 }
 0x2d1   : > { %v2718_v57 = vmax.f32 %v2558_v2, 0.0  ;;  %v2717_v43 = vmax.f32 %v2467_v61, 0.0  ;;  %v2562_v28 = vadd.f32 %v2561_v62, %v6261_v6  ;;  %v2471_v47 = vadd.f32 %v2470_v11, %v6261_v6  ;;  %v2563_v15 = vpop.f32.mrb[187].mxu1  ;;  %5033 = vmatmul.mubr.msk.bf16.gmra.mrb[236].mxu1 %vm3068_vm4, %v6524_v44  ;;  %3551 = vmatprep.mubr.bf16.mxu0 %v5288_v34 }
 0x2d2   : > { %v2844_v50 = vadd.f32 %v6766_v46, %v2716_v55  ;;  %v2719_v59 = vmax.f32 %v2560_v16, 0.0  ;;  %v2732_v53 = vmax.f32 %v2469_v36, 0.0  ;;  %v2564_v5 = vadd.f32 %v2563_v15, %v6261_v6  ;;  %3624 = vmatprep.mubr.bf16.mxu1 %v5288_v34 }
 0x2d3   : > { %v2846_v42 = vadd.f32 %v6773_v9, %v2718_v57  ;;  %v2845_v1 = vadd.f32 %v6775_v23, %v2717_v43  ;;  %v2734_v20 = vmax.f32 %v2562_v28, 0.0  ;;  %v2733_v8 = vmax.f32 %v2471_v47, 0.0 }
 0x2d4   : > { %v2847_v46 = vadd.f32 %v6780_v25, %v2719_v59  ;;  %v2860_v7 = vadd.f32 %v6782_v58, %v2732_v53  ;;  %v2735_v14 = vmax.f32 %v2564_v5, 0.0  ;;  %v2908_v60 = vmul.f32 0.33333334, %v2844_v50 }
 0x2d5   : > { %v2862_v44 = vadd.f32 %v6786_v19, %v2734_v20  ;;  %v2861_v6 = vadd.f32 %v6788_v41, %v2733_v8  ;;  %v2474_v4 = vpop.f32.mrb[188].mxu0  ;;  %v2910_v9 = vmul.f32 0.33333334, %v2846_v42  ;;  %v2909_v36 = vmul.f32 0.33333334, %v2845_v1 }
 0x2d6   : > { %v2924_v27 = vmul.f32 0.33333334, %v2860_v7  ;;  %v2863_v23 = vadd.f32 %v6792_v49, %v2735_v14  ;;  %v2475_v38 = vadd.f32 %v2474_v4, %v6366_v52  ;;  %v2567_v10 = vpop.f32.mrb[188].mxu1  ;;  %v2476_v32 = vpop.f32.mrb[189].mxu0  ;;  %v2911_v43 = vmul.f32 0.33333334, %v2847_v46 }
 0x2d7   : > { %v2926_v30 = vmul.f32 0.33333334, %v2862_v44  ;;  %v2925_v39 = vmul.f32 0.33333334, %v2861_v6  ;;  %v2568_v25 = vadd.f32 %v2567_v10, %v6366_v52  ;;  %v2477_v58 = vadd.f32 %v2476_v32, %v6366_v52  ;;  %v2569_v29 = vpop.f32.mrb[189].mxu1  ;;  %v2478_v0 = vpop.f32.mrb[190].mxu0 }
 0x2d8   : > { %v2980_v19 = vpack.c.bf16 %v2924_v27, %v2908_v60  ;;  %v2927_v37 = vmul.f32 0.33333334, %v2863_v23  ;;  %v2748_v41 = vmax.f32 %v2475_v38, 0.0  ;;  %v2570_v22 = vadd.f32 %v2569_v29, %v6366_v52  ;;  %v2571_v21 = vpop.f32.mrb[190].mxu1  ;;  %v2480_v13 = vpop.f32.mrb[191].mxu0  ;;  %v5189_v7 = vld [vmem:[%s7498_s5 + $0x10] sm:$0xff]  }
 0x2d9   : > { %v2982_v49 = vpack.c.bf16 %v2926_v30, %v2910_v9  ;;  %v2750_v24 = vmax.f32 %v2568_v25, 0.0  ;;  %v2749_v17 = vmax.f32 %v2477_v58, 0.0  ;;  %v2479_v18 = vadd.f32 %v2478_v0, %v6370_v54  ;;  %v2573_v31 = vpop.f32.mrb[191].mxu1  ;;  %v5190_v14 = vld [vmem:[%s7498_s5 + $0x18] sm:$0xff]   ;;  %v6895_v60 = vpop.permute.xlu0 %3010 }
 0x2da   : > { %v2876_v45 = vadd.f32 %v6806_v26, %v2748_v41  ;;  %v2751_v2 = vmax.f32 %v2570_v22, 0.0  ;;  %v2572_v61 = vadd.f32 %v2571_v21, %v6370_v54  ;;  %v2481_v35 = vadd.f32 %v2480_v13, %v6370_v54  ;;  %v6897_v44 = vpop.permute.xlu1 %3015 }
 0x2db   : > { %v2878_v33 = vadd.f32 %v6813_v63, %v2750_v24  ;;  %v2877_v55 = vadd.f32 %v6815_v51, %v2749_v17  ;;  %v2764_v52 = vmax.f32 %v2479_v18, 0.0  ;;  %v2574_v16 = vadd.f32 %v2573_v31, %v6370_v54 }
 0x2dc   : > { %v2879_v62 = vadd.f32 %v6819_v40, %v2751_v2  ;;  %v2766_v11 = vmax.f32 %v2572_v61, 0.0  ;;  %v2765_v57 = vmax.f32 %v2481_v35, 0.0  ;;  %v2940_v47 = vmul.f32 0.33333334, %v2876_v45 }
 0x2dd   : > { %v2892_v26 = vadd.f32 %v6821_v12, %v2764_v52  ;;  %v2767_v28 = vmax.f32 %v2574_v16, 0.0  ;;  %v2981_v63 = vpack.c.bf16 %v2925_v39, %v2909_v36  ;;  %v2942_v59 = vmul.f32 0.33333334, %v2878_v33  ;;  %v6907_v31 = vpop.permute.xlu0 %3020 }
 0x2de   : > { %v2894_v15 = vadd.f32 %v6823_v3, %v2766_v11  ;;  %v2893_v50 = vadd.f32 %v6825_v56, %v2765_v57  ;;  %v2983_v54 = vpack.c.bf16 %v2927_v37, %v2911_v43  ;;  %v2941_v5 = vmul.f32 0.33333334, %v2877_v55  ;;  %v5187_v56 = vld [vmem:[%s7498_s5] sm:$0xff]   ;;  %v6909_v45 = vpop.permute.xlu1 %3025 }
 0x2df   : > { %v2956_v51 = vmul.f32 0.33333334, %v2892_v26  ;;  %v2895_v53 = vadd.f32 %v6827_v48, %v2767_v28  ;;  %3519 = vmatprep.subr.bf16.mxu0 %v2981_v63  ;;  %v2943_v1 = vmul.f32 0.33333334, %v2879_v62  ;;  %v5188_v48 = vld [vmem:[%s7498_s5 + $0x8] sm:$0xff]  }
 0x2e0   : > { %v2958_v42 = vmul.f32 0.33333334, %v2894_v15  ;;  %v2957_v40 = vmul.f32 0.33333334, %v2893_v50  ;;  %3592 = vmatprep.subr.bf16.mxu1 %v2983_v54  ;;  %3520 = vmatpush1.bf16.msra.mxu0 %v2980_v19 }
 0x2e1   : > { %v2996_v20 = vpack.c.bf16 %v2956_v51, %v2940_v47  ;;  %v2959_v8 = vmul.f32 0.33333334, %v2895_v53  ;;  %3593 = vmatpush1.bf16.msra.mxu1 %v2982_v49 }
 0x2e2   : > { %v2998_v12 = vpack.c.bf16 %v2958_v42, %v2942_v59  ;;  %v2997_v3 = vpack.c.bf16 %v2957_v40, %v2941_v5 }
 0x2e3   : > { %v2999_v46 = vpack.c.bf16 %v2959_v8, %v2943_v1 }
 0x2e4   : > { %3521 = vmatprep.subr.bf16.mxu0 %v2997_v3  ;;  %v6921_v3 = vpop.permute.xlu1 %3035 }
 0x2e5   : > { %3594 = vmatprep.subr.bf16.mxu1 %v2999_v46  ;;  %3522 = vmatpush1.bf16.msra.mxu0 %v2996_v20 }
 0x2e6   : > { %3595 = vmatpush1.bf16.msra.mxu1 %v2998_v12  ;;  %v6919_v12 = vpop.permute.xlu0 %3030 }
 0x2e8   : > { %5034 = vmatmul.mubr.msk.bf16.vlgmr.msra.gmra.mrb[240].mxu0 %vm3068_vm4, %v5187_v56 }
 0x2e9   : > { %5038 = vmatmul.mubr.msk.bf16.vlgmr.msra.gmra.mrb[240].mxu1 %vm3068_vm4, %v5187_v56  ;;  %3561 = vmatprep.mubr.bf16.mxu0 %v5288_v34 }
 0x2ea   : > { %3634 = vmatprep.mubr.bf16.mxu1 %v5288_v34 }
 0x2f0   : > { %5035 = vmatmul.mubr.msk.bf16.gmra.mrb[244].mxu0 %vm3068_vm4, %v5188_v48 }
 0x2f1   : > { %5039 = vmatmul.mubr.msk.bf16.gmra.mrb[244].mxu1 %vm3068_vm4, %v5188_v48  ;;  %3571 = vmatprep.mubr.bf16.mxu0 %v5288_v34 }
 0x2f2   : > { %3644 = vmatprep.mubr.bf16.mxu1 %v5288_v34 }
 0x2f8   : > { %5036 = vmatmul.mubr.msk.bf16.gmra.mrb[248].mxu0 %vm3068_vm4, %v5189_v7 }
 0x2f9   : > { %5040 = vmatmul.mubr.msk.bf16.gmra.mrb[248].mxu1 %vm3068_vm4, %v5189_v7  ;;  %3581 = vmatprep.mubr.bf16.mxu0 %v5288_v34 }
 0x2fa   : > { %3654 = vmatprep.mubr.bf16.mxu1 %v5288_v34 }
 0x300   : > { %5037 = vmatmul.mubr.msk.bf16.gmra.mrb[252].mxu0 %vm3068_vm4, %v5190_v14 }
 0x301   : > { %5041 = vmatmul.mubr.msk.bf16.gmra.mrb[252].mxu1 %vm3068_vm4, %v5190_v14  ;;  %3978 = vmatprep.mubr.bf16.mxu0 %v5288_v34 }
 0x302   : > { %4051 = vmatprep.mubr.bf16.mxu1 %v5288_v34 }
 0x32b   : > { %v3115_v6 = vpop.f32.mrb[192].mxu0 }
 0x32c   : > { %v3188_v4 = vpop.f32.mrb[192].mxu1  ;;  %v3116_v9 = vadd.f32 %v3115_v6, %v6895_v60  ;;  %v3117_v23 = vpop.f32.mrb[193].mxu0 }
 0x32d   : > { %v3189_v27 = vadd.f32 %v3188_v4, %v6895_v60  ;;  %v3190_v38 = vpop.f32.mrb[193].mxu1  ;;  %v3118_v10 = vadd.f32 %v3117_v23, %v6895_v60  ;;  %v3119_v30 = vpop.f32.mrb[194].mxu0 }
 0x32e   : > { %v3191_v32 = vadd.f32 %v3190_v38, %v6895_v60  ;;  %v3192_v39 = vpop.f32.mrb[194].mxu1  ;;  %v3120_v25 = vadd.f32 %v3119_v30, %v6897_v44  ;;  %v3121_v29 = vpop.f32.mrb[195].mxu0  ;;  %v3665_v41 = vmax.f32 %v3116_v9, 0.0 }
 0x32f   : > { %v3193_v58 = vadd.f32 %v3192_v39, %v6897_v44  ;;  %v3194_v0 = vpop.f32.mrb[195].mxu1  ;;  %v3122_v19 = vadd.f32 %v3121_v29, %v6897_v44  ;;  %v3667_v22 = vmax.f32 %v3189_v27, 0.0  ;;  %v3666_v49 = vmax.f32 %v3118_v10, 0.0 }
 0x330   : > { %v3195_v37 = vadd.f32 %v3194_v0, %v6897_v44  ;;  %v3681_v21 = vmax.f32 %v3120_v25, 0.0  ;;  %v3668_v24 = vmax.f32 %v3191_v32, 0.0 }
 0x331   : > { %v3683_v13 = vmax.f32 %v3193_v58, 0.0  ;;  %v3682_v17 = vmax.f32 %v3122_v19, 0.0 }
 0x332   : > { %v3684_v18 = vmax.f32 %v3195_v37, 0.0  ;;  %v3801_v2 = vpack.c.bf16 %v3681_v21, %v3665_v41 }
 0x333   : > { %v3803_v61 = vpack.c.bf16 %v3683_v13, %v3667_v22  ;;  %v3802_v35 = vpack.c.bf16 %v3682_v17, %v3666_v49  ;;  %v3125_v55 = vpop.f32.mrb[196].mxu0 }
 0x334   : > { %v3804_v33 = vpack.c.bf16 %v3684_v18, %v3668_v24  ;;  %v3198_v52 = vpop.f32.mrb[196].mxu1  ;;  %v3126_v16 = vadd.f32 %v3125_v55, %v6907_v31  ;;  %v3127_v62 = vpop.f32.mrb[197].mxu0 }
 0x335   : > { %v3199_v36 = vadd.f32 %v3198_v52, %v6907_v31  ;;  %v3200_v11 = vpop.f32.mrb[197].mxu1  ;;  %v3128_v57 = vadd.f32 %v3127_v62, %v6907_v31  ;;  %v3129_v26 = vpop.f32.mrb[198].mxu0  ;;  %3946 = vmatprep.subr.bf16.mxu0 %v3802_v35 }
 0x336   : > { %v3201_v43 = vadd.f32 %v3200_v11, %v6907_v31  ;;  %v3202_v28 = vpop.f32.mrb[198].mxu1  ;;  %4019 = vmatprep.subr.bf16.mxu1 %v3804_v33  ;;  %v3130_v47 = vadd.f32 %v3129_v26, %v6909_v45  ;;  %v3131_v50 = vpop.f32.mrb[199].mxu0  ;;  %3947 = vmatpush1.bf16.msra.mxu0 %v3801_v2  ;;  %v3697_v53 = vmax.f32 %v3126_v16, 0.0 }
 0x337   : > { %v3203_v15 = vadd.f32 %v3202_v28, %v6909_v45  ;;  %v3204_v63 = vpop.f32.mrb[199].mxu1  ;;  %4020 = vmatpush1.bf16.msra.mxu1 %v3803_v61  ;;  %v3132_v59 = vadd.f32 %v3131_v50, %v6909_v45  ;;  %v3699_v54 = vmax.f32 %v3199_v36, 0.0  ;;  %v3698_v40 = vmax.f32 %v3128_v57, 0.0  ;;  %v6931_v18 = vpop.permute.xlu0 %3040 }
 0x338   : > { %v3205_v51 = vadd.f32 %v3204_v63, %v6909_v45  ;;  %v3713_v5 = vmax.f32 %v3130_v47, 0.0  ;;  %v3700_v1 = vmax.f32 %v3201_v43, 0.0  ;;  %v6933_v2 = vpop.permute.xlu1 %3045 }
 0x339   : > { %v3715_v42 = vmax.f32 %v3203_v15, 0.0  ;;  %v3714_v20 = vmax.f32 %v3132_v59, 0.0 }
 0x33a   : > { %v3716_v8 = vmax.f32 %v3205_v51, 0.0  ;;  %v3817_v46 = vpack.c.bf16 %v3713_v5, %v3697_v53 }
 0x33b   : > { %v3819_v56 = vpack.c.bf16 %v3715_v42, %v3699_v54  ;;  %v3818_v48 = vpack.c.bf16 %v3714_v20, %v3698_v40  ;;  %v3135_v14 = vpop.f32.mrb[200].mxu0 }
 0x33c   : > { %v3820_v7 = vpack.c.bf16 %v3716_v8, %v3700_v1  ;;  %v3208_v6 = vpop.f32.mrb[200].mxu1  ;;  %v3136_v4 = vadd.f32 %v3135_v14, %v6919_v12  ;;  %v3137_v27 = vpop.f32.mrb[201].mxu0 }
 0x33d   : > { %v3209_v9 = vadd.f32 %v3208_v6, %v6919_v12  ;;  %v3210_v23 = vpop.f32.mrb[201].mxu1  ;;  %v3138_v38 = vadd.f32 %v3137_v27, %v6919_v12  ;;  %v3139_v32 = vpop.f32.mrb[202].mxu0  ;;  %3948 = vmatprep.subr.bf16.mxu0 %v3818_v48  ;;  %v6946_v6 = vld [vmem:[%s7500_s7] sm:$0xff]  }
 0x33e   : > { %v3211_v10 = vadd.f32 %v3210_v23, %v6919_v12  ;;  %v3212_v30 = vpop.f32.mrb[202].mxu1  ;;  %4021 = vmatprep.subr.bf16.mxu1 %v3820_v7  ;;  %v3140_v39 = vadd.f32 %v3139_v32, %v6921_v3  ;;  %v3141_v58 = vpop.f32.mrb[203].mxu0  ;;  %3949 = vmatpush1.bf16.msra.mxu0 %v3817_v46  ;;  %v3729_v37 = vmax.f32 %v3136_v4, 0.0  ;;  %v6957_v4 = vld [vmem:[%s7500_s7 + $0x8] sm:$0xff]  }
 0x33f   : > { %v3213_v25 = vadd.f32 %v3212_v30, %v6921_v3  ;;  %v3214_v29 = vpop.f32.mrb[203].mxu1  ;;  %4022 = vmatpush1.bf16.msra.mxu1 %v3819_v56  ;;  %v3142_v0 = vadd.f32 %v3141_v58, %v6921_v3  ;;  %v3731_v41 = vmax.f32 %v3209_v9, 0.0  ;;  %v3730_v13 = vmax.f32 %v3138_v38, 0.0 }
 0x340   : > { %v3215_v19 = vadd.f32 %v3214_v29, %v6921_v3  ;;  %v3745_v22 = vmax.f32 %v3140_v39, 0.0  ;;  %v3732_v49 = vmax.f32 %v3211_v10, 0.0  ;;  %v6972_v29 = vld [vmem:[%s7500_s7 + $0x10] sm:$0xff]  }
 0x341   : > { %v3747_v21 = vmax.f32 %v3213_v25, 0.0  ;;  %v3746_v24 = vmax.f32 %v3142_v0, 0.0 }
 0x342   : > { %v3748_v17 = vmax.f32 %v3215_v19, 0.0  ;;  %v3833_v61 = vpack.c.bf16 %v3745_v22, %v3729_v37 }
 0x343   : > { %v3835_v35 = vpack.c.bf16 %v3747_v21, %v3731_v41  ;;  %v3834_v33 = vpack.c.bf16 %v3746_v24, %v3730_v13  ;;  %v3145_v52 = vpop.f32.mrb[204].mxu0 }
 0x344   : > { %v3836_v55 = vpack.c.bf16 %v3748_v17, %v3732_v49  ;;  %v3218_v16 = vpop.f32.mrb[204].mxu1  ;;  %v3146_v36 = vadd.f32 %v3145_v52, %v6931_v18  ;;  %v3147_v11 = vpop.f32.mrb[205].mxu0 }
 0x345   : > { %v3219_v62 = vadd.f32 %v3218_v16, %v6931_v18  ;;  %v3220_v57 = vpop.f32.mrb[205].mxu1  ;;  %v3148_v43 = vadd.f32 %v3147_v11, %v6931_v18  ;;  %v3149_v28 = vpop.f32.mrb[206].mxu0  ;;  %3950 = vmatprep.subr.bf16.mxu0 %v3834_v33 }
 0x346   : > { %v3221_v26 = vadd.f32 %v3220_v57, %v6931_v18  ;;  %v3222_v47 = vpop.f32.mrb[206].mxu1  ;;  %4023 = vmatprep.subr.bf16.mxu1 %v3836_v55  ;;  %v3150_v15 = vadd.f32 %v3149_v28, %v6933_v2  ;;  %v3151_v63 = vpop.f32.mrb[207].mxu0  ;;  %3951 = vmatpush1.bf16.msra.mxu0 %v3833_v61  ;;  %v3761_v54 = vmax.f32 %v3146_v36, 0.0 }
 0x347   : > { %v3223_v50 = vadd.f32 %v3222_v47, %v6933_v2  ;;  %v3224_v59 = vpop.f32.mrb[207].mxu1  ;;  %4024 = vmatpush1.bf16.msra.mxu1 %v3835_v35  ;;  %v3152_v51 = vadd.f32 %v3151_v63, %v6933_v2  ;;  %v3763_v5 = vmax.f32 %v3219_v62, 0.0  ;;  %v3762_v1 = vmax.f32 %v3148_v43, 0.0 }
 0x348   : > { %v3225_v53 = vadd.f32 %v3224_v59, %v6933_v2  ;;  %v3777_v42 = vmax.f32 %v3150_v15, 0.0  ;;  %v3764_v20 = vmax.f32 %v3221_v26, 0.0 }
 0x349   : > { %v3779_v40 = vmax.f32 %v3223_v50, 0.0  ;;  %v3778_v8 = vmax.f32 %v3152_v51, 0.0  ;;  %v6991_v51 = vld [vmem:[%s7500_s7 + $0x18] sm:$0xff]  }
 0x34a   : > { %v3780_v46 = vmax.f32 %v3225_v53, 0.0  ;;  %v3849_v56 = vpack.c.bf16 %v3777_v42, %v3761_v54 }
 0x34b   : > { %v3851_v48 = vpack.c.bf16 %v3779_v40, %v3763_v5  ;;  %v3850_v7 = vpack.c.bf16 %v3778_v8, %v3762_v1 }
 0x34c   : > { %v3852_v14 = vpack.c.bf16 %v3780_v46, %v3764_v20 }
 0x34d   : > { %3952 = vmatprep.subr.bf16.mxu0 %v3850_v7 }
 0x34e   : > { %4025 = vmatprep.subr.bf16.mxu1 %v3852_v14  ;;  %3953 = vmatpush1.bf16.msra.mxu0 %v3849_v56 }
 0x34f   : > { %4026 = vmatpush1.bf16.msra.mxu1 %v3851_v48 }
 0x351   : > { %5046 = vmatmul.mubr.msk.bf16.vlgmr.msra.gmra.mrb[0].mxu0 %vm3933_vm5, %v6946_v6 }
 0x352   : > { %5050 = vmatmul.mubr.msk.bf16.vlgmr.msra.gmra.mrb[0].mxu1 %vm3933_vm5, %v6946_v6  ;;  %3988 = vmatprep.mubr.bf16.mxu0 %v5288_v34 }
 0x353   : > { %4061 = vmatprep.mubr.bf16.mxu1 %v5288_v34 }
 0x359   : > { %5047 = vmatmul.mubr.msk.bf16.gmra.mrb[4].mxu0 %vm3933_vm5, %v6957_v4 }
 0x35a   : > { %5051 = vmatmul.mubr.msk.bf16.gmra.mrb[4].mxu1 %vm3933_vm5, %v6957_v4  ;;  %3998 = vmatprep.mubr.bf16.mxu0 %v5288_v34 }
 0x35b   : > { %4071 = vmatprep.mubr.bf16.mxu1 %v5288_v34  ;;  %v3261_v9 = vpop.f32.mrb[208].mxu0 }
 0x35c   : > { %v3334_v27 = vpop.f32.mrb[208].mxu1  ;;  %v3262_v23 = vadd.f32 %v3261_v9, %v6895_v60  ;;  %v3263_v10 = vpop.f32.mrb[209].mxu0 }
 0x35d   : > { %v3335_v38 = vadd.f32 %v3334_v27, %v6895_v60  ;;  %v3336_v32 = vpop.f32.mrb[209].mxu1  ;;  %v3264_v30 = vadd.f32 %v3263_v10, %v6895_v60  ;;  %v3265_v25 = vpop.f32.mrb[210].mxu0 }
 0x35e   : > { %v3337_v39 = vadd.f32 %v3336_v32, %v6895_v60  ;;  %v3338_v58 = vpop.f32.mrb[210].mxu1  ;;  %v3266_v0 = vadd.f32 %v3265_v25, %v6897_v44  ;;  %v3267_v37 = vpop.f32.mrb[211].mxu0  ;;  %v3669_v13 = vmax.f32 %v3262_v23, 0.0 }
 0x35f   : > { %v3339_v19 = vadd.f32 %v3338_v58, %v6897_v44  ;;  %v3340_v41 = vpop.f32.mrb[211].mxu1  ;;  %v3268_v22 = vadd.f32 %v3267_v37, %v6897_v44  ;;  %v3671_v49 = vmax.f32 %v3335_v38, 0.0  ;;  %v3670_v61 = vmax.f32 %v3264_v30, 0.0 }
 0x360   : > { %v3341_v21 = vadd.f32 %v3340_v41, %v6897_v44  ;;  %v3685_v24 = vmax.f32 %v3266_v0, 0.0  ;;  %v3672_v35 = vmax.f32 %v3337_v39, 0.0 }
 0x361   : > { %v3687_v17 = vmax.f32 %v3339_v19, 0.0  ;;  %v3686_v33 = vmax.f32 %v3268_v22, 0.0  ;;  %5048 = vmatmul.mubr.msk.bf16.gmra.mrb[8].mxu0 %vm3933_vm5, %v6972_v29 }
 0x362   : > { %v3688_v55 = vmax.f32 %v3341_v21, 0.0  ;;  %5052 = vmatmul.mubr.msk.bf16.gmra.mrb[8].mxu1 %vm3933_vm5, %v6972_v29  ;;  %v3805_v52 = vpack.c.bf16 %v3685_v24, %v3669_v13  ;;  %4008 = vmatprep.mubr.bf16.mxu0 %v5288_v34 }
 0x363   : > { %v3807_v16 = vpack.c.bf16 %v3687_v17, %v3671_v49  ;;  %4081 = vmatprep.mubr.bf16.mxu1 %v5288_v34  ;;  %v3806_v36 = vpack.c.bf16 %v3686_v33, %v3670_v61  ;;  %v3271_v11 = vpop.f32.mrb[212].mxu0 }
 0x364   : > { %v3808_v62 = vpack.c.bf16 %v3688_v55, %v3672_v35  ;;  %v3344_v57 = vpop.f32.mrb[212].mxu1  ;;  %v3272_v43 = vadd.f32 %v3271_v11, %v6907_v31  ;;  %v3273_v28 = vpop.f32.mrb[213].mxu0 }
 0x365   : > { %v3345_v26 = vadd.f32 %v3344_v57, %v6907_v31  ;;  %v3346_v47 = vpop.f32.mrb[213].mxu1  ;;  %v3274_v15 = vadd.f32 %v3273_v28, %v6907_v31  ;;  %v3275_v63 = vpop.f32.mrb[214].mxu0  ;;  %4092 = vmatprep.subr.bf16.mxu0 %v3806_v36 }
 0x366   : > { %v3347_v50 = vadd.f32 %v3346_v47, %v6907_v31  ;;  %v3348_v59 = vpop.f32.mrb[214].mxu1  ;;  %4165 = vmatprep.subr.bf16.mxu1 %v3808_v62  ;;  %v3276_v53 = vadd.f32 %v3275_v63, %v6909_v45  ;;  %v3277_v5 = vpop.f32.mrb[215].mxu0  ;;  %4093 = vmatpush1.bf16.msra.mxu0 %v3805_v52  ;;  %v3701_v20 = vmax.f32 %v3272_v43, 0.0 }
 0x367   : > { %v3349_v54 = vadd.f32 %v3348_v59, %v6909_v45  ;;  %v3350_v42 = vpop.f32.mrb[215].mxu1  ;;  %4166 = vmatpush1.bf16.msra.mxu1 %v3807_v16  ;;  %v3278_v40 = vadd.f32 %v3277_v5, %v6909_v45  ;;  %v3703_v8 = vmax.f32 %v3345_v26, 0.0  ;;  %v3702_v48 = vmax.f32 %v3274_v15, 0.0 }
 0x368   : > { %v3351_v1 = vadd.f32 %v3350_v42, %v6909_v45  ;;  %v3717_v46 = vmax.f32 %v3276_v53, 0.0  ;;  %v3704_v7 = vmax.f32 %v3347_v50, 0.0 }
 0x369   : > { %v3719_v56 = vmax.f32 %v3349_v54, 0.0  ;;  %v3718_v14 = vmax.f32 %v3278_v40, 0.0  ;;  %5049 = vmatmul.mubr.msk.bf16.gmra.mrb[12].mxu0 %vm3933_vm5, %v6991_v51 }
 0x36a   : > { %v3720_v9 = vmax.f32 %v3351_v1, 0.0  ;;  %5053 = vmatmul.mubr.msk.bf16.gmra.mrb[12].mxu1 %vm3933_vm5, %v6991_v51  ;;  %v3821_v27 = vpack.c.bf16 %v3717_v46, %v3701_v20  ;;  %4124 = vmatprep.mubr.bf16.mxu0 %v5288_v34 }
 0x36b   : > { %v3823_v23 = vpack.c.bf16 %v3719_v56, %v3703_v8  ;;  %4197 = vmatprep.mubr.bf16.mxu1 %v5288_v34  ;;  %v3822_v38 = vpack.c.bf16 %v3718_v14, %v3702_v48  ;;  %v3281_v32 = vpop.f32.mrb[216].mxu0 }
 0x36c   : > { %v3824_v10 = vpack.c.bf16 %v3720_v9, %v3704_v7  ;;  %v3354_v30 = vpop.f32.mrb[216].mxu1  ;;  %v3282_v39 = vadd.f32 %v3281_v32, %v6919_v12  ;;  %v3283_v58 = vpop.f32.mrb[217].mxu0 }
 0x36d   : > { %v3355_v25 = vadd.f32 %v3354_v30, %v6919_v12  ;;  %v3356_v0 = vpop.f32.mrb[217].mxu1  ;;  %v3284_v19 = vadd.f32 %v3283_v58, %v6919_v12  ;;  %v3285_v41 = vpop.f32.mrb[218].mxu0  ;;  %4094 = vmatprep.subr.bf16.mxu0 %v3822_v38 }
 0x36e   : > { %v3357_v37 = vadd.f32 %v3356_v0, %v6919_v12  ;;  %v3358_v22 = vpop.f32.mrb[218].mxu1  ;;  %4167 = vmatprep.subr.bf16.mxu1 %v3824_v10  ;;  %v3286_v21 = vadd.f32 %v3285_v41, %v6921_v3  ;;  %v3287_v49 = vpop.f32.mrb[219].mxu0  ;;  %4095 = vmatpush1.bf16.msra.mxu0 %v3821_v27  ;;  %v3733_v35 = vmax.f32 %v3282_v39, 0.0 }
 0x36f   : > { %v3359_v13 = vadd.f32 %v3358_v22, %v6921_v3  ;;  %v3360_v24 = vpop.f32.mrb[219].mxu1  ;;  %4168 = vmatpush1.bf16.msra.mxu1 %v3823_v23  ;;  %v3288_v17 = vadd.f32 %v3287_v49, %v6921_v3  ;;  %v3735_v33 = vmax.f32 %v3355_v25, 0.0  ;;  %v3734_v16 = vmax.f32 %v3284_v19, 0.0 }
 0x370   : > { %v3361_v61 = vadd.f32 %v3360_v24, %v6921_v3  ;;  %v3749_v55 = vmax.f32 %v3286_v21, 0.0  ;;  %v3736_v36 = vmax.f32 %v3357_v37, 0.0 }
 0x371   : > { %v3751_v52 = vmax.f32 %v3359_v13, 0.0  ;;  %v3750_v62 = vmax.f32 %v3288_v17, 0.0 }
 0x372   : > { %v3752_v11 = vmax.f32 %v3361_v61, 0.0  ;;  %v3837_v57 = vpack.c.bf16 %v3749_v55, %v3733_v35 }
 0x373   : > { %v3839_v43 = vpack.c.bf16 %v3751_v52, %v3735_v33  ;;  %v3838_v26 = vpack.c.bf16 %v3750_v62, %v3734_v16  ;;  %v3291_v47 = vpop.f32.mrb[220].mxu0 }
 0x374   : > { %v3840_v28 = vpack.c.bf16 %v3752_v11, %v3736_v36  ;;  %v3364_v15 = vpop.f32.mrb[220].mxu1  ;;  %v3292_v50 = vadd.f32 %v3291_v47, %v6931_v18  ;;  %v3293_v59 = vpop.f32.mrb[221].mxu0 }
 0x375   : > { %v3365_v63 = vadd.f32 %v3364_v15, %v6931_v18  ;;  %v3366_v53 = vpop.f32.mrb[221].mxu1  ;;  %v3294_v54 = vadd.f32 %v3293_v59, %v6931_v18  ;;  %v3295_v42 = vpop.f32.mrb[222].mxu0  ;;  %4096 = vmatprep.subr.bf16.mxu0 %v3838_v26 }
 0x376   : > { %v3367_v5 = vadd.f32 %v3366_v53, %v6931_v18  ;;  %v3368_v40 = vpop.f32.mrb[222].mxu1  ;;  %4169 = vmatprep.subr.bf16.mxu1 %v3840_v28  ;;  %v3296_v1 = vadd.f32 %v3295_v42, %v6933_v2  ;;  %v3297_v8 = vpop.f32.mrb[223].mxu0  ;;  %4097 = vmatpush1.bf16.msra.mxu0 %v3837_v57  ;;  %v3765_v7 = vmax.f32 %v3292_v50, 0.0 }
 0x377   : > { %v3369_v20 = vadd.f32 %v3368_v40, %v6933_v2  ;;  %v3370_v46 = vpop.f32.mrb[223].mxu1  ;;  %4170 = vmatpush1.bf16.msra.mxu1 %v3839_v43  ;;  %v3298_v56 = vadd.f32 %v3297_v8, %v6933_v2  ;;  %v3767_v14 = vmax.f32 %v3365_v63, 0.0  ;;  %v3766_v23 = vmax.f32 %v3294_v54, 0.0 }
 0x378   : > { %v3371_v48 = vadd.f32 %v3370_v46, %v6933_v2  ;;  %v3781_v9 = vmax.f32 %v3296_v1, 0.0  ;;  %v3768_v38 = vmax.f32 %v3367_v5, 0.0 }
 0x379   : > { %v3783_v27 = vmax.f32 %v3369_v20, 0.0  ;;  %v3782_v10 = vmax.f32 %v3298_v56, 0.0 }
 0x37a   : > { %v3784_v32 = vmax.f32 %v3371_v48, 0.0  ;;  %v3853_v30 = vpack.c.bf16 %v3781_v9, %v3765_v7 }
 0x37b   : > { %v3855_v39 = vpack.c.bf16 %v3783_v27, %v3767_v14  ;;  %v3854_v25 = vpack.c.bf16 %v3782_v10, %v3766_v23 }
 0x37c   : > { %v3856_v58 = vpack.c.bf16 %v3784_v32, %v3768_v38 }
 0x37d   : > { %4098 = vmatprep.subr.bf16.mxu0 %v3854_v25 }
 0x37e   : > { %4171 = vmatprep.subr.bf16.mxu1 %v3856_v58  ;;  %4099 = vmatpush1.bf16.msra.mxu0 %v3853_v30 }
 0x37f   : > { %4172 = vmatpush1.bf16.msra.mxu1 %v3855_v39 }
 0x381   : > { %5054 = vmatmul.mubr.msk.bf16.vlgmr.msra.gmra.mrb[16].mxu0 %vm3933_vm5, %v6946_v6 }
 0x382   : > { %5058 = vmatmul.mubr.msk.bf16.vlgmr.msra.gmra.mrb[16].mxu1 %vm3933_vm5, %v6946_v6  ;;  %4134 = vmatprep.mubr.bf16.mxu0 %v5288_v34 }
 0x383   : > { %4207 = vmatprep.mubr.bf16.mxu1 %v5288_v34 }
 0x389   : > { %5055 = vmatmul.mubr.msk.bf16.gmra.mrb[20].mxu0 %vm3933_vm5, %v6957_v4 }
 0x38a   : > { %5059 = vmatmul.mubr.msk.bf16.gmra.mrb[20].mxu1 %vm3933_vm5, %v6957_v4  ;;  %4144 = vmatprep.mubr.bf16.mxu0 %v5288_v34 }
 0x38b   : > { %4217 = vmatprep.mubr.bf16.mxu1 %v5288_v34  ;;  %v3407_v0 = vpop.f32.mrb[224].mxu0 }
 0x38c   : > { %v3480_v19 = vpop.f32.mrb[224].mxu1  ;;  %v3408_v37 = vadd.f32 %v3407_v0, %v6895_v60  ;;  %v3409_v22 = vpop.f32.mrb[225].mxu0 }
 0x38d   : > { %v3481_v41 = vadd.f32 %v3480_v19, %v6895_v60  ;;  %v3482_v21 = vpop.f32.mrb[225].mxu1  ;;  %v3410_v13 = vadd.f32 %v3409_v22, %v6895_v60  ;;  %v3411_v24 = vpop.f32.mrb[226].mxu0 }
 0x38e   : > { %v3483_v49 = vadd.f32 %v3482_v21, %v6895_v60  ;;  %v3484_v17 = vpop.f32.mrb[226].mxu1  ;;  %v3412_v61 = vadd.f32 %v3411_v24, %v6897_v44  ;;  %v3413_v33 = vpop.f32.mrb[227].mxu0  ;;  %v3673_v36 = vmax.f32 %v3408_v37, 0.0 }
 0x38f   : > { %v3485_v35 = vadd.f32 %v3484_v17, %v6897_v44  ;;  %v3486_v55 = vpop.f32.mrb[227].mxu1  ;;  %v3414_v52 = vadd.f32 %v3413_v33, %v6897_v44  ;;  %v3675_v62 = vmax.f32 %v3481_v41, 0.0  ;;  %v3674_v43 = vmax.f32 %v3410_v13, 0.0 }
 0x390   : > { %v3487_v16 = vadd.f32 %v3486_v55, %v6897_v44  ;;  %v3689_v11 = vmax.f32 %v3412_v61, 0.0  ;;  %v3676_v26 = vmax.f32 %v3483_v49, 0.0 }
 0x391   : > { %v3691_v57 = vmax.f32 %v3485_v35, 0.0  ;;  %v3690_v28 = vmax.f32 %v3414_v52, 0.0  ;;  %5056 = vmatmul.mubr.msk.bf16.gmra.mrb[24].mxu0 %vm3933_vm5, %v6972_v29 }
 0x392   : > { %v3692_v47 = vmax.f32 %v3487_v16, 0.0  ;;  %5060 = vmatmul.mubr.msk.bf16.gmra.mrb[24].mxu1 %vm3933_vm5, %v6972_v29  ;;  %v3809_v15 = vpack.c.bf16 %v3689_v11, %v3673_v36  ;;  %4154 = vmatprep.mubr.bf16.mxu0 %v5288_v34 }
 0x393   : > { %v3811_v50 = vpack.c.bf16 %v3691_v57, %v3675_v62  ;;  %4227 = vmatprep.mubr.bf16.mxu1 %v5288_v34  ;;  %v3810_v63 = vpack.c.bf16 %v3690_v28, %v3674_v43  ;;  %v3417_v53 = vpop.f32.mrb[228].mxu0 }
 0x394   : > { %v3812_v59 = vpack.c.bf16 %v3692_v47, %v3676_v26  ;;  %v3490_v54 = vpop.f32.mrb[228].mxu1  ;;  %v3418_v5 = vadd.f32 %v3417_v53, %v6907_v31  ;;  %v3419_v40 = vpop.f32.mrb[229].mxu0 }
 0x395   : > { %v3491_v42 = vadd.f32 %v3490_v54, %v6907_v31  ;;  %v3492_v1 = vpop.f32.mrb[229].mxu1  ;;  %v3420_v20 = vadd.f32 %v3419_v40, %v6907_v31  ;;  %v3421_v46 = vpop.f32.mrb[230].mxu0  ;;  %4238 = vmatprep.subr.bf16.mxu0 %v3810_v63 }
 0x396   : > { %v3493_v8 = vadd.f32 %v3492_v1, %v6907_v31  ;;  %v3494_v56 = vpop.f32.mrb[230].mxu1  ;;  %4311 = vmatprep.subr.bf16.mxu1 %v3812_v59  ;;  %v3422_v48 = vadd.f32 %v3421_v46, %v6909_v45  ;;  %v3423_v14 = vpop.f32.mrb[231].mxu0  ;;  %4239 = vmatpush1.bf16.msra.mxu0 %v3809_v15  ;;  %v3705_v38 = vmax.f32 %v3418_v5, 0.0 }
 0x397   : > { %v3495_v7 = vadd.f32 %v3494_v56, %v6909_v45  ;;  %v3496_v9 = vpop.f32.mrb[231].mxu1  ;;  %4312 = vmatpush1.bf16.msra.mxu1 %v3811_v50  ;;  %v3424_v27 = vadd.f32 %v3423_v14, %v6909_v45  ;;  %v3707_v10 = vmax.f32 %v3491_v42, 0.0  ;;  %v3706_v39 = vmax.f32 %v3420_v20, 0.0 }
 0x398   : > { %v3497_v23 = vadd.f32 %v3496_v9, %v6909_v45  ;;  %v3721_v32 = vmax.f32 %v3422_v48, 0.0  ;;  %v3708_v25 = vmax.f32 %v3493_v8, 0.0 }
 0x399   : > { %v3723_v30 = vmax.f32 %v3495_v7, 0.0  ;;  %v3722_v58 = vmax.f32 %v3424_v27, 0.0  ;;  %5057 = vmatmul.mubr.msk.bf16.gmra.mrb[28].mxu0 %vm3933_vm5, %v6991_v51 }
 0x39a   : > { %v3724_v0 = vmax.f32 %v3497_v23, 0.0  ;;  %5061 = vmatmul.mubr.msk.bf16.gmra.mrb[28].mxu1 %vm3933_vm5, %v6991_v51  ;;  %v3825_v19 = vpack.c.bf16 %v3721_v32, %v3705_v38  ;;  %4270 = vmatprep.mubr.bf16.mxu0 %v5288_v34 }
 0x39b   : > { %v3827_v37 = vpack.c.bf16 %v3723_v30, %v3707_v10  ;;  %4343 = vmatprep.mubr.bf16.mxu1 %v5288_v34  ;;  %v3826_v41 = vpack.c.bf16 %v3722_v58, %v3706_v39  ;;  %v3427_v21 = vpop.f32.mrb[232].mxu0 }
 0x39c   : > { %v3828_v22 = vpack.c.bf16 %v3724_v0, %v3708_v25  ;;  %v3500_v13 = vpop.f32.mrb[232].mxu1  ;;  %v3428_v49 = vadd.f32 %v3427_v21, %v6919_v12  ;;  %v3429_v17 = vpop.f32.mrb[233].mxu0 }
 0x39d   : > { %v3501_v24 = vadd.f32 %v3500_v13, %v6919_v12  ;;  %v3502_v61 = vpop.f32.mrb[233].mxu1  ;;  %v3430_v35 = vadd.f32 %v3429_v17, %v6919_v12  ;;  %v3431_v55 = vpop.f32.mrb[234].mxu0  ;;  %4240 = vmatprep.subr.bf16.mxu0 %v3826_v41 }
 0x39e   : > { %v3503_v33 = vadd.f32 %v3502_v61, %v6919_v12  ;;  %v3504_v52 = vpop.f32.mrb[234].mxu1  ;;  %4313 = vmatprep.subr.bf16.mxu1 %v3828_v22  ;;  %v3432_v16 = vadd.f32 %v3431_v55, %v6921_v3  ;;  %v3433_v62 = vpop.f32.mrb[235].mxu0  ;;  %4241 = vmatpush1.bf16.msra.mxu0 %v3825_v19  ;;  %v3737_v26 = vmax.f32 %v3428_v49, 0.0 }
 0x39f   : > { %v3505_v36 = vadd.f32 %v3504_v52, %v6921_v3  ;;  %v3506_v11 = vpop.f32.mrb[235].mxu1  ;;  %4314 = vmatpush1.bf16.msra.mxu1 %v3827_v37  ;;  %v3434_v57 = vadd.f32 %v3433_v62, %v6921_v3  ;;  %v3739_v28 = vmax.f32 %v3501_v24, 0.0  ;;  %v3738_v50 = vmax.f32 %v3430_v35, 0.0 }
 0x3a0   : > { %v3507_v43 = vadd.f32 %v3506_v11, %v6921_v3  ;;  %v3753_v47 = vmax.f32 %v3432_v16, 0.0  ;;  %v3740_v63 = vmax.f32 %v3503_v33, 0.0 }
 0x3a1   : > { %v3755_v15 = vmax.f32 %v3505_v36, 0.0  ;;  %v3754_v59 = vmax.f32 %v3434_v57, 0.0 }
 0x3a2   : > { %v3756_v53 = vmax.f32 %v3507_v43, 0.0  ;;  %v3841_v54 = vpack.c.bf16 %v3753_v47, %v3737_v26 }
 0x3a3   : > { %v3843_v5 = vpack.c.bf16 %v3755_v15, %v3739_v28  ;;  %v3842_v42 = vpack.c.bf16 %v3754_v59, %v3738_v50  ;;  %v3437_v1 = vpop.f32.mrb[236].mxu0 }
 0x3a4   : > { %v3844_v40 = vpack.c.bf16 %v3756_v53, %v3740_v63  ;;  %v3510_v20 = vpop.f32.mrb[236].mxu1  ;;  %v3438_v8 = vadd.f32 %v3437_v1, %v6931_v18  ;;  %v3439_v56 = vpop.f32.mrb[237].mxu0 }
 0x3a5   : > { %v3511_v46 = vadd.f32 %v3510_v20, %v6931_v18  ;;  %v3512_v48 = vpop.f32.mrb[237].mxu1  ;;  %v3440_v7 = vadd.f32 %v3439_v56, %v6931_v18  ;;  %v3441_v9 = vpop.f32.mrb[238].mxu0  ;;  %4242 = vmatprep.subr.bf16.mxu0 %v3842_v42 }
 0x3a6   : > { %v3513_v14 = vadd.f32 %v3512_v48, %v6931_v18  ;;  %v3514_v27 = vpop.f32.mrb[238].mxu1  ;;  %4315 = vmatprep.subr.bf16.mxu1 %v3844_v40  ;;  %v3442_v23 = vadd.f32 %v3441_v9, %v6933_v2  ;;  %v3443_v10 = vpop.f32.mrb[239].mxu0  ;;  %4243 = vmatpush1.bf16.msra.mxu0 %v3841_v54  ;;  %v3769_v25 = vmax.f32 %v3438_v8, 0.0 }
 0x3a7   : > { %v3515_v38 = vadd.f32 %v3514_v27, %v6933_v2  ;;  %v3516_v32 = vpop.f32.mrb[239].mxu1  ;;  %4316 = vmatpush1.bf16.msra.mxu1 %v3843_v5  ;;  %v3444_v30 = vadd.f32 %v3443_v10, %v6933_v2  ;;  %v3771_v58 = vmax.f32 %v3511_v46, 0.0  ;;  %v3770_v37 = vmax.f32 %v3440_v7, 0.0 }
 0x3a8   : > { %v3517_v39 = vadd.f32 %v3516_v32, %v6933_v2  ;;  %v3785_v0 = vmax.f32 %v3442_v23, 0.0  ;;  %v3772_v41 = vmax.f32 %v3513_v14, 0.0 }
 0x3a9   : > { %v3787_v19 = vmax.f32 %v3515_v38, 0.0  ;;  %v3786_v22 = vmax.f32 %v3444_v30, 0.0 }
 0x3aa   : > { %v3788_v21 = vmax.f32 %v3517_v39, 0.0  ;;  %v3857_v13 = vpack.c.bf16 %v3785_v0, %v3769_v25 }
 0x3ab   : > { %v3859_v49 = vpack.c.bf16 %v3787_v19, %v3771_v58  ;;  %v3858_v24 = vpack.c.bf16 %v3786_v22, %v3770_v37 }
 0x3ac   : > { %v3860_v17 = vpack.c.bf16 %v3788_v21, %v3772_v41 }
 0x3ad   : > { %4244 = vmatprep.subr.bf16.mxu0 %v3858_v24 }
 0x3ae   : > { %4317 = vmatprep.subr.bf16.mxu1 %v3860_v17  ;;  %4245 = vmatpush1.bf16.msra.mxu0 %v3857_v13 }
 0x3af   : > { %4318 = vmatpush1.bf16.msra.mxu1 %v3859_v49 }
 0x3b1   : > { %5062 = vmatmul.mubr.msk.bf16.vlgmr.msra.gmra.mrb[32].mxu0 %vm3933_vm5, %v6946_v6 }
 0x3b2   : > { %5066 = vmatmul.mubr.msk.bf16.vlgmr.msra.gmra.mrb[32].mxu1 %vm3933_vm5, %v6946_v6  ;;  %4280 = vmatprep.mubr.bf16.mxu0 %v5288_v34 }
 0x3b3   : > { %4353 = vmatprep.mubr.bf16.mxu1 %v5288_v34 }
 0x3b9   : > { %5063 = vmatmul.mubr.msk.bf16.gmra.mrb[36].mxu0 %vm3933_vm5, %v6957_v4 }
 0x3ba   : > { %5067 = vmatmul.mubr.msk.bf16.gmra.mrb[36].mxu1 %vm3933_vm5, %v6957_v4  ;;  %4290 = vmatprep.mubr.bf16.mxu0 %v5288_v34 }
 0x3bb   : > { %v3553_v61 = vpop.f32.mrb[240].mxu0  ;;  %4363 = vmatprep.mubr.bf16.mxu1 %v5288_v34 }
 0x3bc   : > { %v3554_v35 = vadd.f32 %v3553_v61, %v6895_v60  ;;  %v3626_v33 = vpop.f32.mrb[240].mxu1  ;;  %v3555_v55 = vpop.f32.mrb[241].mxu0 }
 0x3bd   : > { %v3627_v52 = vadd.f32 %v3626_v33, %v6895_v60  ;;  %v3556_v16 = vadd.f32 %v3555_v55, %v6895_v60  ;;  %v3628_v36 = vpop.f32.mrb[241].mxu1  ;;  %v3557_v62 = vpop.f32.mrb[242].mxu0 }
 0x3be   : > { %v3629_v11 = vadd.f32 %v3628_v36, %v6895_v60  ;;  %v3558_v57 = vadd.f32 %v3557_v62, %v6897_v44  ;;  %v3630_v43 = vpop.f32.mrb[242].mxu1  ;;  %v3559_v26 = vpop.f32.mrb[243].mxu0  ;;  %v3677_v50 = vmax.f32 %v3554_v35, 0.0 }
 0x3bf   : > { %v3631_v28 = vadd.f32 %v3630_v43, %v6897_v44  ;;  %v3560_v47 = vadd.f32 %v3559_v26, %v6897_v44  ;;  %v3632_v15 = vpop.f32.mrb[243].mxu1  ;;  %v3679_v53 = vmax.f32 %v3627_v52, 0.0  ;;  %v3678_v54 = vmax.f32 %v3556_v16, 0.0 }
 0x3c0   : > { %v3693_v63 = vmax.f32 %v3558_v57, 0.0  ;;  %v3633_v59 = vadd.f32 %v3632_v15, %v6897_v44  ;;  %v3680_v40 = vmax.f32 %v3629_v11, 0.0 }
 0x3c1   : > { %v3695_v5 = vmax.f32 %v3631_v28, 0.0  ;;  %v3694_v42 = vmax.f32 %v3560_v47, 0.0  ;;  %5064 = vmatmul.mubr.msk.bf16.gmra.mrb[40].mxu0 %vm3933_vm5, %v6972_v29 }
 0x3c2   : > { %v3813_v1 = vpack.c.bf16 %v3693_v63, %v3677_v50  ;;  %v3696_v60 = vmax.f32 %v3633_v59, 0.0  ;;  %5068 = vmatmul.mubr.msk.bf16.gmra.mrb[40].mxu1 %vm3933_vm5, %v6972_v29  ;;  %4300 = vmatprep.mubr.bf16.mxu0 %v5288_v34 }
 0x3c3   : > { %v3815_v20 = vpack.c.bf16 %v3695_v5, %v3679_v53  ;;  %v3814_v8 = vpack.c.bf16 %v3694_v42, %v3678_v54  ;;  %v3563_v46 = vpop.f32.mrb[244].mxu0  ;;  %4373 = vmatprep.mubr.bf16.mxu1 %v5288_v34 }
 0x3c4   : > { %v3816_v56 = vpack.c.bf16 %v3696_v60, %v3680_v40  ;;  %v3564_v48 = vadd.f32 %v3563_v46, %v6907_v31  ;;  %v3636_v44 = vpop.f32.mrb[244].mxu1  ;;  %v3565_v7 = vpop.f32.mrb[245].mxu0 }
 0x3c5   : > { %v3637_v14 = vadd.f32 %v3636_v44, %v6907_v31  ;;  %v3566_v9 = vadd.f32 %v3565_v7, %v6907_v31  ;;  %v3638_v27 = vpop.f32.mrb[245].mxu1  ;;  %v3567_v23 = vpop.f32.mrb[246].mxu0  ;;  %4384 = vmatprep.subr.bf16.mxu0 %v3814_v8 }
 0x3c6   : > { %v3639_v38 = vadd.f32 %v3638_v27, %v6907_v31  ;;  %v3568_v10 = vadd.f32 %v3567_v23, %v6909_v45  ;;  %v3640_v32 = vpop.f32.mrb[246].mxu1  ;;  %4457 = vmatprep.subr.bf16.mxu1 %v3816_v56  ;;  %v3569_v30 = vpop.f32.mrb[247].mxu0  ;;  %4385 = vmatpush1.bf16.msra.mxu0 %v3813_v1  ;;  %v3709_v0 = vmax.f32 %v3564_v48, 0.0 }
 0x3c7   : > { %v3641_v39 = vadd.f32 %v3640_v32, %v6909_v45  ;;  %v3570_v25 = vadd.f32 %v3569_v30, %v6909_v45  ;;  %v3642_v58 = vpop.f32.mrb[247].mxu1  ;;  %4458 = vmatpush1.bf16.msra.mxu1 %v3815_v20  ;;  %v3711_v41 = vmax.f32 %v3637_v14, 0.0  ;;  %v3710_v22 = vmax.f32 %v3566_v9, 0.0 }
 0x3c8   : > { %v3725_v19 = vmax.f32 %v3568_v10, 0.0  ;;  %v3643_v37 = vadd.f32 %v3642_v58, %v6909_v45  ;;  %v3712_v13 = vmax.f32 %v3639_v38, 0.0 }
 0x3c9   : > { %v3727_v21 = vmax.f32 %v3641_v39, 0.0  ;;  %v3726_v31 = vmax.f32 %v3570_v25, 0.0  ;;  %5065 = vmatmul.mubr.msk.bf16.gmra.mrb[44].mxu0 %vm3933_vm5, %v6991_v51 }
 0x3ca   : > { %v3829_v49 = vpack.c.bf16 %v3725_v19, %v3709_v0  ;;  %v3728_v24 = vmax.f32 %v3643_v37, 0.0  ;;  %5069 = vmatmul.mubr.msk.bf16.gmra.mrb[44].mxu1 %vm3933_vm5, %v6991_v51  ;;  %4416 = vmatprep.mubr.bf16.mxu0 %v5288_v34 }
 0x3cb   : > { %v3831_v17 = vpack.c.bf16 %v3727_v21, %v3711_v41  ;;  %v3830_v61 = vpack.c.bf16 %v3726_v31, %v3710_v22  ;;  %v3573_v35 = vpop.f32.mrb[248].mxu0  ;;  %4489 = vmatprep.mubr.bf16.mxu1 %v5288_v34 }
 0x3cc   : > { %v3832_v33 = vpack.c.bf16 %v3728_v24, %v3712_v13  ;;  %v3574_v55 = vadd.f32 %v3573_v35, %v6919_v12  ;;  %v3646_v45 = vpop.f32.mrb[248].mxu1  ;;  %v3575_v52 = vpop.f32.mrb[249].mxu0 }
 0x3cd   : > { %v3647_v16 = vadd.f32 %v3646_v45, %v6919_v12  ;;  %v3576_v36 = vadd.f32 %v3575_v52, %v6919_v12  ;;  %v3648_v62 = vpop.f32.mrb[249].mxu1  ;;  %v3577_v11 = vpop.f32.mrb[250].mxu0  ;;  %4386 = vmatprep.subr.bf16.mxu0 %v3830_v61 }
 0x3ce   : > { %v3649_v57 = vadd.f32 %v3648_v62, %v6919_v12  ;;  %v3578_v43 = vadd.f32 %v3577_v11, %v6921_v3  ;;  %v3650_v26 = vpop.f32.mrb[250].mxu1  ;;  %4459 = vmatprep.subr.bf16.mxu1 %v3832_v33  ;;  %v3579_v28 = vpop.f32.mrb[251].mxu0  ;;  %4387 = vmatpush1.bf16.msra.mxu0 %v3829_v49  ;;  %v3741_v63 = vmax.f32 %v3574_v55, 0.0 }
 0x3cf   : > { %v3651_v47 = vadd.f32 %v3650_v26, %v6921_v3  ;;  %v3580_v15 = vadd.f32 %v3579_v28, %v6921_v3  ;;  %v3652_v50 = vpop.f32.mrb[251].mxu1  ;;  %4460 = vmatpush1.bf16.msra.mxu1 %v3831_v17  ;;  %v3743_v54 = vmax.f32 %v3647_v16, 0.0  ;;  %v3742_v5 = vmax.f32 %v3576_v36, 0.0 }
 0x3d0   : > { %v3757_v59 = vmax.f32 %v3578_v43, 0.0  ;;  %v3653_v53 = vadd.f32 %v3652_v50, %v6921_v3  ;;  %v3744_v40 = vmax.f32 %v3649_v57, 0.0 }
 0x3d1   : > { %v3759_v42 = vmax.f32 %v3651_v47, 0.0  ;;  %v3758_v12 = vmax.f32 %v3580_v15, 0.0 }
 0x3d2   : > { %v3845_v1 = vpack.c.bf16 %v3757_v59, %v3741_v63  ;;  %v3760_v60 = vmax.f32 %v3653_v53, 0.0 }
 0x3d3   : > { %v3847_v20 = vpack.c.bf16 %v3759_v42, %v3743_v54  ;;  %v3846_v8 = vpack.c.bf16 %v3758_v12, %v3742_v5  ;;  %v3583_v46 = vpop.f32.mrb[252].mxu0 }
 0x3d4   : > { %v3848_v56 = vpack.c.bf16 %v3760_v60, %v3744_v40  ;;  %v3584_v48 = vadd.f32 %v3583_v46, %v6931_v18  ;;  %v3656_v44 = vpop.f32.mrb[252].mxu1  ;;  %v3585_v7 = vpop.f32.mrb[253].mxu0 }
 0x3d5   : > { %v3657_v14 = vadd.f32 %v3656_v44, %v6931_v18  ;;  %v3586_v9 = vadd.f32 %v3585_v7, %v6931_v18  ;;  %v3658_v3 = vpop.f32.mrb[253].mxu1  ;;  %v3587_v27 = vpop.f32.mrb[254].mxu0  ;;  %4388 = vmatprep.subr.bf16.mxu0 %v3846_v8 }
 0x3d6   : > { %v3659_v23 = vadd.f32 %v3658_v3, %v6931_v18  ;;  %v3588_v38 = vadd.f32 %v3587_v27, %v6933_v2  ;;  %v3660_v10 = vpop.f32.mrb[254].mxu1  ;;  %4461 = vmatprep.subr.bf16.mxu1 %v3848_v56  ;;  %v3589_v32 = vpop.f32.mrb[255].mxu0  ;;  %4389 = vmatpush1.bf16.msra.mxu0 %v3845_v1  ;;  %v3773_v58 = vmax.f32 %v3584_v48, 0.0 }
 0x3d7   : > { %v3661_v30 = vadd.f32 %v3660_v10, %v6933_v2  ;;  %v3590_v39 = vadd.f32 %v3589_v32, %v6933_v2  ;;  %v3662_v25 = vpop.f32.mrb[255].mxu1  ;;  %4462 = vmatpush1.bf16.msra.mxu1 %v3847_v20  ;;  %v3775_v37 = vmax.f32 %v3657_v14, 0.0  ;;  %v3774_v41 = vmax.f32 %v3586_v9, 0.0 }
 0x3d8   : > { %v3789_v0 = vmax.f32 %v3588_v38, 0.0  ;;  %v3663_v19 = vadd.f32 %v3662_v25, %v6933_v2  ;;  %v3776_v21 = vmax.f32 %v3659_v23, 0.0  ;;  %v7154_v2 = vpop.permute.xlu0 %3875 }
 0x3d9   : > { %v3791_v22 = vmax.f32 %v3661_v30, 0.0  ;;  %v3790_v18 = vmax.f32 %v3590_v39, 0.0 }
 0x3da   : > { %v3861_v31 = vpack.c.bf16 %v3789_v0, %v3773_v58  ;;  %v3792_v13 = vmax.f32 %v3663_v19, 0.0 }
 0x3db   : > { %v3863_v49 = vpack.c.bf16 %v3791_v22, %v3775_v37  ;;  %v3862_v24 = vpack.c.bf16 %v3790_v18, %v3774_v41 }
 0x3dc   : > { %v3864_v17 = vpack.c.bf16 %v3792_v13, %v3776_v21  ;;  %v7172_v54 = vpop.permute.xlu0 %3885 }
 0x3dd   : > { %4390 = vmatprep.subr.bf16.mxu0 %v3862_v24 }
 0x3de   : > { %4463 = vmatprep.subr.bf16.mxu1 %v3864_v17  ;;  %4391 = vmatpush1.bf16.msra.mxu0 %v3861_v31 }
 0x3df   : > { %4464 = vmatpush1.bf16.msra.mxu1 %v3863_v49 }
 0x3e0   : > { %v7192_v0 = vpop.permute.xlu0 %3895 }
 0x3e1   : > { %5070 = vmatmul.mubr.msk.bf16.vlgmr.msra.gmra.mrb[48].mxu0 %vm3933_vm5, %v6946_v6 }
 0x3e2   : > { %5074 = vmatmul.mubr.msk.bf16.vlgmr.msra.gmra.mrb[48].mxu1 %vm3933_vm5, %v6946_v6  ;;  %4426 = vmatprep.mubr.bf16.mxu0 %v5288_v34  ;;  %v7156_v6 = vpop.permute.xlu1 %3880 }
 0x3e3   : > { %4499 = vmatprep.mubr.bf16.mxu1 %v5288_v34 }
 0x3e6   : > { %v7174_v5 = vpop.permute.xlu1 %3890 }
 0x3e9   : > { %5071 = vmatmul.mubr.msk.bf16.gmra.mrb[52].mxu0 %vm3933_vm5, %v6957_v4 }
 0x3ea   : > { %5075 = vmatmul.mubr.msk.bf16.gmra.mrb[52].mxu1 %vm3933_vm5, %v6957_v4  ;;  %4436 = vmatprep.mubr.bf16.mxu0 %v5288_v34  ;;  %v7194_v19 = vpop.permute.xlu1 %3900 }
 0x3eb   : > { %4509 = vmatprep.mubr.bf16.mxu1 %v5288_v34 }
 0x3f1   : > { %5072 = vmatmul.mubr.msk.bf16.gmra.mrb[56].mxu0 %vm3933_vm5, %v6972_v29 }
 0x3f2   : > { %5076 = vmatmul.mubr.msk.bf16.gmra.mrb[56].mxu1 %vm3933_vm5, %v6972_v29  ;;  %4446 = vmatprep.mubr.bf16.mxu0 %v5288_v34 }
 0x3f3   : > { %4519 = vmatprep.mubr.bf16.mxu1 %v5288_v34 }
 0x3f9   : > { %5073 = vmatmul.mubr.msk.bf16.gmra.mrb[60].mxu0 %vm3933_vm5, %v6991_v51 }
 0x3fa   : > { %5077 = vmatmul.mubr.msk.bf16.gmra.mrb[60].mxu1 %vm3933_vm5, %v6991_v51 }
 0x424   : > { %v3980_v4 = vpop.f32.mrb[0].mxu0 }
 0x425   : > { %v4053_v61 = vpop.f32.mrb[0].mxu1  ;;  %v3981_v35 = vadd.f32 %v3980_v4, %v7154_v2  ;;  %v3982_v33 = vpop.f32.mrb[1].mxu0 }
 0x426   : > { %v4054_v29 = vadd.f32 %v4053_v61, %v7154_v2  ;;  %v4055_v55 = vpop.f32.mrb[1].mxu1  ;;  %v3983_v34 = vadd.f32 %v3982_v33, %v7154_v2  ;;  %v3984_v52 = vpop.f32.mrb[2].mxu0 }
 0x427   : > { %v4056_v45 = vadd.f32 %v4055_v55, %v7154_v2  ;;  %v4057_v16 = vpop.f32.mrb[2].mxu1  ;;  %v4530_v51 = vmax.f32 %v3981_v35, 0.0  ;;  %v3985_v62 = vadd.f32 %v3984_v52, %v7156_v6  ;;  %v3986_v57 = vpop.f32.mrb[3].mxu0 }
 0x428   : > { %v4532_v36 = vmax.f32 %v4054_v29, 0.0  ;;  %v4058_v11 = vadd.f32 %v4057_v16, %v7156_v6  ;;  %v4059_v43 = vpop.f32.mrb[3].mxu1  ;;  %v4531_v26 = vmax.f32 %v3983_v34, 0.0  ;;  %v3987_v47 = vadd.f32 %v3986_v57, %v7156_v6  ;;  %v7212_v57 = vpop.permute.xlu0 %3905 }
 0x429   : > { %v4533_v28 = vmax.f32 %v4056_v45, 0.0  ;;  %v4060_v15 = vadd.f32 %v4059_v43, %v7156_v6  ;;  %4658 = vst [vmem:[%s7166_s25] sm:$0xff] %v4530_v51  ;;  %v4546_v50 = vmax.f32 %v3985_v62, 0.0  ;;  %v7214_v43 = vpop.permute.xlu1 %3910 }
 0x42a   : > { %4660 = vst [vmem:[%s7166_s25 + $0x10] sm:$0xff] %v4532_v36  ;;  %v4548_v63 = vmax.f32 %v4058_v11, 0.0  ;;  %4659 = vst [vmem:[%s7166_s25 + $0x8] sm:$0xff] %v4531_v26  ;;  %v4547_v59 = vmax.f32 %v3987_v47, 0.0 }
 0x42b   : > { %4661 = vst [vmem:[%s7166_s25 + $0x18] sm:$0xff] %v4533_v28  ;;  %v4549_v53 = vmax.f32 %v4060_v15, 0.0  ;;  %4674 = vst [vmem:[%s7166_s25 + $0x80] sm:$0xff] %v4546_v50 }
 0x42c   : > { %4676 = vst [vmem:[%s7166_s25 + $0x90] sm:$0xff] %v4548_v63  ;;  %4675 = vst [vmem:[%s7166_s25 + $0x88] sm:$0xff] %v4547_v59  ;;  %v3990_v42 = vpop.f32.mrb[4].mxu0 }
 0x42d   : > { %4677 = vst [vmem:[%s7166_s25 + $0x98] sm:$0xff] %v4549_v53  ;;  %v4063_v12 = vpop.f32.mrb[4].mxu1  ;;  %v3991_v40 = vadd.f32 %v3990_v42, %v7172_v54  ;;  %v3992_v60 = vpop.f32.mrb[5].mxu0 }
 0x42e   : > { %v4064_v1 = vadd.f32 %v4063_v12, %v7172_v54  ;;  %v4065_v20 = vpop.f32.mrb[5].mxu1  ;;  %v3993_v8 = vadd.f32 %v3992_v60, %v7172_v54  ;;  %v3994_v56 = vpop.f32.mrb[6].mxu0 }
 0x42f   : > { %v4066_v46 = vadd.f32 %v4065_v20, %v7172_v54  ;;  %v4067_v48 = vpop.f32.mrb[6].mxu1  ;;  %v4562_v44 = vmax.f32 %v3991_v40, 0.0  ;;  %v3995_v14 = vadd.f32 %v3994_v56, %v7174_v5  ;;  %v3996_v3 = vpop.f32.mrb[7].mxu0 }
 0x430   : > { %v4564_v7 = vmax.f32 %v4064_v1, 0.0  ;;  %v4068_v9 = vadd.f32 %v4067_v48, %v7174_v5  ;;  %v4069_v27 = vpop.f32.mrb[7].mxu1  ;;  %v4563_v23 = vmax.f32 %v3993_v8, 0.0  ;;  %v3997_v10 = vadd.f32 %v3996_v3, %v7174_v5 }
 0x431   : > { %v4565_v38 = vmax.f32 %v4066_v46, 0.0  ;;  %v4070_v32 = vadd.f32 %v4069_v27, %v7174_v5  ;;  %4690 = vst [vmem:[%s7166_s25 + $0x100] sm:$0xff] %v4562_v44  ;;  %v4578_v30 = vmax.f32 %v3995_v14, 0.0 }
 0x432   : > { %4692 = vst [vmem:[%s7166_s25 + $0x110] sm:$0xff] %v4564_v7  ;;  %v4580_v39 = vmax.f32 %v4068_v9, 0.0  ;;  %4691 = vst [vmem:[%s7166_s25 + $0x108] sm:$0xff] %v4563_v23  ;;  %v4579_v25 = vmax.f32 %v3997_v10, 0.0 }
 0x433   : > { %4693 = vst [vmem:[%s7166_s25 + $0x118] sm:$0xff] %v4565_v38  ;;  %v4581_v58 = vmax.f32 %v4070_v32, 0.0  ;;  %4706 = vst [vmem:[%s7166_s25 + $0x180] sm:$0xff] %v4578_v30 }
 0x434   : > { %4708 = vst [vmem:[%s7166_s25 + $0x190] sm:$0xff] %v4580_v39  ;;  %4707 = vst [vmem:[%s7166_s25 + $0x188] sm:$0xff] %v4579_v25  ;;  %v4000_v37 = vpop.f32.mrb[8].mxu0 }
 0x435   : > { %4709 = vst [vmem:[%s7166_s25 + $0x198] sm:$0xff] %v4581_v58  ;;  %v4073_v41 = vpop.f32.mrb[8].mxu1  ;;  %v4001_v22 = vadd.f32 %v4000_v37, %v7192_v0  ;;  %v4002_v21 = vpop.f32.mrb[9].mxu0 }
 0x436   : > { %v4074_v18 = vadd.f32 %v4073_v41, %v7192_v0  ;;  %v4075_v31 = vpop.f32.mrb[9].mxu1  ;;  %v4003_v13 = vadd.f32 %v4002_v21, %v7192_v0  ;;  %v4004_v24 = vpop.f32.mrb[10].mxu0 }
 0x437   : > { %v4076_v49 = vadd.f32 %v4075_v31, %v7192_v0  ;;  %v4077_v17 = vpop.f32.mrb[10].mxu1  ;;  %v4594_v4 = vmax.f32 %v4001_v22, 0.0  ;;  %v4005_v35 = vadd.f32 %v4004_v24, %v7194_v19  ;;  %v4006_v33 = vpop.f32.mrb[11].mxu0 }
 0x438   : > { %v4596_v61 = vmax.f32 %v4074_v18, 0.0  ;;  %v4078_v29 = vadd.f32 %v4077_v17, %v7194_v19  ;;  %v4079_v55 = vpop.f32.mrb[11].mxu1  ;;  %v4595_v34 = vmax.f32 %v4003_v13, 0.0  ;;  %v4007_v52 = vadd.f32 %v4006_v33, %v7194_v19 }
 0x439   : > { %v4597_v45 = vmax.f32 %v4076_v49, 0.0  ;;  %v4080_v16 = vadd.f32 %v4079_v55, %v7194_v19  ;;  %4722 = vst [vmem:[%s7166_s25 + $0x200] sm:$0xff] %v4594_v4  ;;  %v4610_v51 = vmax.f32 %v4005_v35, 0.0 }
 0x43a   : > { %4724 = vst [vmem:[%s7166_s25 + $0x210] sm:$0xff] %v4596_v61  ;;  %v4612_v36 = vmax.f32 %v4078_v29, 0.0  ;;  %4723 = vst [vmem:[%s7166_s25 + $0x208] sm:$0xff] %v4595_v34  ;;  %v4611_v62 = vmax.f32 %v4007_v52, 0.0 }
 0x43b   : > { %4725 = vst [vmem:[%s7166_s25 + $0x218] sm:$0xff] %v4597_v45  ;;  %v4613_v11 = vmax.f32 %v4080_v16, 0.0  ;;  %4738 = vst [vmem:[%s7166_s25 + $0x280] sm:$0xff] %v4610_v51 }
 0x43c   : > { %4740 = vst [vmem:[%s7166_s25 + $0x290] sm:$0xff] %v4612_v36  ;;  %4739 = vst [vmem:[%s7166_s25 + $0x288] sm:$0xff] %v4611_v62  ;;  %v4010_v26 = vpop.f32.mrb[12].mxu0 }
 0x43d   : > { %4741 = vst [vmem:[%s7166_s25 + $0x298] sm:$0xff] %v4613_v11  ;;  %v4083_v28 = vpop.f32.mrb[12].mxu1  ;;  %v4011_v47 = vadd.f32 %v4010_v26, %v7212_v57  ;;  %v4012_v50 = vpop.f32.mrb[13].mxu0 }
 0x43e   : > { %v4084_v15 = vadd.f32 %v4083_v28, %v7212_v57  ;;  %v4085_v63 = vpop.f32.mrb[13].mxu1  ;;  %v4013_v59 = vadd.f32 %v4012_v50, %v7212_v57  ;;  %v4014_v42 = vpop.f32.mrb[14].mxu0 }
 0x43f   : > { %v4086_v53 = vadd.f32 %v4085_v63, %v7212_v57  ;;  %v4087_v12 = vpop.f32.mrb[14].mxu1  ;;  %v4626_v40 = vmax.f32 %v4011_v47, 0.0  ;;  %v4015_v60 = vadd.f32 %v4014_v42, %v7214_v43  ;;  %v4016_v8 = vpop.f32.mrb[15].mxu0 }
 0x440   : > { %v4628_v1 = vmax.f32 %v4084_v15, 0.0  ;;  %v4088_v20 = vadd.f32 %v4087_v12, %v7214_v43  ;;  %v4089_v46 = vpop.f32.mrb[15].mxu1  ;;  %v4627_v56 = vmax.f32 %v4013_v59, 0.0  ;;  %v4017_v44 = vadd.f32 %v4016_v8, %v7214_v43 }
 0x441   : > { %v4629_v48 = vmax.f32 %v4086_v53, 0.0  ;;  %v4090_v7 = vadd.f32 %v4089_v46, %v7214_v43  ;;  %4754 = vst [vmem:[%s7166_s25 + $0x300] sm:$0xff] %v4626_v40  ;;  %v4642_v14 = vmax.f32 %v4015_v60, 0.0 }
 0x442   : > { %4756 = vst [vmem:[%s7166_s25 + $0x310] sm:$0xff] %v4628_v1  ;;  %v4644_v9 = vmax.f32 %v4088_v20, 0.0  ;;  %4755 = vst [vmem:[%s7166_s25 + $0x308] sm:$0xff] %v4627_v56  ;;  %v4643_v3 = vmax.f32 %v4017_v44, 0.0 }
 0x443   : > { %4757 = vst [vmem:[%s7166_s25 + $0x318] sm:$0xff] %v4629_v48  ;;  %v4645_v27 = vmax.f32 %v4090_v7, 0.0  ;;  %4770 = vst [vmem:[%s7166_s25 + $0x380] sm:$0xff] %v4642_v14 }
 0x444   : > { %4772 = vst [vmem:[%s7166_s25 + $0x390] sm:$0xff] %v4644_v9  ;;  %4771 = vst [vmem:[%s7166_s25 + $0x388] sm:$0xff] %v4643_v3 }
 0x445   : > { %4773 = vst [vmem:[%s7166_s25 + $0x398] sm:$0xff] %v4645_v27 }
 0x454   : > { %v4126_v23 = vpop.f32.mrb[16].mxu0 }
 0x455   : > { %v4199_v38 = vpop.f32.mrb[16].mxu1  ;;  %v4127_v10 = vadd.f32 %v4126_v23, %v7154_v2  ;;  %v4128_v30 = vpop.f32.mrb[17].mxu0 }
 0x456   : > { %v4200_v32 = vadd.f32 %v4199_v38, %v7154_v2  ;;  %v4201_v39 = vpop.f32.mrb[17].mxu1  ;;  %v4129_v25 = vadd.f32 %v4128_v30, %v7154_v2  ;;  %v4130_v37 = vpop.f32.mrb[18].mxu0 }
 0x457   : > { %v4202_v58 = vadd.f32 %v4201_v39, %v7154_v2  ;;  %v4203_v41 = vpop.f32.mrb[18].mxu1  ;;  %v4534_v22 = vmax.f32 %v4127_v10, 0.0  ;;  %v4131_v21 = vadd.f32 %v4130_v37, %v7156_v6  ;;  %v4132_v13 = vpop.f32.mrb[19].mxu0 }
 0x458   : > { %v4536_v18 = vmax.f32 %v4200_v32, 0.0  ;;  %v4204_v31 = vadd.f32 %v4203_v41, %v7156_v6  ;;  %v4205_v49 = vpop.f32.mrb[19].mxu1  ;;  %v4535_v24 = vmax.f32 %v4129_v25, 0.0  ;;  %v4133_v4 = vadd.f32 %v4132_v13, %v7156_v6 }
 0x459   : > { %v4537_v17 = vmax.f32 %v4202_v58, 0.0  ;;  %v4206_v61 = vadd.f32 %v4205_v49, %v7156_v6  ;;  %4662 = vst [vmem:[%s7166_s25 + $0x20] sm:$0xff] %v4534_v22  ;;  %v4550_v35 = vmax.f32 %v4131_v21, 0.0 }
 0x45a   : > { %4664 = vst [vmem:[%s7166_s25 + $0x30] sm:$0xff] %v4536_v18  ;;  %v4552_v29 = vmax.f32 %v4204_v31, 0.0  ;;  %4663 = vst [vmem:[%s7166_s25 + $0x28] sm:$0xff] %v4535_v24  ;;  %v4551_v33 = vmax.f32 %v4133_v4, 0.0 }
 0x45b   : > { %4665 = vst [vmem:[%s7166_s25 + $0x38] sm:$0xff] %v4537_v17  ;;  %v4553_v55 = vmax.f32 %v4206_v61, 0.0  ;;  %4678 = vst [vmem:[%s7166_s25 + $0xa0] sm:$0xff] %v4550_v35 }
 0x45c   : > { %4680 = vst [vmem:[%s7166_s25 + $0xb0] sm:$0xff] %v4552_v29  ;;  %4679 = vst [vmem:[%s7166_s25 + $0xa8] sm:$0xff] %v4551_v33  ;;  %v4136_v34 = vpop.f32.mrb[20].mxu0 }
 0x45d   : > { %4681 = vst [vmem:[%s7166_s25 + $0xb8] sm:$0xff] %v4553_v55  ;;  %v4209_v45 = vpop.f32.mrb[20].mxu1  ;;  %v4137_v52 = vadd.f32 %v4136_v34, %v7172_v54  ;;  %v4138_v51 = vpop.f32.mrb[21].mxu0 }
 0x45e   : > { %v4210_v16 = vadd.f32 %v4209_v45, %v7172_v54  ;;  %v4211_v36 = vpop.f32.mrb[21].mxu1  ;;  %v4139_v62 = vadd.f32 %v4138_v51, %v7172_v54  ;;  %v4140_v26 = vpop.f32.mrb[22].mxu0 }
 0x45f   : > { %v4212_v11 = vadd.f32 %v4211_v36, %v7172_v54  ;;  %v4213_v28 = vpop.f32.mrb[22].mxu1  ;;  %v4566_v47 = vmax.f32 %v4137_v52, 0.0  ;;  %v4141_v50 = vadd.f32 %v4140_v26, %v7174_v5  ;;  %v4142_v59 = vpop.f32.mrb[23].mxu0 }
 0x460   : > { %v4568_v15 = vmax.f32 %v4210_v16, 0.0  ;;  %v4214_v63 = vadd.f32 %v4213_v28, %v7174_v5  ;;  %v4215_v53 = vpop.f32.mrb[23].mxu1  ;;  %v4567_v42 = vmax.f32 %v4139_v62, 0.0  ;;  %v4143_v40 = vadd.f32 %v4142_v59, %v7174_v5 }
 0x461   : > { %v4569_v12 = vmax.f32 %v4212_v11, 0.0  ;;  %v4216_v1 = vadd.f32 %v4215_v53, %v7174_v5  ;;  %4694 = vst [vmem:[%s7166_s25 + $0x120] sm:$0xff] %v4566_v47  ;;  %v4582_v60 = vmax.f32 %v4141_v50, 0.0 }
 0x462   : > { %4696 = vst [vmem:[%s7166_s25 + $0x130] sm:$0xff] %v4568_v15  ;;  %v4584_v20 = vmax.f32 %v4214_v63, 0.0  ;;  %4695 = vst [vmem:[%s7166_s25 + $0x128] sm:$0xff] %v4567_v42  ;;  %v4583_v8 = vmax.f32 %v4143_v40, 0.0 }
 0x463   : > { %4697 = vst [vmem:[%s7166_s25 + $0x138] sm:$0xff] %v4569_v12  ;;  %v4585_v46 = vmax.f32 %v4216_v1, 0.0  ;;  %4710 = vst [vmem:[%s7166_s25 + $0x1a0] sm:$0xff] %v4582_v60 }
 0x464   : > { %4712 = vst [vmem:[%s7166_s25 + $0x1b0] sm:$0xff] %v4584_v20  ;;  %4711 = vst [vmem:[%s7166_s25 + $0x1a8] sm:$0xff] %v4583_v8  ;;  %v4146_v56 = vpop.f32.mrb[24].mxu0 }
 0x465   : > { %4713 = vst [vmem:[%s7166_s25 + $0x1b8] sm:$0xff] %v4585_v46  ;;  %v4219_v48 = vpop.f32.mrb[24].mxu1  ;;  %v4147_v44 = vadd.f32 %v4146_v56, %v7192_v0  ;;  %v4148_v14 = vpop.f32.mrb[25].mxu0 }
 0x466   : > { %v4220_v7 = vadd.f32 %v4219_v48, %v7192_v0  ;;  %v4221_v9 = vpop.f32.mrb[25].mxu1  ;;  %v4149_v3 = vadd.f32 %v4148_v14, %v7192_v0  ;;  %v4150_v23 = vpop.f32.mrb[26].mxu0 }
 0x467   : > { %v4222_v27 = vadd.f32 %v4221_v9, %v7192_v0  ;;  %v4223_v38 = vpop.f32.mrb[26].mxu1  ;;  %v4598_v10 = vmax.f32 %v4147_v44, 0.0  ;;  %v4151_v30 = vadd.f32 %v4150_v23, %v7194_v19  ;;  %v4152_v25 = vpop.f32.mrb[27].mxu0 }
 0x468   : > { %v4600_v32 = vmax.f32 %v4220_v7, 0.0  ;;  %v4224_v39 = vadd.f32 %v4223_v38, %v7194_v19  ;;  %v4225_v58 = vpop.f32.mrb[27].mxu1  ;;  %v4599_v37 = vmax.f32 %v4149_v3, 0.0  ;;  %v4153_v22 = vadd.f32 %v4152_v25, %v7194_v19 }
 0x469   : > { %v4601_v41 = vmax.f32 %v4222_v27, 0.0  ;;  %v4226_v18 = vadd.f32 %v4225_v58, %v7194_v19  ;;  %4726 = vst [vmem:[%s7166_s25 + $0x220] sm:$0xff] %v4598_v10  ;;  %v4614_v21 = vmax.f32 %v4151_v30, 0.0 }
 0x46a   : > { %4728 = vst [vmem:[%s7166_s25 + $0x230] sm:$0xff] %v4600_v32  ;;  %v4616_v31 = vmax.f32 %v4224_v39, 0.0  ;;  %4727 = vst [vmem:[%s7166_s25 + $0x228] sm:$0xff] %v4599_v37  ;;  %v4615_v13 = vmax.f32 %v4153_v22, 0.0 }
 0x46b   : > { %4729 = vst [vmem:[%s7166_s25 + $0x238] sm:$0xff] %v4601_v41  ;;  %v4617_v49 = vmax.f32 %v4226_v18, 0.0  ;;  %4742 = vst [vmem:[%s7166_s25 + $0x2a0] sm:$0xff] %v4614_v21 }
 0x46c   : > { %4744 = vst [vmem:[%s7166_s25 + $0x2b0] sm:$0xff] %v4616_v31  ;;  %4743 = vst [vmem:[%s7166_s25 + $0x2a8] sm:$0xff] %v4615_v13  ;;  %v4156_v24 = vpop.f32.mrb[28].mxu0 }
 0x46d   : > { %4745 = vst [vmem:[%s7166_s25 + $0x2b8] sm:$0xff] %v4617_v49  ;;  %v4229_v17 = vpop.f32.mrb[28].mxu1  ;;  %v4157_v4 = vadd.f32 %v4156_v24, %v7212_v57  ;;  %v4158_v35 = vpop.f32.mrb[29].mxu0 }
 0x46e   : > { %v4230_v61 = vadd.f32 %v4229_v17, %v7212_v57  ;;  %v4231_v29 = vpop.f32.mrb[29].mxu1  ;;  %v4159_v33 = vadd.f32 %v4158_v35, %v7212_v57  ;;  %v4160_v34 = vpop.f32.mrb[30].mxu0 }
 0x46f   : > { %v4232_v55 = vadd.f32 %v4231_v29, %v7212_v57  ;;  %v4233_v45 = vpop.f32.mrb[30].mxu1  ;;  %v4630_v52 = vmax.f32 %v4157_v4, 0.0  ;;  %v4161_v51 = vadd.f32 %v4160_v34, %v7214_v43  ;;  %v4162_v62 = vpop.f32.mrb[31].mxu0 }
 0x470   : > { %v4632_v16 = vmax.f32 %v4230_v61, 0.0  ;;  %v4234_v36 = vadd.f32 %v4233_v45, %v7214_v43  ;;  %v4235_v11 = vpop.f32.mrb[31].mxu1  ;;  %v4631_v26 = vmax.f32 %v4159_v33, 0.0  ;;  %v4163_v47 = vadd.f32 %v4162_v62, %v7214_v43 }
 0x471   : > { %v4633_v28 = vmax.f32 %v4232_v55, 0.0  ;;  %v4236_v15 = vadd.f32 %v4235_v11, %v7214_v43  ;;  %4758 = vst [vmem:[%s7166_s25 + $0x320] sm:$0xff] %v4630_v52  ;;  %v4646_v50 = vmax.f32 %v4161_v51, 0.0 }
 0x472   : > { %4760 = vst [vmem:[%s7166_s25 + $0x330] sm:$0xff] %v4632_v16  ;;  %v4648_v63 = vmax.f32 %v4234_v36, 0.0  ;;  %4759 = vst [vmem:[%s7166_s25 + $0x328] sm:$0xff] %v4631_v26  ;;  %v4647_v59 = vmax.f32 %v4163_v47, 0.0 }
 0x473   : > { %4761 = vst [vmem:[%s7166_s25 + $0x338] sm:$0xff] %v4633_v28  ;;  %v4649_v53 = vmax.f32 %v4236_v15, 0.0  ;;  %4774 = vst [vmem:[%s7166_s25 + $0x3a0] sm:$0xff] %v4646_v50 }
 0x474   : > { %4776 = vst [vmem:[%s7166_s25 + $0x3b0] sm:$0xff] %v4648_v63  ;;  %4775 = vst [vmem:[%s7166_s25 + $0x3a8] sm:$0xff] %v4647_v59 }
 0x475   : > { %4777 = vst [vmem:[%s7166_s25 + $0x3b8] sm:$0xff] %v4649_v53 }
 0x484   : > { %v4272_v42 = vpop.f32.mrb[32].mxu0 }
 0x485   : > { %v4345_v12 = vpop.f32.mrb[32].mxu1  ;;  %v4273_v40 = vadd.f32 %v4272_v42, %v7154_v2  ;;  %v4274_v60 = vpop.f32.mrb[33].mxu0 }
 0x486   : > { %v4346_v1 = vadd.f32 %v4345_v12, %v7154_v2  ;;  %v4347_v20 = vpop.f32.mrb[33].mxu1  ;;  %v4275_v8 = vadd.f32 %v4274_v60, %v7154_v2  ;;  %v4276_v56 = vpop.f32.mrb[34].mxu0 }
 0x487   : > { %v4348_v46 = vadd.f32 %v4347_v20, %v7154_v2  ;;  %v4349_v48 = vpop.f32.mrb[34].mxu1  ;;  %v4538_v44 = vmax.f32 %v4273_v40, 0.0  ;;  %v4277_v14 = vadd.f32 %v4276_v56, %v7156_v6  ;;  %v4278_v3 = vpop.f32.mrb[35].mxu0 }
 0x488   : > { %v4540_v7 = vmax.f32 %v4346_v1, 0.0  ;;  %v4350_v9 = vadd.f32 %v4349_v48, %v7156_v6  ;;  %v4351_v27 = vpop.f32.mrb[35].mxu1  ;;  %v4539_v23 = vmax.f32 %v4275_v8, 0.0  ;;  %v4279_v10 = vadd.f32 %v4278_v3, %v7156_v6 }
 0x489   : > { %v4541_v38 = vmax.f32 %v4348_v46, 0.0  ;;  %v4352_v32 = vadd.f32 %v4351_v27, %v7156_v6  ;;  %4666 = vst [vmem:[%s7166_s25 + $0x40] sm:$0xff] %v4538_v44  ;;  %v4554_v30 = vmax.f32 %v4277_v14, 0.0 }
 0x48a   : > { %4668 = vst [vmem:[%s7166_s25 + $0x50] sm:$0xff] %v4540_v7  ;;  %v4556_v39 = vmax.f32 %v4350_v9, 0.0  ;;  %4667 = vst [vmem:[%s7166_s25 + $0x48] sm:$0xff] %v4539_v23  ;;  %v4555_v25 = vmax.f32 %v4279_v10, 0.0 }
 0x48b   : > { %4669 = vst [vmem:[%s7166_s25 + $0x58] sm:$0xff] %v4541_v38  ;;  %v4557_v58 = vmax.f32 %v4352_v32, 0.0  ;;  %4682 = vst [vmem:[%s7166_s25 + $0xc0] sm:$0xff] %v4554_v30 }
 0x48c   : > { %4684 = vst [vmem:[%s7166_s25 + $0xd0] sm:$0xff] %v4556_v39  ;;  %4683 = vst [vmem:[%s7166_s25 + $0xc8] sm:$0xff] %v4555_v25  ;;  %v4282_v37 = vpop.f32.mrb[36].mxu0 }
 0x48d   : > { %4685 = vst [vmem:[%s7166_s25 + $0xd8] sm:$0xff] %v4557_v58  ;;  %v4355_v41 = vpop.f32.mrb[36].mxu1  ;;  %v4283_v22 = vadd.f32 %v4282_v37, %v7172_v54  ;;  %v4284_v21 = vpop.f32.mrb[37].mxu0 }
 0x48e   : > { %v4356_v18 = vadd.f32 %v4355_v41, %v7172_v54  ;;  %v4357_v31 = vpop.f32.mrb[37].mxu1  ;;  %v4285_v13 = vadd.f32 %v4284_v21, %v7172_v54  ;;  %v4286_v24 = vpop.f32.mrb[38].mxu0 }
 0x48f   : > { %v4358_v49 = vadd.f32 %v4357_v31, %v7172_v54  ;;  %v4359_v17 = vpop.f32.mrb[38].mxu1  ;;  %v4570_v4 = vmax.f32 %v4283_v22, 0.0  ;;  %v4287_v35 = vadd.f32 %v4286_v24, %v7174_v5  ;;  %v4288_v33 = vpop.f32.mrb[39].mxu0 }
 0x490   : > { %v4572_v61 = vmax.f32 %v4356_v18, 0.0  ;;  %v4360_v29 = vadd.f32 %v4359_v17, %v7174_v5  ;;  %v4361_v55 = vpop.f32.mrb[39].mxu1  ;;  %v4571_v34 = vmax.f32 %v4285_v13, 0.0  ;;  %v4289_v52 = vadd.f32 %v4288_v33, %v7174_v5 }
 0x491   : > { %v4573_v45 = vmax.f32 %v4358_v49, 0.0  ;;  %v4362_v16 = vadd.f32 %v4361_v55, %v7174_v5  ;;  %4698 = vst [vmem:[%s7166_s25 + $0x140] sm:$0xff] %v4570_v4  ;;  %v4586_v51 = vmax.f32 %v4287_v35, 0.0 }
 0x492   : > { %4700 = vst [vmem:[%s7166_s25 + $0x150] sm:$0xff] %v4572_v61  ;;  %v4588_v36 = vmax.f32 %v4360_v29, 0.0  ;;  %4699 = vst [vmem:[%s7166_s25 + $0x148] sm:$0xff] %v4571_v34  ;;  %v4587_v62 = vmax.f32 %v4289_v52, 0.0 }
 0x493   : > { %4701 = vst [vmem:[%s7166_s25 + $0x158] sm:$0xff] %v4573_v45  ;;  %v4589_v11 = vmax.f32 %v4362_v16, 0.0  ;;  %4714 = vst [vmem:[%s7166_s25 + $0x1c0] sm:$0xff] %v4586_v51 }
 0x494   : > { %4716 = vst [vmem:[%s7166_s25 + $0x1d0] sm:$0xff] %v4588_v36  ;;  %4715 = vst [vmem:[%s7166_s25 + $0x1c8] sm:$0xff] %v4587_v62  ;;  %v4292_v26 = vpop.f32.mrb[40].mxu0 }
 0x495   : > { %4717 = vst [vmem:[%s7166_s25 + $0x1d8] sm:$0xff] %v4589_v11  ;;  %v4365_v28 = vpop.f32.mrb[40].mxu1  ;;  %v4293_v47 = vadd.f32 %v4292_v26, %v7192_v0  ;;  %v4294_v50 = vpop.f32.mrb[41].mxu0 }
 0x496   : > { %v4366_v15 = vadd.f32 %v4365_v28, %v7192_v0  ;;  %v4367_v63 = vpop.f32.mrb[41].mxu1  ;;  %v4295_v59 = vadd.f32 %v4294_v50, %v7192_v0  ;;  %v4296_v42 = vpop.f32.mrb[42].mxu0 }
 0x497   : > { %v4368_v53 = vadd.f32 %v4367_v63, %v7192_v0  ;;  %v4369_v12 = vpop.f32.mrb[42].mxu1  ;;  %v4602_v40 = vmax.f32 %v4293_v47, 0.0  ;;  %v4297_v60 = vadd.f32 %v4296_v42, %v7194_v19  ;;  %v4298_v8 = vpop.f32.mrb[43].mxu0 }
 0x498   : > { %v4604_v1 = vmax.f32 %v4366_v15, 0.0  ;;  %v4370_v20 = vadd.f32 %v4369_v12, %v7194_v19  ;;  %v4371_v46 = vpop.f32.mrb[43].mxu1  ;;  %v4603_v56 = vmax.f32 %v4295_v59, 0.0  ;;  %v4299_v44 = vadd.f32 %v4298_v8, %v7194_v19 }
 0x499   : > { %v4605_v48 = vmax.f32 %v4368_v53, 0.0  ;;  %v4372_v7 = vadd.f32 %v4371_v46, %v7194_v19  ;;  %4730 = vst [vmem:[%s7166_s25 + $0x240] sm:$0xff] %v4602_v40  ;;  %v4618_v14 = vmax.f32 %v4297_v60, 0.0 }
 0x49a   : > { %4732 = vst [vmem:[%s7166_s25 + $0x250] sm:$0xff] %v4604_v1  ;;  %v4620_v9 = vmax.f32 %v4370_v20, 0.0  ;;  %4731 = vst [vmem:[%s7166_s25 + $0x248] sm:$0xff] %v4603_v56  ;;  %v4619_v3 = vmax.f32 %v4299_v44, 0.0 }
 0x49b   : > { %4733 = vst [vmem:[%s7166_s25 + $0x258] sm:$0xff] %v4605_v48  ;;  %v4621_v27 = vmax.f32 %v4372_v7, 0.0  ;;  %4746 = vst [vmem:[%s7166_s25 + $0x2c0] sm:$0xff] %v4618_v14 }
 0x49c   : > { %4748 = vst [vmem:[%s7166_s25 + $0x2d0] sm:$0xff] %v4620_v9  ;;  %4747 = vst [vmem:[%s7166_s25 + $0x2c8] sm:$0xff] %v4619_v3  ;;  %v4302_v23 = vpop.f32.mrb[44].mxu0 }
 0x49d   : > { %4749 = vst [vmem:[%s7166_s25 + $0x2d8] sm:$0xff] %v4621_v27  ;;  %v4375_v38 = vpop.f32.mrb[44].mxu1  ;;  %v4303_v10 = vadd.f32 %v4302_v23, %v7212_v57  ;;  %v4304_v30 = vpop.f32.mrb[45].mxu0 }
 0x49e   : > { %v4376_v32 = vadd.f32 %v4375_v38, %v7212_v57  ;;  %v4377_v39 = vpop.f32.mrb[45].mxu1  ;;  %v4305_v25 = vadd.f32 %v4304_v30, %v7212_v57  ;;  %v4306_v37 = vpop.f32.mrb[46].mxu0 }
 0x49f   : > { %v4378_v58 = vadd.f32 %v4377_v39, %v7212_v57  ;;  %v4379_v41 = vpop.f32.mrb[46].mxu1  ;;  %v4634_v22 = vmax.f32 %v4303_v10, 0.0  ;;  %v4307_v21 = vadd.f32 %v4306_v37, %v7214_v43  ;;  %v4308_v13 = vpop.f32.mrb[47].mxu0 }
 0x4a0   : > { %v4636_v18 = vmax.f32 %v4376_v32, 0.0  ;;  %v4380_v31 = vadd.f32 %v4379_v41, %v7214_v43  ;;  %v4381_v49 = vpop.f32.mrb[47].mxu1  ;;  %v4635_v24 = vmax.f32 %v4305_v25, 0.0  ;;  %v4309_v4 = vadd.f32 %v4308_v13, %v7214_v43 }
 0x4a1   : > { %v4637_v17 = vmax.f32 %v4378_v58, 0.0  ;;  %v4382_v61 = vadd.f32 %v4381_v49, %v7214_v43  ;;  %4762 = vst [vmem:[%s7166_s25 + $0x340] sm:$0xff] %v4634_v22  ;;  %v4650_v35 = vmax.f32 %v4307_v21, 0.0 }
 0x4a2   : > { %4764 = vst [vmem:[%s7166_s25 + $0x350] sm:$0xff] %v4636_v18  ;;  %v4652_v29 = vmax.f32 %v4380_v31, 0.0  ;;  %4763 = vst [vmem:[%s7166_s25 + $0x348] sm:$0xff] %v4635_v24  ;;  %v4651_v33 = vmax.f32 %v4309_v4, 0.0 }
 0x4a3   : > { %4765 = vst [vmem:[%s7166_s25 + $0x358] sm:$0xff] %v4637_v17  ;;  %v4653_v55 = vmax.f32 %v4382_v61, 0.0  ;;  %4778 = vst [vmem:[%s7166_s25 + $0x3c0] sm:$0xff] %v4650_v35 }
 0x4a4   : > { %4780 = vst [vmem:[%s7166_s25 + $0x3d0] sm:$0xff] %v4652_v29  ;;  %4779 = vst [vmem:[%s7166_s25 + $0x3c8] sm:$0xff] %v4651_v33 }
 0x4a5   : > { %4781 = vst [vmem:[%s7166_s25 + $0x3d8] sm:$0xff] %v4653_v55 }
 0x4b4   : > { %v4418_v34 = vpop.f32.mrb[48].mxu0 }
 0x4b5   : > { %v4419_v45 = vadd.f32 %v4418_v34, %v7154_v2  ;;  %v4491_v52 = vpop.f32.mrb[48].mxu1  ;;  %v4420_v16 = vpop.f32.mrb[49].mxu0 }
 0x4b6   : > { %v4492_v51 = vadd.f32 %v4491_v52, %v7154_v2  ;;  %v4421_v36 = vadd.f32 %v4420_v16, %v7154_v2  ;;  %v4493_v62 = vpop.f32.mrb[49].mxu1  ;;  %v4422_v11 = vpop.f32.mrb[50].mxu0 }
 0x4b7   : > { %v4542_v26 = vmax.f32 %v4419_v45, 0.0  ;;  %v4494_v28 = vadd.f32 %v4493_v62, %v7154_v2  ;;  %v4423_v47 = vadd.f32 %v4422_v11, %v7156_v6  ;;  %v4495_v15 = vpop.f32.mrb[50].mxu1  ;;  %v4424_v50 = vpop.f32.mrb[51].mxu0 }
 0x4b8   : > { %v4544_v63 = vmax.f32 %v4492_v51, 0.0  ;;  %v4543_v59 = vmax.f32 %v4421_v36, 0.0  ;;  %v4496_v53 = vadd.f32 %v4495_v15, %v7156_v6  ;;  %v4425_v42 = vadd.f32 %v4424_v50, %v7156_v6  ;;  %v4497_v12 = vpop.f32.mrb[51].mxu1 }
 0x4b9   : > { %4670 = vst [vmem:[%s7166_s25 + $0x60] sm:$0xff] %v4542_v26  ;;  %v4545_v40 = vmax.f32 %v4494_v28, 0.0  ;;  %v4558_v1 = vmax.f32 %v4423_v47, 0.0  ;;  %v4498_v2 = vadd.f32 %v4497_v12, %v7156_v6 }
 0x4ba   : > { %4672 = vst [vmem:[%s7166_s25 + $0x70] sm:$0xff] %v4544_v63  ;;  %4671 = vst [vmem:[%s7166_s25 + $0x68] sm:$0xff] %v4543_v59  ;;  %v4560_v60 = vmax.f32 %v4496_v53, 0.0  ;;  %v4559_v20 = vmax.f32 %v4425_v42, 0.0 }
 0x4bb   : > { %4673 = vst [vmem:[%s7166_s25 + $0x78] sm:$0xff] %v4545_v40  ;;  %4686 = vst [vmem:[%s7166_s25 + $0xe0] sm:$0xff] %v4558_v1  ;;  %v4561_v8 = vmax.f32 %v4498_v2, 0.0 }
 0x4bc   : > { %4688 = vst [vmem:[%s7166_s25 + $0xf0] sm:$0xff] %v4560_v60  ;;  %4687 = vst [vmem:[%s7166_s25 + $0xe8] sm:$0xff] %v4559_v20  ;;  %v4428_v46 = vpop.f32.mrb[52].mxu0 }
 0x4bd   : > { %4689 = vst [vmem:[%s7166_s25 + $0xf8] sm:$0xff] %v4561_v8  ;;  %v4429_v56 = vadd.f32 %v4428_v46, %v7172_v54  ;;  %v4501_v48 = vpop.f32.mrb[52].mxu1  ;;  %v4430_v44 = vpop.f32.mrb[53].mxu0 }
 0x4be   : > { %v4502_v7 = vadd.f32 %v4501_v48, %v7172_v54  ;;  %v4431_v6 = vadd.f32 %v4430_v44, %v7172_v54  ;;  %v4503_v14 = vpop.f32.mrb[53].mxu1  ;;  %v4432_v9 = vpop.f32.mrb[54].mxu0 }
 0x4bf   : > { %v4574_v3 = vmax.f32 %v4429_v56, 0.0  ;;  %v4504_v27 = vadd.f32 %v4503_v14, %v7172_v54  ;;  %v4433_v23 = vadd.f32 %v4432_v9, %v7174_v5  ;;  %v4505_v38 = vpop.f32.mrb[54].mxu1  ;;  %v4434_v10 = vpop.f32.mrb[55].mxu0 }
 0x4c0   : > { %v4576_v32 = vmax.f32 %v4502_v7, 0.0  ;;  %v4575_v30 = vmax.f32 %v4431_v6, 0.0  ;;  %v4506_v39 = vadd.f32 %v4505_v38, %v7174_v5  ;;  %v4435_v25 = vadd.f32 %v4434_v10, %v7174_v5  ;;  %v4507_v58 = vpop.f32.mrb[55].mxu1 }
 0x4c1   : > { %4702 = vst [vmem:[%s7166_s25 + $0x160] sm:$0xff] %v4574_v3  ;;  %v4577_v37 = vmax.f32 %v4504_v27, 0.0  ;;  %v4590_v41 = vmax.f32 %v4433_v23, 0.0  ;;  %v4508_v54 = vadd.f32 %v4507_v58, %v7174_v5 }
 0x4c2   : > { %4704 = vst [vmem:[%s7166_s25 + $0x170] sm:$0xff] %v4576_v32  ;;  %4703 = vst [vmem:[%s7166_s25 + $0x168] sm:$0xff] %v4575_v30  ;;  %v4592_v22 = vmax.f32 %v4506_v39, 0.0  ;;  %v4591_v18 = vmax.f32 %v4435_v25, 0.0 }
 0x4c3   : > { %4705 = vst [vmem:[%s7166_s25 + $0x178] sm:$0xff] %v4577_v37  ;;  %4718 = vst [vmem:[%s7166_s25 + $0x1e0] sm:$0xff] %v4590_v41  ;;  %v4593_v21 = vmax.f32 %v4508_v54, 0.0 }
 0x4c4   : > { %4720 = vst [vmem:[%s7166_s25 + $0x1f0] sm:$0xff] %v4592_v22  ;;  %4719 = vst [vmem:[%s7166_s25 + $0x1e8] sm:$0xff] %v4591_v18  ;;  %v4438_v31 = vpop.f32.mrb[56].mxu0 }
 0x4c5   : > { %4721 = vst [vmem:[%s7166_s25 + $0x1f8] sm:$0xff] %v4593_v21  ;;  %v4439_v13 = vadd.f32 %v4438_v31, %v7192_v0  ;;  %v4511_v49 = vpop.f32.mrb[56].mxu1  ;;  %v4440_v24 = vpop.f32.mrb[57].mxu0 }
 0x4c6   : > { %v4512_v17 = vadd.f32 %v4511_v49, %v7192_v0  ;;  %v4441_v5 = vadd.f32 %v4440_v24, %v7192_v0  ;;  %v4513_v4 = vpop.f32.mrb[57].mxu1  ;;  %v4442_v61 = vpop.f32.mrb[58].mxu0 }
 0x4c7   : > { %v4606_v35 = vmax.f32 %v4439_v13, 0.0  ;;  %v4514_v29 = vadd.f32 %v4513_v4, %v7192_v0  ;;  %v4443_v33 = vadd.f32 %v4442_v61, %v7194_v19  ;;  %v4515_v55 = vpop.f32.mrb[58].mxu1  ;;  %v4444_v34 = vpop.f32.mrb[59].mxu0 }
 0x4c8   : > { %v4608_v45 = vmax.f32 %v4512_v17, 0.0  ;;  %v4607_v52 = vmax.f32 %v4441_v5, 0.0  ;;  %v4516_v16 = vadd.f32 %v4515_v55, %v7194_v19  ;;  %v4445_v51 = vadd.f32 %v4444_v34, %v7194_v19  ;;  %v4517_v36 = vpop.f32.mrb[59].mxu1 }
 0x4c9   : > { %4734 = vst [vmem:[%s7166_s25 + $0x260] sm:$0xff] %v4606_v35  ;;  %v4609_v62 = vmax.f32 %v4514_v29, 0.0  ;;  %v4622_v0 = vmax.f32 %v4443_v33, 0.0  ;;  %v4518_v11 = vadd.f32 %v4517_v36, %v7194_v19 }
 0x4ca   : > { %4736 = vst [vmem:[%s7166_s25 + $0x270] sm:$0xff] %v4608_v45  ;;  %4735 = vst [vmem:[%s7166_s25 + $0x268] sm:$0xff] %v4607_v52  ;;  %v4624_v26 = vmax.f32 %v4516_v16, 0.0  ;;  %v4623_v28 = vmax.f32 %v4445_v51, 0.0 }
 0x4cb   : > { %4737 = vst [vmem:[%s7166_s25 + $0x278] sm:$0xff] %v4609_v62  ;;  %4750 = vst [vmem:[%s7166_s25 + $0x2e0] sm:$0xff] %v4622_v0  ;;  %v4625_v47 = vmax.f32 %v4518_v11, 0.0 }
 0x4cc   : > { %4752 = vst [vmem:[%s7166_s25 + $0x2f0] sm:$0xff] %v4624_v26  ;;  %4751 = vst [vmem:[%s7166_s25 + $0x2e8] sm:$0xff] %v4623_v28  ;;  %v4448_v15 = vpop.f32.mrb[60].mxu0 }
 0x4cd   : > { %4753 = vst [vmem:[%s7166_s25 + $0x2f8] sm:$0xff] %v4625_v47  ;;  %v4449_v50 = vadd.f32 %v4448_v15, %v7212_v57  ;;  %v4521_v19 = vpop.f32.mrb[60].mxu1  ;;  %v4450_v63 = vpop.f32.mrb[61].mxu0 }
 0x4ce   : > { %v4522_v59 = vadd.f32 %v4521_v19, %v7212_v57  ;;  %v4451_v53 = vadd.f32 %v4450_v63, %v7212_v57  ;;  %v4523_v42 = vpop.f32.mrb[61].mxu1  ;;  %v4452_v12 = vpop.f32.mrb[62].mxu0 }
 0x4cf   : > { %v4638_v40 = vmax.f32 %v4449_v50, 0.0  ;;  %v4524_v1 = vadd.f32 %v4523_v42, %v7212_v57  ;;  %v4453_v2 = vadd.f32 %v4452_v12, %v7214_v43  ;;  %v4525_v60 = vpop.f32.mrb[62].mxu1  ;;  %v4454_v20 = vpop.f32.mrb[63].mxu0 }
 0x4d0   : > { %v4640_v8 = vmax.f32 %v4522_v59, 0.0  ;;  %v4639_v46 = vmax.f32 %v4451_v53, 0.0  ;;  %v4526_v56 = vadd.f32 %v4525_v60, %v7214_v43  ;;  %v4455_v48 = vadd.f32 %v4454_v20, %v7214_v43  ;;  %v4527_v44 = vpop.f32.mrb[63].mxu1 }
 0x4d1   : > { %4766 = vst [vmem:[%s7166_s25 + $0x360] sm:$0xff] %v4638_v40  ;;  %v4641_v57 = vmax.f32 %v4524_v1, 0.0  ;;  %v4654_v7 = vmax.f32 %v4453_v2, 0.0  ;;  %v4528_v6 = vadd.f32 %v4527_v44, %v7214_v43 }
 0x4d2   : > { %4768 = vst [vmem:[%s7166_s25 + $0x370] sm:$0xff] %v4640_v8  ;;  %4767 = vst [vmem:[%s7166_s25 + $0x368] sm:$0xff] %v4639_v46  ;;  %v4656_v14 = vmax.f32 %v4526_v56, 0.0  ;;  %v4655_v9 = vmax.f32 %v4455_v48, 0.0 }
 0x4d3   : > { %4769 = vst [vmem:[%s7166_s25 + $0x378] sm:$0xff] %v4641_v57  ;;  %4782 = vst [vmem:[%s7166_s25 + $0x3e0] sm:$0xff] %v4654_v7  ;;  %v4657_v3 = vmax.f32 %v4528_v6, 0.0 }
 0x4d4   : > { %4784 = vst [vmem:[%s7166_s25 + $0x3f0] sm:$0xff] %v4656_v14  ;;  %4783 = vst [vmem:[%s7166_s25 + $0x3e8] sm:$0xff] %v4655_v9 }
 0x4d5   : > { %4785 = vst [vmem:[%s7166_s25 + $0x3f8] sm:$0xff] %v4657_v3 }
 0x4d6   : > { %5204 = shalt.err (!%p5201_p7)
}
 0x4d7   : > { %s5205_s25 = scalar_lea.hbm %s7434_s29, 16384  ;;  %s5209_s20 = scalar_lea.hbm %s7502_s9, 65536 }
 0x4d8   : > { %p5206_p10 = scmp.ne.s32.totalorder %s7434_s29, %s5205_s25  ;;  %p5210_p13 = scmp.lt.u32.totalorder %s7434_s29, %s7502_s9 }
 0x4d9   : > { %p5211_p0 = scmp.lt.u32.totalorder %s5209_s20, %s5205_s25  ;;  %p5213_p2 = scmp.lt.u32.totalorder %s5205_s25, %s7434_s29 }
 0x4da   : > { %p5207_p11 = pnand %p5206_p10, %p5403_p8 }
 0x4db   : > { %p5212_p1 = por %p5211_p0, %p5210_p13 }
 0x4dc   : > { %p5208_p12 = pneg %p5207_p11 }
 0x4dd   : > { %p5214_p3 = por %p5213_p2, %p5212_p1 }
 0x4df   : > { %p5215_p4 = pnand %p5214_p3, %p5208_p12 }
 0x4e1   : > { %5218 = shalt.err (!%p5215_p4)
}
 0x4e2   : > { %s5290_s18 = smov 2048   ;;  %s5291_s24 = smov 4096  }
 0x4e3   : > { %s5292_s26 = smov 128  }
 0x4e4   : > { %5084 = dma.vmem_to_hbm [thread:$0]  (%p5403_p8), %s7427_s12, 16384, %s7434_s29, %s4787_s17, %s5290_s18, %s5291_s24, %s5292_s26  }
 0x4e5 PF: > { %p5090_p5 = scmp.ge.s32.totalorder %s5285_s16, 2  ;;  %s4817_s13 = sand.u32 1, %s5257_s30  }
 0x4e6   : > { %s4818_s25 = scalar_lea.sflag [#allocation4], %s4817_s13 }
 0x4e7   : > { %p5087_p6 = pnand %p5090_p5, %p5407_p9 }
 0x4e9   : > { %5252 = dma.done.wait (!%p5087_p6), %s4818_s25, 16384  }
 0x4ea   : > { %5254 = vsyncadd (!%p5087_p6), %s4818_s25, 4294950912  ;;  %s22_s16 = sadd.s32 1, %s5285_s16   ;;  %s7513_s23 = sld [smem:[#allocation6_spill]] }
 0x4eb   : > { %p19_p7 = scmp.ge.s32.totalorder %s22_s16, 6   ;;  %s7514_s19 = sld [smem:[#allocation7_spill]] }
 0x4ec   : > { %s7515_s30 = smov %s5261_s10  ;;  %s7516_s10 = smov %s5265_s11 }
 0x4ed   : > { %s7517_s11 = smov %s5415_s28  ;;  %s7518_s12 = smov %s5277_s14 }
 0x4ee   : > { %s7519_s13 = smov %s5281_s15  ;;  %21 = sbr.rel (!%p19_p7) target bundleno = 5 (0x5), region = 119 }
 0x4f0   : > { %s7520_s14 = smov %s7513_s23 }
 0x4f1   : > { %s7521_s15 = smov %s7514_s19 }
 0x4f5   :  { %4823 = vsyncpa [#allocation4], 1 }
 0x4f6   :  { %4825 = vsyncpa [#allocation4 + $0x1], 1 }

</bundles_post_ra>
